<compile_context>
chip_gen: v6e
topology: v6e:2x2x1
jax: 0.10.0
libtpu: 0.0.40
codegen_flags: <defaults>
</compile_context>

<pallas_src>
import functools

import jax
import jax.numpy as jnp
from jax import lax
from jax.experimental import pallas as pl
from jax.experimental.pallas import tpu as pltpu

C = 64            # fixed by the module: Conv2d(64, 64, 3, 1, 1)
KH = KW = 3
KK = KH * KW
LEAKY_SLOPE = 0.01  # PyTorch F.leaky_relu default negative_slope


def _shift_h(v, dy):
    """s[:, h] = v[:, h+dy], zero outside bounds. H is a non-tiled leading axis
    (cheap whole-(W,C)-slab regrouping, no cross-sublane work)."""
    if dy == 0:
        return v
    zero = jnp.zeros_like(v[:, :1])
    if dy == 1:
        return jnp.concatenate([v[:, 1:], zero], axis=1)
    return jnp.concatenate([zero, v[:, :-1]], axis=1)


def _shift_w(v, dx):
    """s[:, :, w] = v[:, :, w+dx], zero outside bounds. W is the sublane axis, so
    this is the expensive shift -- it is hoisted and done only twice per conv."""
    if dx == 0:
        return v
    zero = jnp.zeros_like(v[:, :, :1])
    if dx == 1:
        return jnp.concatenate([v[:, :, 1:], zero], axis=2)
    return jnp.concatenate([zero, v[:, :, :-1]], axis=2)


def _main_block_kernel(x_ref, w1_ref, b1_ref, w2_ref, b2_ref, out_ref, *, bt, H, W):
    """One grid step = `bt` batch elements.

    x_ref : (bt, H, W, C)   unpadded NHWC input tile
    w1_ref: (9*C, C)        conv1 weights, tap-major rows (k*C + cin, cout)
    b1_ref: (1, C)          conv1 bias (f32)
    w2_ref: (9*C, C)        conv2 weights
    b2_ref: (1, C)          conv2 bias (f32)
    out_ref:(bt, H, W, C)   output tile
    """
    m = bt * H * W
    op_dtype = w1_ref.dtype  # bf16 by default, f32 for the exactness path

    def conv3x3(v, w_ref, b_ref):
        # Hoisted dx variants: 2 sublane shifts total per conv (dx=0 is identity).
        vx = [_shift_w(v, dx) for dx in (-1, 0, 1)]          # each (bt, H, W, C)
        acc = None
        for ky in range(KH):
            dy = ky - 1
            # per-ky im2col group, column order kx = 0,1,2  (dx = -1, 0, +1),
            # matching tap-major weight rows k = ky*3 + kx.
            group = jnp.concatenate([_shift_h(u, dy) for u in vx], axis=-1)
            lhs = group.reshape(m, 3 * C)                    # (m, 192), matmul dtype
            w_rows = w_ref[ky * 3 * C:(ky + 1) * 3 * C, :]   # (192, C) static slice
            part = jnp.dot(lhs, w_rows, preferred_element_type=jnp.float32)
            acc = part if acc is None else acc + part
        return acc + b_ref[...]                              # bias in f32, (m, C)

    # Early cast to the matmul dtype so every shifted copy is half-width when bf16.
    x = x_ref[...].astype(op_dtype)
    y = jnp.maximum(conv3x3(x, w1_ref, b1_ref), 0.0)         # ReLU in f32, (m, C)
    y = y.reshape(bt, H, W, C).astype(op_dtype)              # early cast before conv2 im2col
    z = conv3x3(y, w2_ref, b2_ref)                           # (m, C) f32
    z = jnp.where(z > 0, z, LEAKY_SLOPE * z)                 # LeakyReLU(0.01) in f32
    out_ref[...] = z.reshape(bt, H, W, C).astype(out_ref.dtype)


def _pick_batch_tile(B, H, W, op_bytes):
    """Largest bt dividing B that keeps >= 2 grid steps (when B > 1, so the input DMA
    pipelines and megacore can shard) and a modest per-step VMEM working set."""
    budget = 8 << 20  # per-step working set target (fits v5e 16 MiB / v7x 32 MiB scoped)

    def per_step_bytes(bt):
        elems = bt * H * W * C
        io = elems * 4 * 2 * 2            # in + out tiles, f32, double-buffered
        im2col = elems * 10 * op_bytes    # dx variants + per-ky group + activation
        return io + im2col

    best = 1
    for bt in range(1, B + 1):
        if B % bt:
            continue
        if per_step_bytes(bt) > budget:
            continue
        if B == 1 or B // bt >= 2:
            best = bt
    return best


def torch_weight_to_tap_major(w_oihw):
    """PyTorch Conv2d weight (Cout, Cin, KH, KW) -> tap-major (KH*KW, Cin, Cout)."""
    cout, cin, kh, kw = w_oihw.shape
    return jnp.transpose(w_oihw, (2, 3, 1, 0)).reshape(kh * kw, cin, cout)


def main_extraction_block(x_nhwc, w1, b1, w2, b2, *, batch_tile=None,
                          use_bf16_matmul=True, out_dtype=None):
    """x_nhwc: (B, H, W, 64); w*: (9, 64, 64) tap-major; b*: (64,).

    use_bf16_matmul (default True): bf16 MXU operands (cast before im2col) with f32
    accumulation and f32 elementwise work. Set False for bit-tight f32 semantics.
    """
    B, H, W, Cin = x_nhwc.shape
    assert Cin == C
    wdtype = jnp.bfloat16 if use_bf16_matmul else jnp.float32
    op_bytes = 2 if use_bf16_matmul else 4
    bt = batch_tile if batch_tile is not None else _pick_batch_tile(B, H, W, op_bytes)
    assert B % bt == 0, "batch_tile must divide batch"
    out_dtype = x_nhwc.dtype if out_dtype is None else out_dtype

    w1_mat = w1.reshape(KK * C, C).astype(wdtype)
    w2_mat = w2.reshape(KK * C, C).astype(wdtype)
    b1_2d = b1.reshape(1, C).astype(jnp.float32)
    b2_2d = b2.reshape(1, C).astype(jnp.float32)

    kernel = functools.partial(_main_block_kernel, bt=bt, H=H, W=W)

    flops = 4 * B * H * W * (KK * C) * C                 # 2 convs * 2*M*K*N
    bytes_accessed = (B * H * W * C * 4                  # input (f32)
                      + B * H * W * C * jnp.dtype(out_dtype).itemsize
                      + 2 * (KK * C * C) * op_bytes      # weights
                      + 2 * C * 4)                       # biases

    return pl.pallas_call(
        kernel,
        out_shape=jax.ShapeDtypeStruct((B, H, W, C), out_dtype),
        grid_spec=pltpu.PrefetchScalarGridSpec(
            num_scalar_prefetch=0,
            grid=(B // bt,),
            in_specs=[
                pl.BlockSpec((bt, H, W, C), lambda b: (b, 0, 0, 0)),
                pl.BlockSpec((KK * C, C), lambda b: (0, 0)),
                pl.BlockSpec((1, C), lambda b: (0, 0)),
                pl.BlockSpec((KK * C, C), lambda b: (0, 0)),
                pl.BlockSpec((1, C), lambda b: (0, 0)),
            ],
            out_specs=pl.BlockSpec((bt, H, W, C), lambda b: (b, 0, 0, 0)),
        ),
        compiler_params=pltpu.CompilerParams(
            dimension_semantics=("parallel",),
            # Explicit scoped-VMEM limit: > v5e's 16 MiB default, within v7x's 64 MiB.
            vmem_limit_bytes=32 * 1024 * 1024),
        cost_estimate=pl.CostEstimate(
            flops=flops, transcendentals=0, bytes_accessed=int(bytes_accessed)),
    )(x_nhwc, w1_mat, b1_2d, w2_mat, b2_2d)


def _reference_torch_layout(x_nhwc, w1_oihw, b1, w2_oihw, b2):
    """Pure-JAX reference using the PyTorch-native (Cout, Cin, KH, KW) weights."""
    w1_hwio = jnp.transpose(w1_oihw, (2, 3, 1, 0))
    w2_hwio = jnp.transpose(w2_oihw, (2, 3, 1, 0))
    dn = lax.conv_dimension_numbers(x_nhwc.shape, w1_hwio.shape,
                                    ("NHWC", "HWIO", "NHWC"))
    y = lax.conv_general_dilated(x_nhwc, w1_hwio, (1, 1), "SAME",
                                 dimension_numbers=dn) + b1
    y = jnp.maximum(y, 0.0)
    y = lax.conv_general_dilated(y, w2_hwio, (1, 1), "SAME",
                                 dimension_numbers=dn) + b2
    return jnp.where(y > 0, y, LEAKY_SLOPE * y)


if __name__ == "__main__":
    key = jax.random.PRNGKey(0)
    kx, kw1, kb1, kw2, kb2 = jax.random.split(key, 5)

    B, H, W = 2, 16, 16
    # PyTorch-convention NCHW input, transposed to the kernel's NHWC layout.
    x_nchw = jax.random.normal(kx, (B, C, H, W), dtype=jnp.float32)
    x_nhwc = jnp.transpose(x_nchw, (0, 2, 3, 1))

    # Synthetic Conv2d(64, 64, 3, 1, 1) parameters in PyTorch-native (Cout, Cin, KH, KW)
    # layout, so the torch -> tap-major permutation is exercised end to end.
    fan_in = C * KH * KW
    bound = 1.0 / fan_in ** 0.5
    w1_t = jax.random.uniform(kw1, (C, C, KH, KW), jnp.float32, -bound, bound)
    b1 = jax.random.uniform(kb1, (C,), jnp.float32, -bound, bound)
    w2_t = jax.random.uniform(kw2, (C, C, KH, KW), jnp.float32, -bound, bound)
    b2 = jax.random.uniform(kb2, (C,), jnp.float32, -bound, bound)

    ref = jax.block_until_ready(_reference_torch_layout(x_nhwc, w1_t, b1, w2_t, b2))

    w1 = torch_weight_to_tap_major(w1_t)
    w2 = torch_weight_to_tap_major(w2_t)

    # f32 MXU operands: tight-tolerance check against the JAX reference.
    out_f32 = jax.block_until_ready(
        main_extraction_block(x_nhwc, w1, b1, w2, b2, use_bf16_matmul=False))
    assert out_f32.shape == (B, H, W, C)
    assert jnp.allclose(out_f32, ref, atol=1e-4, rtol=1e-4), "f32 kernel mismatch"

    # Default path: bf16 MXU operands (early cast), f32 accumulate + f32 activations.
    # NOTE: bf16 here applies to both convs' im2col operands (including the conv1
    # activation feeding conv2); error compounds if many such blocks are stacked.
    out_bf16 = jax.block_until_ready(
        main_extraction_block(x_nhwc, w1, b1, w2, b2))
    assert out_bf16.shape == (B, H, W, C)
    assert jnp.allclose(out_bf16, ref, atol=2e-1, rtol=2e-2), "bf16 kernel mismatch"

    print("KERNEL_OK")
</pallas_src>

<mosaic_0001>
module attributes {stable_mosaic.version = 11 : i64} {
  func.func @_main_block_kernel(%arg0: i32, %arg1: memref<1x16x16x64xf32, #tpu.memory_space<vmem>>, %arg2: memref<576x64xf32, #tpu.memory_space<vmem>>, %arg3: memref<1x64xf32, #tpu.memory_space<vmem>>, %arg4: memref<576x64xf32, #tpu.memory_space<vmem>>, %arg5: memref<1x64xf32, #tpu.memory_space<vmem>>, %arg6: memref<1x16x16x64xf32, #tpu.memory_space<vmem>>) attributes {dimension_semantics = [#tpu.dimension_semantics<parallel>], iteration_bounds = array<i64: 2>, scalar_prefetch = 0 : i64, scratch_operands = 0 : i64, tpu.core_type = #tpu.core_type<tc>, window_params = [{transform_indices = @transform_0, window_bounds = array<i64: 1, 16, 16, 64>}, {pipeline_mode = #tpu.pipeline_mode<synchronous>, transform_indices = @transform_1, window_bounds = array<i64: 576, 64>}, {pipeline_mode = #tpu.pipeline_mode<synchronous>, transform_indices = @transform_2, window_bounds = array<i64: 1, 64>}, {pipeline_mode = #tpu.pipeline_mode<synchronous>, transform_indices = @transform_3, window_bounds = array<i64: 576, 64>}, {pipeline_mode = #tpu.pipeline_mode<synchronous>, transform_indices = @transform_4, window_bounds = array<i64: 1, 64>}, {transform_indices = @transform_5, window_bounds = array<i64: 1, 16, 16, 64>}]} {
    %c0 = arith.constant 0 : index
    %c0_0 = arith.constant 0 : index
    %c0_1 = arith.constant 0 : index
    %c0_2 = arith.constant 0 : index
    %0 = vector.load %arg1[%c0, %c0_0, %c0_1, %c0_2] : memref<1x16x16x64xf32, #tpu.memory_space<vmem>>, vector<1x16x16x64xf32>
    %cst = arith.constant 0.000000e+00 : f32
    %1 = vector.broadcast %cst : f32 to vector<1x16x1x64xf32>
    %2 = vector.extract_strided_slice %0 {offsets = [0, 0, 0, 0], sizes = [1, 16, 15, 64], strides = [1, 1, 1, 1]} : vector<1x16x16x64xf32> to vector<1x16x15x64xf32>
    %3 = tpu.concatenate %1, %2 in 2 : vector<1x16x1x64xf32>, vector<1x16x15x64xf32> -> vector<1x16x16x64xf32>
    %cst_3 = arith.constant 0.000000e+00 : f32
    %4 = vector.broadcast %cst_3 : f32 to vector<1x16x1x64xf32>
    %5 = vector.extract_strided_slice %0 {offsets = [0, 0, 1, 0], sizes = [1, 16, 15, 64], strides = [1, 1, 1, 1]} : vector<1x16x16x64xf32> to vector<1x16x15x64xf32>
    %6 = tpu.concatenate %5, %4 in 2 : vector<1x16x15x64xf32>, vector<1x16x1x64xf32> -> vector<1x16x16x64xf32>
    %cst_4 = arith.constant 0.000000e+00 : f32
    %7 = vector.broadcast %cst_4 : f32 to vector<1x1x16x64xf32>
    %8 = vector.extract_strided_slice %3 {offsets = [0, 0, 0, 0], sizes = [1, 15, 16, 64], strides = [1, 1, 1, 1]} : vector<1x16x16x64xf32> to vector<1x15x16x64xf32>
    %9 = tpu.concatenate %7, %8 in 1 : vector<1x1x16x64xf32>, vector<1x15x16x64xf32> -> vector<1x16x16x64xf32>
    %cst_5 = arith.constant 0.000000e+00 : f32
    %10 = vector.broadcast %cst_5 : f32 to vector<1x1x16x64xf32>
    %11 = vector.extract_strided_slice %0 {offsets = [0, 0, 0, 0], sizes = [1, 15, 16, 64], strides = [1, 1, 1, 1]} : vector<1x16x16x64xf32> to vector<1x15x16x64xf32>
    %12 = tpu.concatenate %10, %11 in 1 : vector<1x1x16x64xf32>, vector<1x15x16x64xf32> -> vector<1x16x16x64xf32>
    %cst_6 = arith.constant 0.000000e+00 : f32
    %13 = vector.broadcast %cst_6 : f32 to vector<1x1x16x64xf32>
    %14 = vector.extract_strided_slice %6 {offsets = [0, 0, 0, 0], sizes = [1, 15, 16, 64], strides = [1, 1, 1, 1]} : vector<1x16x16x64xf32> to vector<1x15x16x64xf32>
    %15 = tpu.concatenate %13, %14 in 1 : vector<1x1x16x64xf32>, vector<1x15x16x64xf32> -> vector<1x16x16x64xf32>
    %16 = tpu.concatenate %9, %12, %15 in 3 : vector<1x16x16x64xf32>, vector<1x16x16x64xf32>, vector<1x16x16x64xf32> -> vector<1x16x16x192xf32>
    %17 = vector.shape_cast %16 : vector<1x16x16x192xf32> to vector<256x192xf32>
    %c0_7 = arith.constant 0 : index
    %c0_8 = arith.constant 0 : index
    %18 = vector.load %arg2[%c0_7, %c0_8] : memref<576x64xf32, #tpu.memory_space<vmem>>, vector<192x64xf32>
    %cst_9 = arith.constant dense<0.000000e+00> : vector<256x64xf32>
    %19 = tpu.matmul %17, %18, %cst_9 {dimension_numbers = #tpu.dot_dimension_numbers<[1], [0], [0], [1], [0, 0, 1, 1], [], []>} : vector<256x192xf32>, vector<192x64xf32>, vector<256x64xf32> -> vector<256x64xf32>
    %20 = tpu.concatenate %3, %0, %6 in 3 : vector<1x16x16x64xf32>, vector<1x16x16x64xf32>, vector<1x16x16x64xf32> -> vector<1x16x16x192xf32>
    %21 = vector.shape_cast %20 : vector<1x16x16x192xf32> to vector<256x192xf32>
    %c192 = arith.constant 192 : index
    %c0_10 = arith.constant 0 : index
    %22 = vector.load %arg2[%c192, %c0_10] : memref<576x64xf32, #tpu.memory_space<vmem>>, vector<192x64xf32>
    %cst_11 = arith.constant dense<0.000000e+00> : vector<256x64xf32>
    %23 = tpu.matmul %21, %22, %cst_11 {dimension_numbers = #tpu.dot_dimension_numbers<[1], [0], [0], [1], [0, 0, 1, 1], [], []>} : vector<256x192xf32>, vector<192x64xf32>, vector<256x64xf32> -> vector<256x64xf32>
    %24 = arith.addf %19, %23 : vector<256x64xf32>
    %cst_12 = arith.constant 0.000000e+00 : f32
    %25 = vector.broadcast %cst_12 : f32 to vector<1x1x16x64xf32>
    %26 = vector.extract_strided_slice %3 {offsets = [0, 1, 0, 0], sizes = [1, 15, 16, 64], strides = [1, 1, 1, 1]} : vector<1x16x16x64xf32> to vector<1x15x16x64xf32>
    %27 = tpu.concatenate %26, %25 in 1 : vector<1x15x16x64xf32>, vector<1x1x16x64xf32> -> vector<1x16x16x64xf32>
    %cst_13 = arith.constant 0.000000e+00 : f32
    %28 = vector.broadcast %cst_13 : f32 to vector<1x1x16x64xf32>
    %29 = vector.extract_strided_slice %0 {offsets = [0, 1, 0, 0], sizes = [1, 15, 16, 64], strides = [1, 1, 1, 1]} : vector<1x16x16x64xf32> to vector<1x15x16x64xf32>
    %30 = tpu.concatenate %29, %28 in 1 : vector<1x15x16x64xf32>, vector<1x1x16x64xf32> -> vector<1x16x16x64xf32>
    %cst_14 = arith.constant 0.000000e+00 : f32
    %31 = vector.broadcast %cst_14 : f32 to vector<1x1x16x64xf32>
    %32 = vector.extract_strided_slice %6 {offsets = [0, 1, 0, 0], sizes = [1, 15, 16, 64], strides = [1, 1, 1, 1]} : vector<1x16x16x64xf32> to vector<1x15x16x64xf32>
    %33 = tpu.concatenate %32, %31 in 1 : vector<1x15x16x64xf32>, vector<1x1x16x64xf32> -> vector<1x16x16x64xf32>
    %34 = tpu.concatenate %27, %30, %33 in 3 : vector<1x16x16x64xf32>, vector<1x16x16x64xf32>, vector<1x16x16x64xf32> -> vector<1x16x16x192xf32>
    %35 = vector.shape_cast %34 : vector<1x16x16x192xf32> to vector<256x192xf32>
    %c384 = arith.constant 384 : index
    %c0_15 = arith.constant 0 : index
    %36 = vector.load %arg2[%c384, %c0_15] : memref<576x64xf32, #tpu.memory_space<vmem>>, vector<192x64xf32>
    %cst_16 = arith.constant dense<0.000000e+00> : vector<256x64xf32>
    %37 = tpu.matmul %35, %36, %cst_16 {dimension_numbers = #tpu.dot_dimension_numbers<[1], [0], [0], [1], [0, 0, 1, 1], [], []>} : vector<256x192xf32>, vector<192x64xf32>, vector<256x64xf32> -> vector<256x64xf32>
    %38 = arith.addf %24, %37 : vector<256x64xf32>
    %c0_17 = arith.constant 0 : index
    %c0_18 = arith.constant 0 : index
    %39 = vector.load %arg3[%c0_17, %c0_18] : memref<1x64xf32, #tpu.memory_space<vmem>>, vector<1x64xf32>
    %40 = vector.broadcast %39 : vector<1x64xf32> to vector<256x64xf32>
    %41 = arith.addf %38, %40 : vector<256x64xf32>
    %cst_19 = arith.constant 0.000000e+00 : f32
    %42 = vector.broadcast %cst_19 : f32 to vector<256x64xf32>
    %43 = arith.maximumf %41, %42 : vector<256x64xf32>
    %44 = vector.shape_cast %43 : vector<256x64xf32> to vector<1x16x16x64xf32>
    %cst_20 = arith.constant 0.000000e+00 : f32
    %45 = vector.broadcast %cst_20 : f32 to vector<1x16x1x64xf32>
    %46 = vector.extract_strided_slice %44 {offsets = [0, 0, 0, 0], sizes = [1, 16, 15, 64], strides = [1, 1, 1, 1]} : vector<1x16x16x64xf32> to vector<1x16x15x64xf32>
    %47 = tpu.concatenate %45, %46 in 2 : vector<1x16x1x64xf32>, vector<1x16x15x64xf32> -> vector<1x16x16x64xf32>
    %cst_21 = arith.constant 0.000000e+00 : f32
    %48 = vector.broadcast %cst_21 : f32 to vector<1x16x1x64xf32>
    %49 = vector.extract_strided_slice %44 {offsets = [0, 0, 1, 0], sizes = [1, 16, 15, 64], strides = [1, 1, 1, 1]} : vector<1x16x16x64xf32> to vector<1x16x15x64xf32>
    %50 = tpu.concatenate %49, %48 in 2 : vector<1x16x15x64xf32>, vector<1x16x1x64xf32> -> vector<1x16x16x64xf32>
    %cst_22 = arith.constant 0.000000e+00 : f32
    %51 = vector.broadcast %cst_22 : f32 to vector<1x1x16x64xf32>
    %52 = vector.extract_strided_slice %47 {offsets = [0, 0, 0, 0], sizes = [1, 15, 16, 64], strides = [1, 1, 1, 1]} : vector<1x16x16x64xf32> to vector<1x15x16x64xf32>
    %53 = tpu.concatenate %51, %52 in 1 : vector<1x1x16x64xf32>, vector<1x15x16x64xf32> -> vector<1x16x16x64xf32>
    %cst_23 = arith.constant 0.000000e+00 : f32
    %54 = vector.broadcast %cst_23 : f32 to vector<1x1x16x64xf32>
    %55 = vector.extract_strided_slice %44 {offsets = [0, 0, 0, 0], sizes = [1, 15, 16, 64], strides = [1, 1, 1, 1]} : vector<1x16x16x64xf32> to vector<1x15x16x64xf32>
    %56 = tpu.concatenate %54, %55 in 1 : vector<1x1x16x64xf32>, vector<1x15x16x64xf32> -> vector<1x16x16x64xf32>
    %cst_24 = arith.constant 0.000000e+00 : f32
    %57 = vector.broadcast %cst_24 : f32 to vector<1x1x16x64xf32>
    %58 = vector.extract_strided_slice %50 {offsets = [0, 0, 0, 0], sizes = [1, 15, 16, 64], strides = [1, 1, 1, 1]} : vector<1x16x16x64xf32> to vector<1x15x16x64xf32>
    %59 = tpu.concatenate %57, %58 in 1 : vector<1x1x16x64xf32>, vector<1x15x16x64xf32> -> vector<1x16x16x64xf32>
    %60 = tpu.concatenate %53, %56, %59 in 3 : vector<1x16x16x64xf32>, vector<1x16x16x64xf32>, vector<1x16x16x64xf32> -> vector<1x16x16x192xf32>
    %61 = vector.shape_cast %60 : vector<1x16x16x192xf32> to vector<256x192xf32>
    %c0_25 = arith.constant 0 : index
    %c0_26 = arith.constant 0 : index
    %62 = vector.load %arg4[%c0_25, %c0_26] : memref<576x64xf32, #tpu.memory_space<vmem>>, vector<192x64xf32>
    %cst_27 = arith.constant dense<0.000000e+00> : vector<256x64xf32>
    %63 = tpu.matmul %61, %62, %cst_27 {dimension_numbers = #tpu.dot_dimension_numbers<[1], [0], [0], [1], [0, 0, 1, 1], [], []>} : vector<256x192xf32>, vector<192x64xf32>, vector<256x64xf32> -> vector<256x64xf32>
    %64 = tpu.concatenate %47, %44, %50 in 3 : vector<1x16x16x64xf32>, vector<1x16x16x64xf32>, vector<1x16x16x64xf32> -> vector<1x16x16x192xf32>
    %65 = vector.shape_cast %64 : vector<1x16x16x192xf32> to vector<256x192xf32>
    %c192_28 = arith.constant 192 : index
    %c0_29 = arith.constant 0 : index
    %66 = vector.load %arg4[%c192_28, %c0_29] : memref<576x64xf32, #tpu.memory_space<vmem>>, vector<192x64xf32>
    %cst_30 = arith.constant dense<0.000000e+00> : vector<256x64xf32>
    %67 = tpu.matmul %65, %66, %cst_30 {dimension_numbers = #tpu.dot_dimension_numbers<[1], [0], [0], [1], [0, 0, 1, 1], [], []>} : vector<256x192xf32>, vector<192x64xf32>, vector<256x64xf32> -> vector<256x64xf32>
    %68 = arith.addf %63, %67 : vector<256x64xf32>
    %cst_31 = arith.constant 0.000000e+00 : f32
    %69 = vector.broadcast %cst_31 : f32 to vector<1x1x16x64xf32>
    %70 = vector.extract_strided_slice %47 {offsets = [0, 1, 0, 0], sizes = [1, 15, 16, 64], strides = [1, 1, 1, 1]} : vector<1x16x16x64xf32> to vector<1x15x16x64xf32>
    %71 = tpu.concatenate %70, %69 in 1 : vector<1x15x16x64xf32>, vector<1x1x16x64xf32> -> vector<1x16x16x64xf32>
    %cst_32 = arith.constant 0.000000e+00 : f32
    %72 = vector.broadcast %cst_32 : f32 to vector<1x1x16x64xf32>
    %73 = vector.extract_strided_slice %44 {offsets = [0, 1, 0, 0], sizes = [1, 15, 16, 64], strides = [1, 1, 1, 1]} : vector<1x16x16x64xf32> to vector<1x15x16x64xf32>
    %74 = tpu.concatenate %73, %72 in 1 : vector<1x15x16x64xf32>, vector<1x1x16x64xf32> -> vector<1x16x16x64xf32>
    %cst_33 = arith.constant 0.000000e+00 : f32
    %75 = vector.broadcast %cst_33 : f32 to vector<1x1x16x64xf32>
    %76 = vector.extract_strided_slice %50 {offsets = [0, 1, 0, 0], sizes = [1, 15, 16, 64], strides = [1, 1, 1, 1]} : vector<1x16x16x64xf32> to vector<1x15x16x64xf32>
    %77 = tpu.concatenate %76, %75 in 1 : vector<1x15x16x64xf32>, vector<1x1x16x64xf32> -> vector<1x16x16x64xf32>
    %78 = tpu.concatenate %71, %74, %77 in 3 : vector<1x16x16x64xf32>, vector<1x16x16x64xf32>, vector<1x16x16x64xf32> -> vector<1x16x16x192xf32>
    %79 = vector.shape_cast %78 : vector<1x16x16x192xf32> to vector<256x192xf32>
    %c384_34 = arith.constant 384 : index
    %c0_35 = arith.constant 0 : index
    %80 = vector.load %arg4[%c384_34, %c0_35] : memref<576x64xf32, #tpu.memory_space<vmem>>, vector<192x64xf32>
    %cst_36 = arith.constant dense<0.000000e+00> : vector<256x64xf32>
    %81 = tpu.matmul %79, %80, %cst_36 {dimension_numbers = #tpu.dot_dimension_numbers<[1], [0], [0], [1], [0, 0, 1, 1], [], []>} : vector<256x192xf32>, vector<192x64xf32>, vector<256x64xf32> -> vector<256x64xf32>
    %82 = arith.addf %68, %81 : vector<256x64xf32>
    %c0_37 = arith.constant 0 : index
    %c0_38 = arith.constant 0 : index
    %83 = vector.load %arg5[%c0_37, %c0_38] : memref<1x64xf32, #tpu.memory_space<vmem>>, vector<1x64xf32>
    %84 = vector.broadcast %83 : vector<1x64xf32> to vector<256x64xf32>
    %85 = arith.addf %82, %84 : vector<256x64xf32>
    %cst_39 = arith.constant 0.000000e+00 : f32
    %86 = vector.broadcast %cst_39 : f32 to vector<256x64xf32>
    %87 = arith.cmpf ogt, %85, %86 : vector<256x64xf32>
    %cst_40 = arith.constant 0.00999999977 : f32
    %88 = vector.broadcast %cst_40 : f32 to vector<256x64xf32>
    %89 = arith.mulf %88, %85 : vector<256x64xf32>
    %90 = arith.select %87, %85, %89 : vector<256x64xi1>, vector<256x64xf32>
    %91 = vector.shape_cast %90 : vector<256x64xf32> to vector<1x16x16x64xf32>
    %c0_41 = arith.constant 0 : index
    %c0_42 = arith.constant 0 : index
    %c0_43 = arith.constant 0 : index
    %c0_44 = arith.constant 0 : index
    %92 = vector.load %arg6[%c0_41, %c0_42, %c0_43, %c0_44] : memref<1x16x16x64xf32, #tpu.memory_space<vmem>>, vector<1x16x16x64xf32>
    tpu.vector_store %arg6[%c0_41, %c0_42, %c0_43, %c0_44], %91 {strides = array<i32>} : memref<1x16x16x64xf32, #tpu.memory_space<vmem>>, vector<1x16x16x64xf32>,
    return
  }
  func.func @transform_0(%arg0: i32) -> (i32, i32, i32, i32) {
    %c0_i32 = arith.constant 0 : i32
    %c0_i32_0 = arith.constant 0 : i32
    %c0_i32_1 = arith.constant 0 : i32
    %c0_i32_2 = arith.constant 0 : i32
    return %arg0, %c0_i32, %c0_i32_0, %c0_i32_1 : i32, i32, i32, i32
  }
  func.func @transform_1(%arg0: i32) -> (i32, i32) {
    %c0_i32 = arith.constant 0 : i32
    %c0_i32_0 = arith.constant 0 : i32
    %c0_i32_1 = arith.constant 0 : i32
    return %c0_i32, %c0_i32_0 : i32, i32
  }
  func.func @transform_2(%arg0: i32) -> (i32, i32) {
    %c0_i32 = arith.constant 0 : i32
    %c0_i32_0 = arith.constant 0 : i32
    %c0_i32_1 = arith.constant 0 : i32
    return %c0_i32, %c0_i32_0 : i32, i32
  }
  func.func @transform_3(%arg0: i32) -> (i32, i32) {
    %c0_i32 = arith.constant 0 : i32
    %c0_i32_0 = arith.constant 0 : i32
    %c0_i32_1 = arith.constant 0 : i32
    return %c0_i32, %c0_i32_0 : i32, i32
  }
  func.func @transform_4(%arg0: i32) -> (i32, i32) {
    %c0_i32 = arith.constant 0 : i32
    %c0_i32_0 = arith.constant 0 : i32
    %c0_i32_1 = arith.constant 0 : i32
    return %c0_i32, %c0_i32_0 : i32, i32
  }
  func.func @transform_5(%arg0: i32) -> (i32, i32, i32, i32) {
    %c0_i32 = arith.constant 0 : i32
    %c0_i32_0 = arith.constant 0 : i32
    %c0_i32_1 = arith.constant 0 : i32
    %c0_i32_2 = arith.constant 0 : i32
    return %arg0, %c0_i32, %c0_i32_0, %c0_i32_1 : i32, i32, i32, i32
  }
}

</mosaic_0001>

<bundles_post_ra>
// kernel: tpu_custom_call.1
= control target key start
LH: loop header
LB: loop body
LE: loop exit
PB: predicated region body
PF: predicated region fallthrough
CT: control target
= control target key end

     0   :  { %10 = vsyncpa [#allocation3], 0  ;;  %s6267_s0 = inlined_call_operand.vmem [shape: f32[2,16,16,64], index: 0, kind: input, shape index: {}]   ;;  %s6268_s1 = inlined_call_operand.vmem [shape: f32[576,64], index: 1, kind: input, shape index: {}]   ;;  %s6269_s2 = inlined_call_operand.vmem [shape: f32[1,64], index: 2, kind: input, shape index: {}]   ;;  %s6270_s3 = inlined_call_operand.vmem [shape: f32[576,64], index: 3, kind: input, shape index: {}]   ;;  %s6271_s4 = inlined_call_operand.vmem [shape: f32[1,64], index: 4, kind: input, shape index: {}]   ;;  %s6272_s5 = inlined_call_operand.hbm [shape: f32[2,16,16,64], index: 5, kind: output, shape index: {}]  }
   0x1   :  { %12 = vsyncpa [#allocation3 + $0x1], 0  ;;  %s3325_s18 = smov 0   ;;  %s3327_s19 = smov 0  }
   0x2   :  { %s3329_s20 = smov 0   ;;  %s3331_s21 = smov 0  }
   0x3 LB: > { %s3346_s22 = sadd.s32 4294967295, %s3288_s21   ;;  %s2969_s23 = sadd.s32 4294967294, %s3288_s21   ;;  %s3288_s21 = sphi %s3331_s21, %s6510_s21   ;;  %s3284_s20 = sphi %s3329_s20, %s6509_s20   ;;  %s3280_s19 = sphi %s3327_s19, %s6508_s19   ;;  %s3276_s18 = sphi %s3325_s18, %s6507_s18  }
   0x4   : > { %s3350_s24 = sadd.s32 1, %s3288_s21   ;;  %s135_s25 = sadd.s32 1, %s3284_s20 }
   0x5   : > { %s132_s26 = ssub.s32 %s3288_s21, %s3350_s24  ;;  %p145_p0 = scmp.ne.s32.totalorder %s3284_s20, %s3280_s19 }
   0x6   : > { %p133_p1 = scmp.eq.s32.totalorder %s132_s26, 0  ;;  %p146_p2 = scmp.eq.s32.totalorder %s3346_s22, 1 }
   0x7   : > { %p151_p3 = scmp.ne.s32.totalorder %s3280_s19, %s3276_s18  ;;  %p152_p4 = scmp.eq.s32.totalorder %s2969_s23, 1 }
   0x8   : > { %s3361_s27 = scalar_select %p133_p1, %s3284_s20, %s135_s25  }
   0x9   : > { %p3363_p5 = por %p146_p2, %p145_p0  ;;  %p3367_p6 = por %p152_p4, %p151_p3 }
   0xa   : > { %p2972_p7 = scmp.ge.s32.totalorder %s3288_s21, 1  ;;  %p190_p8 = scmp.lt.s32.totalorder %s3288_s21, 3 }
   0xc   : > { %p191_p9 = pnand %p2972_p7, %p190_p8 }
   0xe   : > { %194 = sbr.rel (%p191_p9) target bundleno = 1052 (0x41c), region = 40 }
  0x13   : > { %p218_p10 = scmp.lt.s32.totalorder %s3346_s22, 1  ;;  %v638_v0 = vld [vmem:[%s6268_s1 + $0x138] sm:$0xff]  ;;  %v6296_v1 = vmov 0.0   ;;  %v637_v2 = vld [vmem:[%s6268_s1 + $0x130] sm:$0xff]  ;;  %v636_v3 = vld [vmem:[%s6268_s1 + $0x128] sm:$0xff]  ;;  %s3291_s23 = smov 64  }
  0x14   : > { %727 = vmatprep.subr.mxu0 %v6296_v1  ;;  %954 = vmatprep.subr.mxu1 %v6296_v1  ;;  %v635_v6 = vld [vmem:[%s6268_s1 + $0x120] sm:$0xff]  ;;  %v634_v9 = vld [vmem:[%s6268_s1 + $0x118] sm:$0xff]  ;;  %v633_v10 = vld [vmem:[%s6268_s1 + $0x110] sm:$0xff]  ;;  %vm384_vm0 = vcmask 1046528   ;;  %vm559_vm1 = vcmask 523264   ;;  %vm287_vm2 = vcmask 1040384  }
  0x15   : > { %s219_s9 = scalar_select %p218_p10, %s3346_s22, 1  ;;  %728 = vmatpush1.msra.mxu0 %v638_v0  ;;  %1018 = vmatprep.mubr.f32.mxu1 %v6296_v1  ;;  %v632_v13 = vld [vmem:[%s6268_s1 + $0x108] sm:$0xff]  ;;  %v631_v18 = vld [vmem:[%s6268_s1 + $0x100] sm:$0xff]  ;;  %v630_v22 = vld [vmem:[%s6268_s1 + $0xf8] sm:$0xff] }
  0x16   : > { %729 = vmatprep.subr.mxu0 %v6296_v1  ;;  %v629_v35 = vld [vmem:[%s6268_s1 + $0xf0] sm:$0xff]  ;;  %v606_v46 = vld [vmem:[%s6268_s1 + $0x78] sm:$0xff]  ;;  %v628_v48 = vld [vmem:[%s6268_s1 + $0xe8] sm:$0xff]  ;;  %s215_s17 = sand.u32 1, %s3280_s19   ;;  %s3184_s7 = sshll.u32 %s3346_s22, 12 }
  0x17   : > { %s3183_s12 = sshll.u32 %s219_s9, 8  ;;  %730 = vmatpush1.msra.mxu0 %v637_v2  ;;  %955 = vmatpush1.msra.mxu1 %v606_v46  ;;  %v605_v49 = vld [vmem:[%s6268_s1 + $0x70] sm:$0xff]  ;;  %v627_v54 = vld [vmem:[%s6268_s1 + $0xe0] sm:$0xff]  ;;  %v604_v55 = vld [vmem:[%s6268_s1 + $0x68] sm:$0xff]  ;;  %s2973_s30 = sshll.u32 %s215_s17, 8 }
  0x18   : > { %s3391_s15 = scalar_lea.vmem %s6267_s0, %s3183_s12  ;;  %731 = vmatprep.subr.mxu0 %v6296_v1  ;;  %956 = vmatprep.subr.mxu1 %v6296_v1  ;;  %v626_v62 = vld [vmem:[%s6268_s1 + $0xd8] sm:$0xff]  ;;  %v603_v63 = vld [vmem:[%s6268_s1 + $0x60] sm:$0xff]  ;;  %vm4251_vm3 = vmneg %vm559_vm1  ;;  %s6090_s6 = scalar_lea.vmem [#allocation2], %s2973_s30 }
  0x19   : > { %v3395_v4 = vld [vmem:[%s3391_s15] sm:$0xff]  ;;  %v3398_v5 = vld [vmem:[%s3391_s15 + $0x10] sm:$0xff]  ;;  %732 = vmatpush1.msra.mxu0 %v636_v3  ;;  %v3408_v7 = vld [vmem:[%s3391_s15 + $0x8] sm:$0xff]  ;;  %957 = vmatpush1.msra.mxu1 %v605_v49  ;;  %s6219_s9 = scalar_lea.hbm %s6272_s5, %s3184_s7  ;;  %s6227_s22 = scalar_lea.sflag [#allocation3], %s215_s17 }
  0x1a   : > { %468 = vrot.lane.b32.xlu0 %v3395_v4, %s3291_s23  ;;  %472 = vrot.lane.b32.xlu1 %v3398_v5, %s3291_s23  ;;  %v3411_v8 = vld [vmem:[%s3391_s15 + $0x18] sm:$0xff]  ;;  %v3426_v11 = vld [vmem:[%s3391_s15 + $0x20] sm:$0xff]  ;;  %v385_v16 = vrot.slane %v3395_v4, 1  ;;  %v6292_v17 = vrot.slane %v3408_v7, 1  ;;  %v289_v19 = vrot.slane %v3408_v7, 7  ;;  %v388_v20 = vrot.slane %v3398_v5, 1 }
  0x1b   : > { %733 = vmatprep.subr.mxu0 %v6296_v1  ;;  %v3429_v12 = vld [vmem:[%s3391_s15 + $0x28] sm:$0xff]  ;;  %v3440_v14 = vld [vmem:[%s3391_s15 + $0x30] sm:$0xff]  ;;  %v3443_v15 = vld [vmem:[%s3391_s15 + $0x38] sm:$0xff]  ;;  %v6288_v21 = vrot.slane %v3411_v8, 1  ;;  %v6294_v23 = vrot.slane %v3395_v4, 7  ;;  %v391_v24 = vrot.slane %v3426_v11, 1  ;;  %958 = vmatprep.subr.mxu1 %v6296_v1 }
  0x1c   : > { %734 = vmatpush1.msra.mxu0 %v635_v6  ;;  %v292_v25 = vrot.slane %v3411_v8, 7  ;;  %v3466_v26 = vld [vmem:[%s3391_s15 + $0x40] sm:$0xff]  ;;  %v6286_v27 = vrot.slane %v3429_v12, 1  ;;  %v3470_v28 = vld [vmem:[%s3391_s15 + $0x48] sm:$0xff]  ;;  %v6291_v29 = vrot.slane %v3398_v5, 7  ;;  %v295_v30 = vrot.slane %v3429_v12, 7  ;;  %959 = vmatpush1.msra.mxu1 %v604_v55 }
  0x1d   : > { %735 = vmatprep.subr.mxu0 %v6296_v1  ;;  %v3478_v31 = vsel %vm384_vm0, %v385_v16, %v6292_v17  ;;  %v394_v32 = vrot.slane %v3440_v14, 1  ;;  %v298_v33 = vrot.slane %v3443_v15, 7  ;;  %v6282_v34 = vrot.slane %v3443_v15, 1  ;;  %v3507_v42 = vld [vmem:[%s3391_s15 + $0x50] sm:$0xff]  ;;  %v3510_v43 = vld [vmem:[%s3391_s15 + $0x58] sm:$0xff]  ;;  %v3567_v57 = vld [vmem:[%s3391_s15 + $0x60] sm:$0xff]  ;;  %960 = vmatprep.subr.mxu1 %v6296_v1 }
  0x1e   : > { %470 = vrot.lane.b32.xlu0 %v3408_v7, %s3291_s23  ;;  %474 = vrot.lane.b32.xlu1 %v3411_v8, %s3291_s23  ;;  %v3491_v36 = vsel %vm287_vm2, %v6294_v23, %v289_v19  ;;  %v6287_v37 = vrot.slane %v3426_v11, 7  ;;  %v397_v38 = vrot.slane %v3466_v26, 1  ;;  %v6280_v39 = vrot.slane %v3470_v28, 1  ;;  %v3570_v58 = vld [vmem:[%s3391_s15 + $0x68] sm:$0xff]  ;;  %v3592_v0 = vld [vmem:[%s3391_s15 + $0x70] sm:$0xff]  ;;  %s3292_s11 = smov [#allocation2]  }
  0x1f   : > { %736 = vmatpush1.msra.mxu0 %v634_v9  ;;  %2976 = vmatprep.mubr.msk.f32.mxu0 %vm559_vm1, %v3478_v31  ;;  %v3503_v40 = vsel %vm384_vm0, %v388_v20, %v6288_v21  ;;  %v6283_v41 = vrot.slane %v3440_v14, 7  ;;  %v3516_v44 = vsel %vm287_vm2, %v6291_v29, %v292_v25  ;;  %v3521_v45 = vsel %vm384_vm0, %v391_v24, %v6286_v27  ;;  %v3595_v2 = vld [vmem:[%s3391_s15 + $0x78] sm:$0xff]  ;;  %v625_v6 = vld [vmem:[%s6268_s1 + $0xd0] sm:$0xff]  ;;  %v624_v16 = vld [vmem:[%s6268_s1 + $0xc8] sm:$0xff]  ;;  %s3232_s12 = sshll.u32 %s3292_s11, 4  ;;  %s3233_s12 = int_to_ptr.vmem [resolvable:$false] %s3232_s12 }
  0x20   : > { %737 = vmatprep.subr.mxu0 %v6296_v1  ;;  %v301_v47 = vrot.slane %v3470_v28, 7  ;;  %v3536_v50 = vsel %vm287_vm2, %v6287_v37, %v295_v30  ;;  %v3543_v51 = vsel %vm384_vm0, %v394_v32, %v6282_v34  ;;  %v6281_v53 = vrot.slane %v3466_v26, 7  ;;  %961 = vmatpush1.msra.mxu1 %v603_v63  ;;  %v602_v9 = vld [vmem:[%s6268_s1 + $0x58] sm:$0xff]  ;;  %v3625_v19 = vld [vmem:[%s3391_s15 + $0x80] sm:$0xff]  ;;  %v3628_v20 = vld [vmem:[%s3391_s15 + $0x88] sm:$0xff]  ;;  %s3234_s13 = scalar_lea.vmem %s3233_s12, 8192 }
  0x21   : > { %738 = vmatpush1.msra.mxu0 %v633_v10  ;;  %v3548_v52 = vsel %vm287_vm2, %v6283_v41, %v298_v33  ;;  %v3564_v56 = vsel %vm384_vm0, %v397_v38, %v6280_v39  ;;  %v400_v59 = vrot.slane %v3507_v42, 1  ;;  %v6277_v60 = vrot.slane %v3510_v43, 1  ;;  %962 = vmatprep.subr.mxu1 %v6296_v1  ;;  %v623_v30 = vld [vmem:[%s6268_s1 + $0xc0] sm:$0xff]  ;;  %v600_v32 = vld [vmem:[%s6268_s1 + $0x48] sm:$0xff]  ;;  %v3650_v33 = vld [vmem:[%s3391_s15 + $0x90] sm:$0xff] }
  0x22   : > { %476 = vrot.lane.b32.xlu0 %v3426_v11, %s3291_s23  ;;  %478 = vrot.lane.b32.xlu1 %v3429_v12, %s3291_s23  ;;  %v3579_v61 = vsel %vm287_vm2, %v6281_v53, %v301_v47  ;;  %v304_v3 = vrot.slane %v3510_v43, 7  ;;  %v6274_v24 = vrot.slane %v3570_v58, 1  ;;  %v307_v38 = vrot.slane %v3570_v58, 7  ;;  %v646_v46 = vld [vmem:[%s6268_s1 + $0x178] sm:$0xff]  ;;  %v599_v47 = vld [vmem:[%s6268_s1 + $0x40] sm:$0xff] }
  0x23   : > { %739 = vmatprep.subr.mxu0 %v6296_v1  ;;  %v3609_v10 = vsel %vm384_vm0, %v400_v59, %v6277_v60  ;;  %963 = vmatpush1.msra.mxu1 %v602_v9  ;;  %v6275_v49 = vrot.slane %v3567_v57, 7  ;;  %v598_v55 = vld [vmem:[%s6268_s1 + $0x38] sm:$0xff]  ;;  %v3683_v59 = vld [vmem:[%s3391_s15 + $0xa0] sm:$0xff]  ;;  %v406_v63 = vrot.slane %v3592_v0, 1  ;;  %v644_v9 = vld [vmem:[%s6268_s1 + $0x168] sm:$0xff] }
  0x24   : > { %740 = vmatpush1.msra.mxu0 %v632_v13  ;;  %v6278_v13 = vrot.slane %v3507_v42, 7  ;;  %964 = vmatprep.subr.mxu1 %v6296_v1  ;;  %v3801_v39 = vld [vmem:[%s3391_s15 + $0xe0] sm:$0xff]  ;;  %v3805_v53 = vld [vmem:[%s3391_s15 + $0xe8] sm:$0xff] }
  0x25   : > { %741 = vmatprep.subr.mxu0 %v6296_v1  ;;  %6375 = vst [vmem:[#allocation8_spill] sm:$0xff] %v3805_v53  ;;  %v591_v41 = vld [vmem:[%s6268_s1] sm:$0xff]  ;;  %v608_v29 = vld [vmem:[%s6268_s1 + $0x88] sm:$0xff] }
  0x26   : > { %480 = vrot.lane.b32.xlu0 %v3440_v14, %s3291_s23  ;;  %482 = vrot.lane.b32.xlu1 %v3443_v15, %s3291_s23  ;;  %v3637_v25 = vsel %vm287_vm2, %v6278_v13, %v304_v3  ;;  %v6273_v3 = vrot.slane %v3595_v2, 1  ;;  %v412_v13 = vrot.slane %v3650_v33, 1  ;;  %v607_v17 = vld [vmem:[%s6268_s1 + $0x80] sm:$0xff] }
  0x27   : > { %742 = vmatpush1.msra.mxu0 %v631_v18  ;;  %v601_v18 = vld [vmem:[%s6268_s1 + $0x50] sm:$0xff] }
  0x28   : > { %743 = vmatprep.subr.mxu0 %v6296_v1  ;;  %965 = vmatpush1.msra.mxu1 %v601_v18  ;;  %v3708_v18 = vld [vmem:[%s3391_s15 + $0xb0] sm:$0xff] }
  0x29   : > { %744 = vmatpush1.msra.mxu0 %v630_v22  ;;  %v403_v22 = vrot.slane %v3567_v57, 1  ;;  %966 = vmatprep.subr.mxu1 %v6296_v1 }
  0x2a   : > { %484 = vrot.lane.b32.xlu0 %v3466_v26, %s3291_s23  ;;  %486 = vrot.lane.b32.xlu1 %v3470_v28, %s3291_s23 }
  0x2b   : > { %745 = vmatprep.subr.mxu0 %v6296_v1  ;;  %967 = vmatpush1.msra.mxu1 %v600_v32  ;;  %v643_v32 = vld [vmem:[%s6268_s1 + $0x160] sm:$0xff] }
  0x2c   : > { %746 = vmatpush1.msra.mxu0 %v629_v35  ;;  %v3653_v35 = vld [vmem:[%s3391_s15 + $0x98] sm:$0xff]  ;;  %968 = vmatprep.subr.mxu1 %v6296_v1 }
  0x2d   : > { %747 = vmatprep.subr.mxu0 %v6296_v1  ;;  %969 = vmatpush1.msra.mxu1 %v599_v47  ;;  %v6276_v47 = vrot.slane %v3592_v0, 7 }
  0x2e   : > { %488 = vrot.lane.b32.xlu0 %v3507_v42, %s3291_s23  ;;  %490 = vrot.lane.b32.xlu1 %v3510_v43, %s3291_s23 }
  0x2f   : > { %748 = vmatpush1.msra.mxu0 %v628_v48  ;;  %v3667_v48 = vsel %vm384_vm0, %v403_v22, %v6274_v24  ;;  %970 = vmatprep.subr.mxu1 %v6296_v1  ;;  %v3711_v22 = vld [vmem:[%s3391_s15 + $0xb8] sm:$0xff] }
  0x30   : > { %749 = vmatprep.subr.mxu0 %v6296_v1  ;;  %971 = vmatpush1.msra.mxu1 %v598_v55  ;;  %6372 = vst [vmem:[#allocation5_spill] sm:$0xff] %v3711_v22  ;;  %v595_v55 = vld [vmem:[%s6268_s1 + $0x20] sm:$0xff] }
  0x31   : > { %750 = vmatpush1.msra.mxu0 %v627_v54  ;;  %v645_v54 = vld [vmem:[%s6268_s1 + $0x170] sm:$0xff]  ;;  %972 = vmatprep.subr.mxu1 %v6296_v1 }
  0x32   : > { %492 = vrot.lane.b32.xlu0 %v3567_v57, %s3291_s23  ;;  %494 = vrot.lane.b32.xlu1 %v3570_v58, %s3291_s23 }
  0x33   : > { %751 = vmatprep.subr.mxu0 %v6296_v1 }
  0x34   : > { %752 = vmatpush1.msra.mxu0 %v626_v62  ;;  %v3686_v62 = vld [vmem:[%s3391_s15 + $0xa8] sm:$0xff] }
  0x35   : > { %753 = vmatprep.subr.mxu0 %v6296_v1  ;;  %v6290_v27 = vrot.slane %v3686_v62, 1 }
  0x36   : > { %496 = vrot.lane.b32.xlu0 %v3592_v0, %s3291_s23  ;;  %498 = vrot.lane.b32.xlu1 %v3595_v2, %s3291_s23 }
  0x37   : > { %754 = vmatpush1.msra.mxu0 %v625_v6  ;;  %v3695_v6 = vsel %vm287_vm2, %v6275_v49, %v307_v38  ;;  %v596_v38 = vld [vmem:[%s6268_s1 + $0x28] sm:$0xff]  ;;  %v641_v49 = vld [vmem:[%s6268_s1 + $0x150] sm:$0xff] }
  0x38   : > { %755 = vmatprep.subr.mxu0 %v6296_v1 }
  0x39   : > { %756 = vmatpush1.msra.mxu0 %v624_v16  ;;  %v597_v16 = vld [vmem:[%s6268_s1 + $0x30] sm:$0xff] }
  0x3a   : > { %500 = vrot.lane.b32.xlu0 %v3625_v19, %s3291_s23  ;;  %502 = vrot.lane.b32.xlu1 %v3628_v20, %s3291_s23 }
  0x3b   : > { %757 = vmatprep.subr.mxu0 %v6296_v1  ;;  %973 = vmatpush1.msra.mxu1 %v597_v16  ;;  %v409_v16 = vrot.slane %v3625_v19, 1 }
  0x3c   : > { %758 = vmatpush1.msra.mxu0 %v623_v30  ;;  %v310_v30 = vrot.slane %v3595_v2, 7  ;;  %974 = vmatprep.subr.mxu1 %v6296_v1 }
  0x3d   : > { %775 = vmatprep.subr.mxu0 %v6296_v1  ;;  %975 = vmatpush1.msra.mxu1 %v596_v38  ;;  %v3766_v38 = vld [vmem:[%s3391_s15 + $0xd0] sm:$0xff] }
  0x3e   : > { %504 = vrot.lane.b32.xlu0 %v3650_v33, %s3291_s23  ;;  %506 = vrot.lane.b32.xlu1 %v3653_v35, %s3291_s23  ;;  %v3753_v24 = vsel %vm287_vm2, %v6276_v47, %v310_v30  ;;  %v3769_v30 = vld [vmem:[%s3391_s15 + $0xd8] sm:$0xff]  ;;  %v593_v47 = vld [vmem:[%s6268_s1 + $0x10] sm:$0xff] }
  0x3f   : > { %776 = vmatpush2.msra.mxu0 %v646_v46  ;;  %v3725_v46 = vsel %vm384_vm0, %v406_v63, %v6273_v3  ;;  %v3741_v63 = vld [vmem:[%s3391_s15 + $0xc0] sm:$0xff]  ;;  %v6279_v3 = vrot.slane %v3628_v20, 1  ;;  %976 = vmatprep.subr.mxu1 %v6296_v1  ;;  %6374 = vst [vmem:[#allocation7_spill] sm:$0xff] %v3769_v30 }
  0x40   : > { %777 = vmatprep.subr.mxu0 %v6296_v1  ;;  %977 = vmatpush1.msra.mxu1 %v595_v55  ;;  %v640_v55 = vld [vmem:[%s6268_s1 + $0x148] sm:$0xff] }
  0x41   : > { %778 = vmatpush2.msra.mxu0 %v645_v54  ;;  %v642_v54 = vld [vmem:[%s6268_s1 + $0x158] sm:$0xff]  ;;  %978 = vmatprep.subr.mxu1 %v6296_v1  ;;  %v3783_v60 = vsel %vm384_vm0, %v409_v16, %v6279_v3  ;;  %v639_v16 = vld [vmem:[%s6268_s1 + $0x140] sm:$0xff]  ;;  %v592_v3 = vld [vmem:[%s6268_s1 + $0x8] sm:$0xff] }
  0x42   : > { %508 = vrot.lane.b32.xlu0 %v3683_v59, %s3291_s23  ;;  %510 = vrot.lane.b32.xlu1 %v3686_v62, %s3291_s23 }
  0x43   : > { %779 = vmatprep.subr.mxu0 %v6296_v1 }
  0x44   : > { %780 = vmatpush2.msra.mxu0 %v644_v9  ;;  %v3744_v9 = vld [vmem:[%s3391_s15 + $0xc8] sm:$0xff] }
  0x45   : > { %781 = vmatprep.subr.mxu0 %v6296_v1  ;;  %6373 = vst [vmem:[#allocation6_spill] sm:$0xff] %v3744_v9  ;;  %v6300_v23 = vrot.slane %v3744_v9, 1 }
  0x46   : > { %512 = vrot.lane.b32.xlu0 %v3708_v18, %s3291_s23  ;;  %514 = vrot.lane.b32.xlu1 %v3711_v22, %s3291_s23 }
  0x47   : > { %782 = vmatpush2.msra.mxu0 %v643_v32  ;;  %v594_v32 = vld [vmem:[%s6268_s1 + $0x18] sm:$0xff] }
  0x48   : > { %783 = vmatprep.subr.mxu0 %v6296_v1  ;;  %979 = vmatpush1.msra.mxu1 %v594_v32  ;;  %v6284_v32 = vrot.slane %v3653_v35, 1 }
  0x49   : > { %784 = vmatpush2.msra.mxu0 %v642_v54  ;;  %v313_v54 = vrot.slane %v3628_v20, 7  ;;  %980 = vmatprep.subr.mxu1 %v6296_v1 }
  0x4a   : > { %516 = vrot.lane.b32.xlu0 %v3741_v63, %s3291_s23  ;;  %518 = vrot.lane.b32.xlu1 %v3744_v9, %s3291_s23 }
  0x4b   : > { %785 = vmatprep.subr.mxu0 %v6296_v1  ;;  %981 = vmatpush1.msra.mxu1 %v593_v47  ;;  %v3822_v47 = vsel %vm384_vm0, %v412_v13, %v6284_v32  ;;  %v613_v13 = vld [vmem:[%s6268_s1 + $0xb0] sm:$0xff]  ;;  %v6289_v32 = vrot.slane %v3650_v33, 7 }
  0x4c   : > { %786 = vmatpush2.msra.mxu0 %v641_v49  ;;  %v6285_v49 = vrot.slane %v3625_v19, 7  ;;  %982 = vmatprep.subr.mxu1 %v6296_v1 }
  0x4d   : > { %787 = vmatprep.subr.mxu0 %v6296_v1  ;;  %983 = vmatpush1.msra.mxu1 %v592_v3  ;;  %v614_v3 = vld [vmem:[%s6268_s1 + $0xb8] sm:$0xff] }
  0x4e   : > { %520 = vrot.lane.b32.xlu0 %v3766_v38, %s3291_s23  ;;  %522 = vrot.lane.b32.xlu1 %v3769_v30, %s3291_s23  ;;  %v3811_v34 = vsel %vm287_vm2, %v6285_v49, %v313_v54  ;;  %v316_v54 = vrot.slane %v3653_v35, 7  ;;  %v415_v49 = vrot.slane %v3683_v59, 1 }
  0x4f   : > { %788 = vmatpush2.msra.mxu0 %v640_v55  ;;  %v3825_v55 = vld [vmem:[%s3391_s15 + $0xf0] sm:$0xff]  ;;  %984 = vmatprep.subr.mxu1 %v6296_v1 }
  0x50   : > { %789 = vmatprep.subr.mxu0 %v6296_v1  ;;  %6376 = vst [vmem:[#allocation9_spill] sm:$0xff] %v3825_v55  ;;  %985 = vmatpush1.msra.mxu1 %v591_v41  ;;  %v612_v41 = vld [vmem:[%s6268_s1 + $0xa8] sm:$0xff]  ;;  %v3855_v37 = vsel %vm287_vm2, %v6289_v32, %v316_v54  ;;  %v3866_v21 = vsel %vm384_vm0, %v415_v49, %v6290_v27  ;;  %v610_v54 = vld [vmem:[%s6268_s1 + $0x98] sm:$0xff]  ;;  %v6293_v32 = vrot.slane %v3683_v59, 7  ;;  %v418_v49 = vrot.slane %v3708_v18, 1 }
  0x51   : > { %790 = vmatpush2.msra.mxu0 %v639_v16  ;;  %v3835_v16 = vld [vmem:[%s3391_s15 + $0xf8] sm:$0xff]  ;;  %1002 = vmatprep.subr.mxu1 %v6296_v1  ;;  %v6295_v27 = vrot.slane %v3711_v22, 1 }
  0x52   : > { %524 = vrot.lane.b32.xlu0 %v3801_v39, %s3291_s23  ;;  %1203 = vmatprep.subr.mxu0 %v6296_v1  ;;  %6377 = vst [vmem:[#allocation10_spill] sm:$0xff] %v3835_v16 }
  0x53   : > { %526 = vrot.lane.b32.xlu1 %v3805_v53, %s3291_s23  ;;  %1003 = vmatpush2.msra.mxu1 %v614_v3  ;;  %v611_v3 = vld [vmem:[%s6268_s1 + $0xa0] sm:$0xff] }
  0x54   : > { %1004 = vmatprep.subr.mxu1 %v6296_v1 }
  0x55   : > { %1005 = vmatpush2.msra.mxu1 %v613_v13  ;;  %v319_v13 = vrot.slane %v3686_v62, 7 }
  0x56   : > { %615 = vrot.lane.b32.xlu0 %v3825_v55, %s3291_s23  ;;  %1006 = vmatprep.subr.mxu1 %v6296_v1 }
  0x57   : > { %617 = vrot.lane.b32.xlu1 %v3835_v16, %s3291_s23  ;;  %1007 = vmatpush2.msra.mxu1 %v612_v41  ;;  %v609_v41 = vld [vmem:[%s6268_s1 + $0x90] sm:$0xff] }
  0x58   : > { %1008 = vmatprep.subr.mxu1 %v6296_v1 }
  0x59   : > { %1009 = vmatpush2.msra.mxu1 %v611_v3  ;;  %v3887_v3 = vsel %vm287_vm2, %v6293_v32, %v319_v13  ;;  %v6301_v13 = vrot.slane %v3708_v18, 7  ;;  %v421_v32 = vrot.slane %v3741_v63, 1 }
  0x5a   : > { %466 = vrot.lane.b32.xlu0 %v6296_v1, %s3291_s23  ;;  %1010 = vmatprep.subr.mxu1 %v6296_v1 }
  0x5b   : > { %1011 = vmatpush2.msra.mxu1 %v610_v54  ;;  %v3896_v54 = vsel %vm384_vm0, %v418_v49, %v6295_v27  ;;  %v3912_v49 = vsel %vm384_vm0, %v421_v32, %v6300_v23  ;;  %v6305_v27 = vrot.slane %v3741_v63, 7  ;;  %v328_v32 = vrot.slane %v3769_v30, 7 }
  0x5c   : > { %1012 = vmatprep.subr.mxu1 %v6296_v1  ;;  %6378 = vst [vmem:[#allocation11_spill] sm:$0xff] %v3896_v54  ;;  %6379 = vst [vmem:[#allocation12_spill] sm:$0xff] %v3912_v49  ;;  %v6309_v23 = vrot.slane %v3766_v38, 7 }
  0x5d   : > { %1013 = vmatpush2.msra.mxu1 %v609_v41  ;;  %v322_v41 = vrot.slane %v3711_v22, 7  ;;  %v6304_v22 = vrot.slane %v3769_v30, 1  ;;  %v6313_v30 = vrot.slane %v3835_v16, 1 }
  0x5e   : > { %1014 = vmatprep.subr.mxu1 %v6296_v1  ;;  %v3935_v49 = vsel %vm287_vm2, %v6309_v23, %v328_v32 }
  0x5f   : > { %1015 = vmatpush2.msra.mxu1 %v608_v29  ;;  %v3907_v29 = vsel %vm287_vm2, %v6301_v13, %v322_v41  ;;  %v427_v13 = vrot.slane %v3801_v39, 1 }
  0x60   : > { %1016 = vmatprep.subr.mxu1 %v6296_v1 }
  0x61   : > { %1017 = vmatpush2.msra.mxu1 %v607_v17  ;;  %v325_v17 = vrot.slane %v3744_v9, 7  ;;  %v6308_v9 = vrot.slane %v3805_v53, 1 }
  0x62   : > { %1995 = vmatprep.subr.mxu1 %v6296_v1  ;;  %v424_v1 = vrot.slane %v3766_v38, 1 }
  0x63   : > { %v3921_v54 = vsel %vm287_vm2, %v6305_v27, %v325_v17  ;;  %v3940_v17 = vsel %vm384_vm0, %v427_v13, %v6308_v9  ;;  %v430_v27 = vrot.slane %v3825_v55, 1  ;;  %v334_v13 = vrot.slane %v3835_v16, 7 }
  0x64   : > { %v3926_v41 = vsel %vm384_vm0, %v424_v1, %v6304_v22  ;;  %6381 = vst [vmem:[#allocation14_spill] sm:$0xff] %v3940_v17  ;;  %v331_v1 = vrot.slane %v3805_v53, 7  ;;  %v6312_v22 = vrot.slane %v3801_v39, 7  ;;  %v6315_v9 = vrot.slane %v3825_v55, 7  ;;  %v1182_v55 = vld [vmem:[%s6268_s1 + $0x198] sm:$0xff] }
  0x65   : > { %6380 = vst [vmem:[#allocation13_spill] sm:$0xff] %v3926_v41  ;;  %v3954_v32 = vsel %vm384_vm0, %v430_v27, %v6313_v30  ;;  %v6385_v53 = vrot.slane %v3395_v4, 7  ;;  %v6386_v27 = vrot.slane %v3408_v7, 1  ;;  %v1193_v4 = vld [vmem:[%s6268_s1 + $0x1f0] sm:$0xff]  ;;  %v6388_v7 = vrot.slane %v3398_v5, 7 }
  0x66   : > { %v3949_v41 = vsel %vm287_vm2, %v6312_v22, %v331_v1  ;;  %6383 = vst [vmem:[#allocation16_spill] sm:$0xff] %v3954_v32  ;;  %v3961_v23 = vsel %vm287_vm2, %v6315_v9, %v334_v13  ;;  %v1194_v22 = vld [vmem:[%s6268_s1 + $0x1f8] sm:$0xff]  ;;  %v6387_v9 = vmov 0.0  }
  0x67   : > { %6382 = vst [vmem:[#allocation15_spill] sm:$0xff] %v3949_v41  ;;  %6384 = vst [vmem:[#allocation17_spill] sm:$0xff] %v3961_v23  ;;  %v368_v17 = vsel %vm287_vm2, 0.0, %v6385_v53  ;;  %v3972_v30 = vsel %vm384_vm0, %v6386_v27, 0.0  ;;  %v369_v27 = vsel %vm287_vm2, 0.0, %v6388_v7  ;;  %v1186_v32 = vld [vmem:[%s6268_s1 + $0x1b8] sm:$0xff] }
  0x68   : > { %v1202_v41 = vld [vmem:[%s6268_s1 + $0x238] sm:$0xff] }
  0x8c   : > { %v469_v1 = vpop.permute.xlu0 %468  ;;  %v473_v13 = vpop.permute.xlu1 %472 }
  0x8d   : > { %v3975_v16 = vsel %vm559_vm1, %v368_v17, %v469_v1  ;;  %v1192_v17 = vld [vmem:[%s6268_s1 + $0x1e8] sm:$0xff]  ;;  %v4002_v5 = vsel %vm559_vm1, %v369_v27, %v473_v13  ;;  %v1189_v13 = vld [vmem:[%s6268_s1 + $0x1d0] sm:$0xff] }
  0x8e   : > { %792 = vmatmul.mubr.f32.vlgmr.msra.gmra.mxu0 %v3975_v16 }
  0x8f   : > { %1204 = vmatpush1.msra.mxu0 %v1194_v22  ;;  %2977 = vmatprep.mubr.msk.f32.mxu0 %vm559_vm1, %v3972_v30  ;;  %v1191_v22 = vld [vmem:[%s6268_s1 + $0x1e0] sm:$0xff] }
  0x90   : > { %v471_v53 = vpop.permute.xlu0 %470  ;;  %1205 = vmatprep.subr.mxu0 %v6387_v9  ;;  %v475_v23 = vpop.permute.xlu1 %474 }
  0x91   : > { %v3992_v1 = vsel %vm559_vm1, %v3491_v36, %v471_v53  ;;  %1206 = vmatpush1.msra.mxu0 %v1193_v4  ;;  %v6389_v36 = vrot.slane %v3411_v8, 1  ;;  %v1190_v53 = vld [vmem:[%s6268_s1 + $0x1d8] sm:$0xff]  ;;  %v4022_v8 = vsel %vm559_vm1, %v3516_v44, %v475_v23  ;;  %v1187_v23 = vld [vmem:[%s6268_s1 + $0x1c0] sm:$0xff] }
  0x92   : > { %797 = vmatmul.mubr.f32.gmra.mxu0 %v3992_v1  ;;  %1207 = vmatprep.subr.mxu0 %v6387_v9 }
  0x93   : > { %2978 = vmatprep.mubr.msk.f32.mxu0 %vm559_vm1, %v3503_v40  ;;  %1208 = vmatpush1.msra.mxu0 %v1192_v17  ;;  %v4007_v4 = vsel %vm384_vm0, %v6389_v36, 0.0  ;;  %v6390_v17 = vrot.slane %v3426_v11, 7  ;;  %v1188_v36 = vld [vmem:[%s6268_s1 + $0x1c8] sm:$0xff] }
  0x94   : > { %v477_v7 = vpop.permute.xlu0 %476  ;;  %1209 = vmatprep.subr.mxu0 %v6387_v9 }
  0x95   : > { %1210 = vmatpush1.msra.mxu0 %v1191_v22  ;;  %v370_v22 = vsel %vm287_vm2, 0.0, %v6390_v17  ;;  %v6391_v17 = vrot.slane %v3429_v12, 1 }
  0x96   : > { %802 = vmatmul.mubr.f32.gmra.mxu0 %v4002_v5  ;;  %1211 = vmatprep.subr.mxu0 %v6387_v9  ;;  %v4039_v11 = vsel %vm559_vm1, %v370_v22, %v477_v7  ;;  %v1185_v7 = vld [vmem:[%s6268_s1 + $0x1b0] sm:$0xff] }
  0x97   : > { %2979 = vmatprep.mubr.msk.f32.mxu0 %vm559_vm1, %v4007_v4  ;;  %1212 = vmatpush1.msra.mxu0 %v1190_v53  ;;  %v479_v53 = vpop.permute.xlu1 %478 }
  0x98   : > { %v481_v27 = vpop.permute.xlu0 %480  ;;  %1213 = vmatprep.subr.mxu0 %v6387_v9  ;;  %v4059_v12 = vsel %vm559_vm1, %v3536_v50, %v479_v53  ;;  %v1183_v50 = vld [vmem:[%s6268_s1 + $0x1a0] sm:$0xff] }
  0x99   : > { %1214 = vmatpush1.msra.mxu0 %v1189_v13  ;;  %v4044_v13 = vsel %vm384_vm0, %v6391_v17, 0.0  ;;  %v1184_v17 = vld [vmem:[%s6268_s1 + $0x1a8] sm:$0xff] }
  0x9a   : > { %807 = vmatmul.mubr.f32.gmra.mxu0 %v4022_v8  ;;  %1215 = vmatprep.subr.mxu0 %v6387_v9 }
  0x9b   : > { %2980 = vmatprep.mubr.msk.f32.mxu0 %vm559_vm1, %v3521_v45  ;;  %1216 = vmatpush1.msra.mxu0 %v1188_v36  ;;  %v6392_v36 = vrot.slane %v3440_v14, 7  ;;  %v483_v53 = vpop.permute.xlu1 %482 }
  0x9c   : > { %v485_v44 = vpop.permute.xlu0 %484  ;;  %1217 = vmatprep.subr.mxu0 %v6387_v9 }
  0x9d   : > { %1218 = vmatpush1.msra.mxu0 %v1187_v23  ;;  %v371_v23 = vsel %vm287_vm2, 0.0, %v6392_v36 }
  0x9e   : > { %812 = vmatmul.mubr.f32.gmra.mxu0 %v4039_v11  ;;  %1219 = vmatprep.subr.mxu0 %v6387_v9  ;;  %v4076_v14 = vsel %vm559_vm1, %v371_v23, %v481_v27  ;;  %v1181_v27 = vld [vmem:[%s6268_s1 + $0x190] sm:$0xff] }
  0x9f   : > { %2981 = vmatprep.mubr.msk.f32.mxu0 %vm559_vm1, %v4044_v13  ;;  %1220 = vmatpush1.msra.mxu0 %v1186_v32 }
  0xa0   : > { %v489_v22 = vpop.permute.xlu0 %488  ;;  %1221 = vmatprep.subr.mxu0 %v6387_v9 }
  0xa1   : > { %1222 = vmatpush1.msra.mxu0 %v1185_v7  ;;  %v6393_v7 = vrot.slane %v3443_v15, 1  ;;  %v4098_v15 = vsel %vm559_vm1, %v3548_v52, %v483_v53  ;;  %v1179_v52 = vld [vmem:[%s6268_s1 + $0x180] sm:$0xff]  ;;  %v487_v53 = vpop.permute.xlu1 %486 }
  0xa2   : > { %817 = vmatmul.mubr.f32.gmra.mxu0 %v4059_v12  ;;  %1223 = vmatprep.subr.mxu0 %v6387_v9 }
  0xa3   : > { %2982 = vmatprep.mubr.msk.f32.mxu0 %vm559_vm1, %v3543_v51  ;;  %1224 = vmatpush1.msra.mxu0 %v1184_v17  ;;  %v4083_v36 = vsel %vm384_vm0, %v6393_v7, 0.0  ;;  %v6394_v17 = vrot.slane %v3466_v26, 7  ;;  %v1180_v7 = vld [vmem:[%s6268_s1 + $0x188] sm:$0xff] }
  0xa4   : > { %v4078_v32 = vpop.permute.xlu0 %492  ;;  %1225 = vmatprep.subr.mxu0 %v6387_v9 }
  0xa5   : > { %1226 = vmatpush1.msra.mxu0 %v1183_v50  ;;  %v372_v50 = vsel %vm287_vm2, 0.0, %v6394_v17 }
  0xa6   : > { %822 = vmatmul.mubr.f32.gmra.mxu0 %v4076_v14  ;;  %1227 = vmatprep.subr.mxu0 %v6387_v9  ;;  %v4117_v26 = vsel %vm559_vm1, %v372_v50, %v485_v44  ;;  %v1201_v44 = vld [vmem:[%s6268_s1 + $0x230] sm:$0xff] }
  0xa7   : > { %2983 = vmatprep.mubr.msk.f32.mxu0 %vm559_vm1, %v4083_v36  ;;  %1228 = vmatpush1.msra.mxu0 %v1182_v55 }
  0xa8   : > { %v4100_v23 = vpop.permute.xlu0 %496  ;;  %1229 = vmatprep.subr.mxu0 %v6387_v9 }
  0xa9   : > { %1230 = vmatpush1.msra.mxu0 %v1181_v27  ;;  %v6395_v27 = vrot.slane %v3470_v28, 1  ;;  %v4139_v28 = vsel %vm559_vm1, %v3579_v61, %v487_v53  ;;  %v1199_v61 = vld [vmem:[%s6268_s1 + $0x220] sm:$0xff]  ;;  %v491_v53 = vpop.permute.xlu1 %490 }
  0xaa   : > { %827 = vmatmul.mubr.f32.gmra.mxu0 %v4098_v15  ;;  %1231 = vmatprep.subr.mxu0 %v6387_v9  ;;  %6396 = vst [vmem:[#allocation18_spill] sm:$0xff] %v4139_v28 }
  0xab   : > { %2984 = vmatprep.mubr.msk.f32.mxu0 %vm559_vm1, %v3564_v56  ;;  %1232 = vmatpush1.msra.mxu0 %v1180_v7  ;;  %v4124_v17 = vsel %vm384_vm0, %v6395_v27, 0.0  ;;  %v6397_v7 = vrot.slane %v3507_v42, 7  ;;  %v1200_v27 = vld [vmem:[%s6268_s1 + $0x228] sm:$0xff] }
  0xac   : > { %v4119_v55 = vpop.permute.xlu0 %500  ;;  %1233 = vmatprep.subr.mxu0 %v6387_v9 }
  0xad   : > { %1234 = vmatpush1.msra.mxu0 %v1179_v52  ;;  %v373_v52 = vsel %vm287_vm2, 0.0, %v6397_v7 }
  0xae   : > { %832 = vmatmul.mubr.f32.gmra.mxu0 %v4117_v26  ;;  %1251 = vmatprep.subr.mxu0 %v6387_v9  ;;  %v4158_v42 = vsel %vm559_vm1, %v373_v52, %v489_v22  ;;  %v1197_v22 = vld [vmem:[%s6268_s1 + $0x210] sm:$0xff] }
  0xaf   : > { %2985 = vmatprep.mubr.msk.f32.mxu0 %vm559_vm1, %v4124_v17  ;;  %1252 = vmatpush2.msra.mxu0 %v1202_v41 }
  0xb0   : > { %v4141_v50 = vpop.permute.xlu0 %504  ;;  %1253 = vmatprep.subr.mxu0 %v6387_v9 }
  0xb1   : > { %1254 = vmatpush2.msra.mxu0 %v1201_v44  ;;  %v6398_v44 = vrot.slane %v3510_v43, 1  ;;  %v4180_v43 = vsel %vm559_vm1, %v3637_v25, %v491_v53  ;;  %v1195_v25 = vld [vmem:[%s6268_s1 + $0x200] sm:$0xff]  ;;  %v495_v53 = vpop.permute.xlu1 %494 }
  0xb2   : > { %837 = vmatmul.mubr.f32.gmra.mxu0 %v4139_v28  ;;  %1255 = vmatprep.subr.mxu0 %v6387_v9  ;;  %v1198_v28 = vld [vmem:[%s6268_s1 + $0x218] sm:$0xff] }
  0xb3   : > { %2986 = vmatprep.mubr.msk.f32.mxu0 %vm559_vm1, %v3609_v10  ;;  %1256 = vmatpush2.msra.mxu0 %v1200_v27  ;;  %v4165_v7 = vsel %vm384_vm0, %v6398_v44, 0.0  ;;  %v6399_v27 = vrot.slane %v3567_v57, 7  ;;  %v1196_v44 = vld [vmem:[%s6268_s1 + $0x208] sm:$0xff] }
  0xb4   : > { %v4160_v41 = vpop.permute.xlu0 %508  ;;  %1257 = vmatprep.subr.mxu0 %v6387_v9 }
  0xb5   : > { %1258 = vmatpush2.msra.mxu0 %v1199_v61  ;;  %v374_v61 = vsel %vm287_vm2, 0.0, %v6399_v27 }
  0xb6   : > { %842 = vmatmul.mubr.f32.gmra.mxu0 %v4158_v42  ;;  %1259 = vmatprep.subr.mxu0 %v6387_v9  ;;  %v4200_v57 = vsel %vm559_vm1, %v374_v61, %v4078_v32  ;;  %v4216_v32 = vsel %vm559_vm1, %v3695_v6, %v495_v53  ;;  %v6403_v6 = vrot.slane %v3595_v2, 1  ;;  %v6405_v2 = vmov 0 }
  0xb7   : > { %2987 = vmatprep.mubr.msk.f32.mxu0 %vm559_vm1, %v4165_v7  ;;  %1260 = vmatpush2.msra.mxu0 %v1198_v28  ;;  %v6406_v2 = vsel %vm4251_vm3, 4294967295, %v6405_v2 }
  0xb8   : > { %v4182_v52 = vpop.permute.xlu0 %512  ;;  %1261 = vmatprep.subr.mxu0 %v6387_v9  ;;  %v4235_v53 = vsel %vm384_vm0, %v6403_v6, 0.0  ;;  %6407 = vst [vmem:[#allocation20_spill] sm:$0xff] %v6406_v2 }
  0xb9   : > { %1262 = vmatpush2.msra.mxu0 %v1197_v22  ;;  %v6400_v22 = vrot.slane %v3570_v58, 1  ;;  %v6402_v58 = vrot.slane %v3592_v0, 7 }
  0xba   : > { %847 = vmatmul.mubr.f32.gmra.mxu0 %v4180_v43  ;;  %1263 = vmatprep.subr.mxu0 %v6387_v9 }
  0xbb   : > { %2988 = vmatprep.mubr.msk.f32.mxu0 %vm559_vm1, %v3667_v48  ;;  %1264 = vmatpush2.msra.mxu0 %v1196_v44  ;;  %v4207_v27 = vsel %vm384_vm0, %v6400_v22, 0.0  ;;  %v375_v44 = vsel %vm287_vm2, 0.0, %v6402_v58 }
  0xbc   : > { %v4202_v28 = vpop.permute.xlu0 %516  ;;  %6401 = vst [vmem:[#allocation19_spill] sm:$0xff] %v4207_v27  ;;  %1265 = vmatprep.subr.mxu0 %v6387_v9 }
  0xbd   : > { %1266 = vmatpush2.msra.mxu0 %v1195_v25  ;;  %v4228_v25 = vsel %vm559_vm1, %v375_v44, %v4100_v23  ;;  %v6404_v23 = vrot.slane %v3625_v19, 7  ;;  %v6409_v19 = vrot.slane %v3628_v20, 1  ;;  %v6410_v20 = vrot.slane %v3650_v33, 7 }
  0xbe   : > { %852 = vmatmul.mubr.f32.gmra.mxu0 %v4200_v57  ;;  %2220 = vmatprep.subr.mxu0 %v6387_v9  ;;  %v6411_v33 = vrot.slane %v3653_v35, 1 }
  0xbf   : > { %2989 = vmatprep.mubr.msk.f32.mxu0 %vm559_vm1, %v4207_v27  ;;  %v499_v27 = vpop.permute.xlu1 %498  ;;  %v376_v44 = vsel %vm287_vm2, 0.0, %v6404_v23  ;;  %v4266_v23 = vsel %vm384_vm0, %v6409_v19, 0.0 }
  0xc0   : > { %v4218_v61 = vpop.permute.xlu0 %520  ;;  %v4242_v0 = vsel %vm559_vm1, %v3753_v24, %v499_v27  ;;  %v4259_v24 = vsel %vm559_vm1, %v376_v44, %v4119_v55  ;;  %v377_v44 = vsel %vm287_vm2, 0.0, %v6410_v20  ;;  %v4297_v19 = vsel %vm384_vm0, %v6411_v33, 0.0  ;;  %v6415_v20 = vld [vmem:[#allocation11_spill] sm:$0xff] }
  0xc2   : > { %857 = vmatmul.mubr.f32.gmra.mxu0 %v4216_v32 }
  0xc3   : > { %2990 = vmatprep.mubr.msk.f32.mxu0 %vm559_vm1, %v3725_v46  ;;  %v503_v6 = vpop.permute.xlu1 %502 }
  0xc4   : > { %v4230_v22 = vpop.permute.xlu0 %524  ;;  %v4277_v55 = vsel %vm559_vm1, %v3811_v34, %v503_v6  ;;  %v4292_v34 = vsel %vm559_vm1, %v377_v44, %v4141_v50  ;;  %v6412_v50 = vrot.slane %v3683_v59, 7 }
  0xc6   : > { %862 = vmatmul.mubr.f32.gmra.mxu0 %v4228_v25  ;;  %v378_v35 = vsel %vm287_vm2, 0.0, %v6412_v50  ;;  %v6418_v50 = vrot.slane %v3741_v63, 7 }
  0xc7   : > { %2991 = vmatprep.mubr.msk.f32.mxu0 %vm559_vm1, %v4235_v53  ;;  %v507_v6 = vpop.permute.xlu1 %506 }
  0xc8   : > { %v4244_v58 = vpop.permute.xlu0 %615 }
  0xca   : > { %867 = vmatmul.mubr.f32.gmra.mxu0 %v4242_v0 }
  0xcb   : > { %2992 = vmatprep.mubr.msk.f32.mxu0 %vm559_vm1, %v3783_v60 }
  0xcc   : > { %v4261_v27 = vpop.permute.xlu0 %466 }
  0xcd   : > { %6408 = vst [vmem:[#allocation21_spill] sm:$0xff] %v4261_v27  ;;  %3009 = vmatmul.mubr.msk.f32.vlgmr.msra.gmra.mxu1 %vm4251_vm3, %v4261_v27 }
  0xce   : > { %872 = vmatmul.mubr.f32.gmra.mxu0 %v4259_v24  ;;  %1023 = vmatprep.mubr.f32.mxu1 %v6387_v9 }
  0xcf   : > { %2993 = vmatprep.mubr.msk.f32.mxu0 %vm559_vm1, %v4266_v23 }
  0xd1   : > { %3011 = vmatmul.mubr.msk.f32.gmra.mxu1 %vm4251_vm3, %v4261_v27 }
  0xd2   : > { %877 = vmatmul.mubr.f32.gmra.mxu0 %v4277_v55  ;;  %3012 = vmatprep.mubr.msk.f32.mxu1 %vm559_vm1, %v3478_v31  ;;  %v4307_v31 = vsel %vm559_vm1, %v3855_v37, %v507_v6  ;;  %v511_v37 = vpop.permute.xlu1 %510  ;;  %v6416_v6 = vld [vmem:[#allocation5_spill] sm:$0xff] }
  0xd3   : > { %2994 = vmatprep.mubr.msk.f32.mxu0 %vm559_vm1, %v3822_v47  ;;  %v6417_v33 = vrot.slane %v6416_v6, 1 }
  0xd5   : > { %1029 = vmatmul.mubr.f32.gmra.mxu1 %v3975_v16  ;;  %v6413_v16 = vrot.slane %v3686_v62, 1 }
  0xd6   : > { %882 = vmatmul.mubr.f32.gmra.mxu0 %v4292_v34  ;;  %3013 = vmatprep.mubr.msk.f32.mxu1 %vm559_vm1, %v3972_v30  ;;  %v4320_v30 = vsel %vm559_vm1, %v378_v35, %v4160_v41  ;;  %v6414_v41 = vrot.slane %v3708_v18, 7  ;;  %v4353_v18 = vsel %vm384_vm0, %v6417_v33, 0.0  ;;  %v380_v35 = vsel %vm287_vm2, 0.0, %v6418_v50  ;;  %v6423_v33 = vld [vmem:[#allocation13_spill] sm:$0xff] }
  0xd7   : > { %2995 = vmatprep.mubr.msk.f32.mxu0 %vm559_vm1, %v4297_v19  ;;  %v4325_v59 = vsel %vm384_vm0, %v6413_v16, 0.0  ;;  %v4376_v16 = vsel %vm559_vm1, %v380_v35, %v4202_v28  ;;  %v6424_v35 = vld [vmem:[#allocation7_spill] sm:$0xff] }
  0xd8   : > { %v379_v62 = vsel %vm287_vm2, 0.0, %v6414_v41  ;;  %v6420_v41 = vld [vmem:[#allocation6_spill] sm:$0xff] }
  0xd9   : > { %1034 = vmatmul.mubr.f32.gmra.mxu1 %v3992_v1  ;;  %v4335_v1 = vsel %vm559_vm1, %v3887_v3, %v511_v37  ;;  %v4348_v44 = vsel %vm559_vm1, %v379_v62, %v4182_v52  ;;  %v515_v3 = vpop.permute.xlu1 %514  ;;  %v6419_v37 = vld [vmem:[#allocation12_spill] sm:$0xff]  ;;  %v6421_v62 = vrot.slane %v6420_v41, 1  ;;  %v6426_v41 = vrot.slane %v3801_v39, 7 }
  0xda   : > { %887 = vmatmul.mubr.f32.gmra.mxu0 %v4307_v31  ;;  %3014 = vmatprep.mubr.msk.f32.mxu1 %vm559_vm1, %v3503_v40  ;;  %v4363_v52 = vsel %vm559_vm1, %v3907_v29, %v515_v3  ;;  %v6422_v3 = vrot.slane %v3766_v38, 7 }
  0xdb   : > { %2996 = vmatprep.mubr.msk.f32.mxu0 %vm559_vm1, %v3866_v21  ;;  %v4381_v63 = vsel %vm384_vm0, %v6421_v62, 0.0  ;;  %v382_v62 = vsel %vm287_vm2, 0.0, %v6426_v41  ;;  %v6432_v41 = vld [vmem:[#allocation15_spill] sm:$0xff] }
  0xdc   : > { %v381_v6 = vsel %vm287_vm2, 0.0, %v6422_v3  ;;  %v6427_v3 = vld [vmem:[#allocation18_spill] sm:$0xff] }
  0xdd   : > { %1039 = vmatmul.mubr.f32.gmra.mxu1 %v4002_v5  ;;  %v519_v29 = vpop.permute.xlu1 %518  ;;  %v4404_v50 = vsel %vm559_vm1, %v381_v6, %v4218_v61  ;;  %v6428_v6 = vld [vmem:[#allocation14_spill] sm:$0xff] }
  0xde   : > { %892 = vmatmul.mubr.f32.gmra.mxu0 %v4320_v30  ;;  %3015 = vmatprep.mubr.msk.f32.mxu1 %vm559_vm1, %v4007_v4  ;;  %v4391_v28 = vsel %vm559_vm1, %v3921_v54, %v519_v29  ;;  %v6425_v29 = vrot.slane %v6424_v35, 1  ;;  %v4432_v35 = vsel %vm559_vm1, %v382_v62, %v4230_v22  ;;  %v6433_v62 = vld [vmem:[#allocation9_spill] sm:$0xff] }
  0xdf   : > { %2997 = vmatprep.mubr.msk.f32.mxu0 %vm559_vm1, %v4325_v59  ;;  %v6434_v2 = vrot.slane %v6433_v62, 7 }
  0xe0   : > { %v4409_v38 = vsel %vm384_vm0, %v6425_v29, 0.0 }
  0xe1   : > { %1044 = vmatmul.mubr.f32.gmra.mxu1 %v4022_v8  ;;  %v523_v54 = vpop.permute.xlu1 %522 }
  0xe2   : > { %897 = vmatmul.mubr.f32.gmra.mxu0 %v4335_v1  ;;  %3016 = vmatprep.mubr.msk.f32.mxu1 %vm559_vm1, %v3521_v45  ;;  %v4419_v61 = vsel %vm559_vm1, %v3935_v49, %v523_v54  ;;  %v6429_v54 = vld [vmem:[#allocation8_spill] sm:$0xff] }
  0xe3   : > { %2998 = vmatprep.mubr.msk.f32.mxu0 %vm559_vm1, %v6415_v20  ;;  %v6430_v29 = vrot.slane %v6429_v54, 1  ;;  %v383_v54 = vsel %vm287_vm2, 0.0, %v6434_v2  ;;  %v6438_v2 = vld [vmem:[#allocation19_spill] sm:$0xff] }
  0xe4   : > { %v4460_v27 = vsel %vm559_vm1, %v383_v54, %v4244_v58  ;;  %v1873_v54 = vld [vmem:[%s6270_s3 + $0x70] sm:$0xff] }
  0xe5   : > { %1049 = vmatmul.mubr.f32.gmra.mxu1 %v4039_v11  ;;  %v527_v49 = vpop.permute.xlu1 %526  ;;  %v4437_v39 = vsel %vm384_vm0, %v6430_v29, 0.0  ;;  %v6435_v29 = vld [vmem:[#allocation16_spill] sm:$0xff] }
  0xe6   : > { %902 = vmatmul.mubr.f32.gmra.mxu0 %v4348_v44  ;;  %3017 = vmatprep.mubr.msk.f32.mxu1 %vm559_vm1, %v4044_v13  ;;  %6431 = vst [vmem:[#allocation11_spill] sm:$0xff] %v4437_v39  ;;  %v4447_v22 = vsel %vm559_vm1, %v6432_v41, %v527_v49  ;;  %v6436_v41 = vld [vmem:[#allocation10_spill] sm:$0xff] }
  0xe7   : > { %2999 = vmatprep.mubr.msk.f32.mxu0 %vm559_vm1, %v4353_v18 }
  0xe9   : > { %1054 = vmatmul.mubr.f32.gmra.mxu1 %v4059_v12  ;;  %v618_v49 = vpop.permute.xlu1 %617 }
  0xea   : > { %907 = vmatmul.mubr.f32.gmra.mxu0 %v4363_v52  ;;  %3018 = vmatprep.mubr.msk.f32.mxu1 %vm559_vm1, %v3543_v51 }
  0xeb   : > { %3000 = vmatprep.mubr.msk.f32.mxu0 %vm559_vm1, %v6419_v37 }
  0xed   : > { %1059 = vmatmul.mubr.f32.gmra.mxu1 %v4076_v14 }
  0xee   : > { %912 = vmatmul.mubr.f32.gmra.mxu0 %v4376_v16  ;;  %3019 = vmatprep.mubr.msk.f32.mxu1 %vm559_vm1, %v4083_v36 }
  0xef   : > { %3001 = vmatprep.mubr.msk.f32.mxu0 %vm559_vm1, %v4381_v63 }
  0xf1   : > { %1064 = vmatmul.mubr.f32.gmra.mxu1 %v4098_v15 }
  0xf2   : > { %917 = vmatmul.mubr.f32.gmra.mxu0 %v4391_v28  ;;  %3020 = vmatprep.mubr.msk.f32.mxu1 %vm559_vm1, %v3564_v56 }
  0xf3   : > { %3002 = vmatprep.mubr.msk.f32.mxu0 %vm559_vm1, %v6423_v33 }
  0xf5   : > { %1069 = vmatmul.mubr.f32.gmra.mxu1 %v4117_v26 }
  0xf6   : > { %922 = vmatmul.mubr.f32.gmra.mxu0 %v4404_v50  ;;  %3021 = vmatprep.mubr.msk.f32.mxu1 %vm559_vm1, %v4124_v17 }
  0xf7   : > { %3003 = vmatprep.mubr.msk.f32.mxu0 %vm559_vm1, %v4409_v38 }
  0xf9   : > { %1074 = vmatmul.mubr.f32.gmra.mxu1 %v6427_v3 }
  0xfa   : > { %927 = vmatmul.mubr.f32.gmra.mxu0 %v4419_v61  ;;  %3022 = vmatprep.mubr.msk.f32.mxu1 %vm559_vm1, %v3609_v10 }
  0xfb   : > { %3004 = vmatprep.mubr.msk.f32.mxu0 %vm559_vm1, %v6428_v6 }
  0xfd   : > { %1079 = vmatmul.mubr.f32.gmra.mxu1 %v4158_v42 }
  0xfe   : > { %932 = vmatmul.mubr.f32.gmra.mxu0 %v4432_v35  ;;  %3023 = vmatprep.mubr.msk.f32.mxu1 %vm559_vm1, %v4165_v7 }
  0xff   : > { %3005 = vmatprep.mubr.msk.f32.mxu0 %vm559_vm1, %v4437_v39  ;;  %v6437_v39 = vrot.slane %v6436_v41, 1  ;;  %v1899_v41 = vld [vmem:[%s6270_s3 + $0x100] sm:$0xff] }
 0x101   : > { %1084 = vmatmul.mubr.f32.gmra.mxu1 %v4180_v43  ;;  %v4465_v62 = vsel %vm384_vm0, %v6437_v39, 0.0  ;;  %v1874_v39 = vld [vmem:[%s6270_s3 + $0x78] sm:$0xff] }
 0x102   : > { %937 = vmatmul.mubr.f32.gmra.mxu0 %v4447_v22  ;;  %3024 = vmatprep.mubr.msk.f32.mxu1 %vm559_vm1, %v3667_v48 }
 0x103   : > { %3006 = vmatprep.mubr.msk.f32.mxu0 %vm559_vm1, %v6435_v29  ;;  %v6439_v29 = vld [vmem:[#allocation17_spill] sm:$0xff] }
 0x104   : > { %v4475_v58 = vsel %vm559_vm1, %v6439_v29, %v618_v49 }
 0x105   : > { %1089 = vmatmul.mubr.f32.gmra.mxu1 %v4200_v57 }
 0x106   : > { %942 = vmatmul.mubr.f32.gmra.mxu0 %v4460_v27  ;;  %3025 = vmatprep.mubr.msk.f32.mxu1 %vm559_vm1, %v6438_v2 }
 0x107   : > { %3007 = vmatprep.mubr.msk.f32.mxu0 %vm559_vm1, %v4465_v62 }
 0x109   : > { %1094 = vmatmul.mubr.f32.gmra.mxu1 %v4216_v32 }
 0x10a   : > { %947 = vmatmul.mubr.f32.gmra.mxu0 %v4475_v58  ;;  %3026 = vmatprep.mubr.msk.f32.mxu1 %vm559_vm1, %v3725_v46 }
 0x10b   : > { %3042 = vmatprep.mubr.msk.f32.mxu0 %vm559_vm1, %v3503_v40  ;;  %v1872_v40 = vld [vmem:[%s6270_s3 + $0x68] sm:$0xff] }
 0x10d   : > { %1099 = vmatmul.mubr.f32.gmra.mxu1 %v4228_v25 }
 0x10e   : > { %1268 = vmatmul.mubr.f32.vlgmr.msra.gmra.mxu0 %v4002_v5  ;;  %3027 = vmatprep.mubr.msk.f32.mxu1 %vm559_vm1, %v4235_v53  ;;  %v1871_v5 = vld [vmem:[%s6270_s3 + $0x60] sm:$0xff] }
 0x10f   : > { %3043 = vmatprep.mubr.msk.f32.mxu0 %vm559_vm1, %v4007_v4  ;;  %2221 = vmatpush1.msra.mxu0 %v1874_v39  ;;  %v1869_v4 = vld [vmem:[%s6270_s3 + $0x50] sm:$0xff] }
 0x110   : > { %2222 = vmatprep.subr.mxu0 %v6387_v9  ;;  %v1897_v39 = vld [vmem:[%s6270_s3 + $0xf0] sm:$0xff] }
 0x111   : > { %1104 = vmatmul.mubr.f32.gmra.mxu1 %v4242_v0  ;;  %2223 = vmatpush1.msra.mxu0 %v1873_v54 }
 0x112   : > { %1273 = vmatmul.mubr.f32.gmra.mxu0 %v4022_v8  ;;  %3028 = vmatprep.mubr.msk.f32.mxu1 %vm559_vm1, %v3783_v60  ;;  %v1868_v8 = vld [vmem:[%s6270_s3 + $0x48] sm:$0xff] }
 0x113   : > { %3044 = vmatprep.mubr.msk.f32.mxu0 %vm559_vm1, %v3521_v45  ;;  %2224 = vmatprep.subr.mxu0 %v6387_v9  ;;  %v1870_v45 = vld [vmem:[%s6270_s3 + $0x58] sm:$0xff] }
 0x114   : > { %2225 = vmatpush1.msra.mxu0 %v1872_v40 }
 0x115   : > { %1109 = vmatmul.mubr.f32.gmra.mxu1 %v4259_v24  ;;  %2226 = vmatprep.subr.mxu0 %v6387_v9 }
 0x116   : > { %1278 = vmatmul.mubr.f32.gmra.mxu0 %v4039_v11  ;;  %3029 = vmatprep.mubr.msk.f32.mxu1 %vm559_vm1, %v4266_v23  ;;  %v1866_v11 = vld [vmem:[%s6270_s3 + $0x38] sm:$0xff] }
 0x117   : > { %3045 = vmatprep.mubr.msk.f32.mxu0 %vm559_vm1, %v4044_v13  ;;  %2227 = vmatpush1.msra.mxu0 %v1871_v5  ;;  %v1865_v13 = vld [vmem:[%s6270_s3 + $0x30] sm:$0xff] }
 0x118   : > { %2228 = vmatprep.subr.mxu0 %v6387_v9 }
 0x119   : > { %1114 = vmatmul.mubr.f32.gmra.mxu1 %v4277_v55  ;;  %2229 = vmatpush1.msra.mxu0 %v1870_v45  ;;  %v1896_v45 = vld [vmem:[%s6270_s3 + $0xe8] sm:$0xff] }
 0x11a   : > { %1283 = vmatmul.mubr.f32.gmra.mxu0 %v4059_v12  ;;  %3030 = vmatprep.mubr.msk.f32.mxu1 %vm559_vm1, %v3822_v47  ;;  %v1863_v12 = vld [vmem:[%s6270_s3 + $0x20] sm:$0xff] }
 0x11b   : > { %3046 = vmatprep.mubr.msk.f32.mxu0 %vm559_vm1, %v3543_v51  ;;  %2230 = vmatprep.subr.mxu0 %v6387_v9  ;;  %v1867_v51 = vld [vmem:[%s6270_s3 + $0x40] sm:$0xff] }
 0x11c   : > { %2231 = vmatpush1.msra.mxu0 %v1869_v4 }
 0x11d   : > { %1119 = vmatmul.mubr.f32.gmra.mxu1 %v4292_v34  ;;  %2232 = vmatprep.subr.mxu0 %v6387_v9 }
 0x11e   : > { %1288 = vmatmul.mubr.f32.gmra.mxu0 %v4076_v14  ;;  %3031 = vmatprep.mubr.msk.f32.mxu1 %vm559_vm1, %v4297_v19  ;;  %v1862_v14 = vld [vmem:[%s6270_s3 + $0x18] sm:$0xff] }
 0x11f   : > { %3047 = vmatprep.mubr.msk.f32.mxu0 %vm559_vm1, %v4083_v36  ;;  %2233 = vmatpush1.msra.mxu0 %v1868_v8  ;;  %v1860_v36 = vld [vmem:[%s6270_s3 + $0x8] sm:$0xff] }
 0x120   : > { %2234 = vmatprep.subr.mxu0 %v6387_v9 }
 0x121   : > { %1124 = vmatmul.mubr.f32.gmra.mxu1 %v4307_v31  ;;  %2235 = vmatpush1.msra.mxu0 %v1867_v51 }
 0x122   : > { %1293 = vmatmul.mubr.f32.gmra.mxu0 %v4098_v15  ;;  %3032 = vmatprep.mubr.msk.f32.mxu1 %vm559_vm1, %v3866_v21  ;;  %v1859_v15 = vld [vmem:[%s6270_s3] sm:$0xff] }
 0x123   : > { %3048 = vmatprep.mubr.msk.f32.mxu0 %vm559_vm1, %v3564_v56  ;;  %2236 = vmatprep.subr.mxu0 %v6387_v9  ;;  %v1864_v56 = vld [vmem:[%s6270_s3 + $0x28] sm:$0xff] }
 0x124   : > { %2237 = vmatpush1.msra.mxu0 %v1866_v11 }
 0x125   : > { %1129 = vmatmul.mubr.f32.gmra.mxu1 %v4320_v30  ;;  %2238 = vmatprep.subr.mxu0 %v6387_v9 }
 0x126   : > { %1298 = vmatmul.mubr.f32.gmra.mxu0 %v4117_v26  ;;  %3033 = vmatprep.mubr.msk.f32.mxu1 %vm559_vm1, %v4325_v59  ;;  %v1881_v26 = vld [vmem:[%s6270_s3 + $0xb0] sm:$0xff] }
 0x127   : > { %3049 = vmatprep.mubr.msk.f32.mxu0 %vm559_vm1, %v4124_v17  ;;  %2239 = vmatpush1.msra.mxu0 %v1865_v13  ;;  %v1880_v17 = vld [vmem:[%s6270_s3 + $0xa8] sm:$0xff] }
 0x128   : > { %2240 = vmatprep.subr.mxu0 %v6387_v9 }
 0x129   : > { %1134 = vmatmul.mubr.f32.gmra.mxu1 %v4335_v1  ;;  %2241 = vmatpush1.msra.mxu0 %v1864_v56  ;;  %v1894_v56 = vld [vmem:[%s6270_s3 + $0xd8] sm:$0xff] }
 0x12a   : > { %1303 = vmatmul.mubr.f32.gmra.mxu0 %v6427_v3  ;;  %3034 = vmatprep.mubr.msk.f32.mxu1 %vm559_vm1, %v6415_v20  ;;  %v1902_v3 = vld [vmem:[%s6270_s3 + $0x118] sm:$0xff] }
 0x12b   : > { %3050 = vmatprep.mubr.msk.f32.mxu0 %vm559_vm1, %v3609_v10  ;;  %2242 = vmatprep.subr.mxu0 %v6387_v9  ;;  %v1861_v10 = vld [vmem:[%s6270_s3 + $0x10] sm:$0xff] }
 0x12c   : > { %2243 = vmatpush1.msra.mxu0 %v1863_v12 }
 0x12d   : > { %1139 = vmatmul.mubr.f32.gmra.mxu1 %v4348_v44  ;;  %2244 = vmatprep.subr.mxu0 %v6387_v9 }
 0x12e   : > { %1308 = vmatmul.mubr.f32.gmra.mxu0 %v4158_v42  ;;  %3035 = vmatprep.mubr.msk.f32.mxu1 %vm559_vm1, %v4353_v18  ;;  %v1878_v42 = vld [vmem:[%s6270_s3 + $0x98] sm:$0xff] }
 0x12f   : > { %3051 = vmatprep.mubr.msk.f32.mxu0 %vm559_vm1, %v4165_v7  ;;  %2245 = vmatpush1.msra.mxu0 %v1862_v14  ;;  %v1877_v7 = vld [vmem:[%s6270_s3 + $0x90] sm:$0xff] }
 0x130   : > { %2246 = vmatprep.subr.mxu0 %v6387_v9 }
 0x131   : > { %1144 = vmatmul.mubr.f32.gmra.mxu1 %v4363_v52  ;;  %2247 = vmatpush1.msra.mxu0 %v1861_v10 }
 0x132   : > { %1313 = vmatmul.mubr.f32.gmra.mxu0 %v4180_v43  ;;  %3036 = vmatprep.mubr.msk.f32.mxu1 %vm559_vm1, %v6419_v37  ;;  %v6440_v43 = vld [vmem:[#allocation11_spill] sm:$0xff] }
 0x133   : > { %3052 = vmatprep.mubr.msk.f32.mxu0 %vm559_vm1, %v3667_v48  ;;  %2248 = vmatprep.subr.mxu0 %v6387_v9  ;;  %v1882_v48 = vld [vmem:[%s6270_s3 + $0xb8] sm:$0xff] }
 0x134   : > { %2249 = vmatpush1.msra.mxu0 %v1860_v36 }
 0x135   : > { %1149 = vmatmul.mubr.f32.gmra.mxu1 %v4376_v16  ;;  %2250 = vmatprep.subr.mxu0 %v6387_v9 }
 0x136   : > { %1318 = vmatmul.mubr.f32.gmra.mxu0 %v4200_v57  ;;  %3037 = vmatprep.mubr.msk.f32.mxu1 %vm559_vm1, %v4381_v63  ;;  %v1875_v57 = vld [vmem:[%s6270_s3 + $0x80] sm:$0xff] }
 0x137   : > { %3053 = vmatprep.mubr.msk.f32.mxu0 %vm559_vm1, %v6438_v2  ;;  %2251 = vmatpush1.msra.mxu0 %v1859_v15  ;;  %v6441_v2 = vld [vmem:[#allocation16_spill] sm:$0xff] }
 0x138   : > { %2268 = vmatprep.subr.mxu0 %v6387_v9 }
 0x139   : > { %1154 = vmatmul.mubr.f32.gmra.mxu1 %v4391_v28  ;;  %2269 = vmatpush2.msra.mxu0 %v1882_v48 }
 0x13a   : > { %1323 = vmatmul.mubr.f32.gmra.mxu0 %v4216_v32  ;;  %3038 = vmatprep.mubr.msk.f32.mxu1 %vm559_vm1, %v6423_v33  ;;  %v1906_v32 = vld [vmem:[%s6270_s3 + $0x138] sm:$0xff] }
 0x13b   : > { %3054 = vmatprep.mubr.msk.f32.mxu0 %vm559_vm1, %v3725_v46  ;;  %2270 = vmatprep.subr.mxu0 %v6387_v9  ;;  %v1879_v46 = vld [vmem:[%s6270_s3 + $0xa0] sm:$0xff] }
 0x13c   : > { %2271 = vmatpush2.msra.mxu0 %v1881_v26  ;;  %1996 = vmatpush1.msra.mxu1 %v1906_v32 }
 0x13d   : > { %1159 = vmatmul.mubr.f32.gmra.mxu1 %v4404_v50  ;;  %2272 = vmatprep.subr.mxu0 %v6387_v9 }
 0x13e   : > { %1328 = vmatmul.mubr.f32.gmra.mxu0 %v4228_v25  ;;  %3039 = vmatprep.mubr.msk.f32.mxu1 %vm559_vm1, %v4409_v38 }
 0x13f   : > { %3055 = vmatprep.mubr.msk.f32.mxu0 %vm559_vm1, %v4235_v53  ;;  %2273 = vmatpush2.msra.mxu0 %v1880_v17 }
 0x140   : > { %2274 = vmatprep.subr.mxu0 %v6387_v9  ;;  %1997 = vmatprep.subr.mxu1 %v6387_v9 }
 0x141   : > { %1164 = vmatmul.mubr.f32.gmra.mxu1 %v4419_v61  ;;  %2275 = vmatpush2.msra.mxu0 %v1879_v46  ;;  %v1893_v46 = vld [vmem:[%s6270_s3 + $0xd0] sm:$0xff] }
 0x142   : > { %1333 = vmatmul.mubr.f32.gmra.mxu0 %v4242_v0  ;;  %3040 = vmatprep.mubr.msk.f32.mxu1 %vm559_vm1, %v6428_v6 }
 0x143   : > { %3056 = vmatprep.mubr.msk.f32.mxu0 %vm559_vm1, %v3783_v60  ;;  %2276 = vmatprep.subr.mxu0 %v6387_v9  ;;  %v1876_v60 = vld [vmem:[%s6270_s3 + $0x88] sm:$0xff] }
 0x144   : > { %2277 = vmatpush2.msra.mxu0 %v1878_v42 }
 0x145   : > { %1169 = vmatmul.mubr.f32.gmra.mxu1 %v4432_v35  ;;  %2278 = vmatprep.subr.mxu0 %v6387_v9 }
 0x146   : > { %1338 = vmatmul.mubr.f32.gmra.mxu0 %v4259_v24  ;;  %3041 = vmatprep.mubr.msk.f32.mxu1 %vm559_vm1, %v6440_v43  ;;  %v1905_v24 = vld [vmem:[%s6270_s3 + $0x130] sm:$0xff] }
 0x147   : > { %3057 = vmatprep.mubr.msk.f32.mxu0 %vm559_vm1, %v4266_v23  ;;  %2279 = vmatpush2.msra.mxu0 %v1877_v7 }
 0x148   : > { %2280 = vmatprep.subr.mxu0 %v6387_v9  ;;  %1998 = vmatpush1.msra.mxu1 %v1905_v24 }
 0x149   : > { %1174 = vmatmul.mubr.f32.gmra.mxu1 %v4447_v22  ;;  %2281 = vmatpush2.msra.mxu0 %v1876_v60 }
 0x14a   : > { %1343 = vmatmul.mubr.f32.gmra.mxu0 %v4277_v55  ;;  %2282 = vmatprep.subr.mxu0 %v6387_v9 }
 0x14b   : > { %3058 = vmatprep.mubr.msk.f32.mxu0 %vm559_vm1, %v3822_v47  ;;  %2283 = vmatpush2.msra.mxu0 %v1875_v57  ;;  %v1892_v57 = vld [vmem:[%s6270_s3 + $0xc8] sm:$0xff] }
 0x14c   : > { %1999 = vmatprep.subr.mxu1 %v6387_v9 }
 0x14e   : > { %v4676_v25 = vpop.f32.mrf.mxu0  ;;  %1348 = vmatmul.mubr.f32.gmra.mxu0 %v4292_v34 }
 0x14f   : > { %3059 = vmatprep.mubr.msk.f32.mxu0 %vm559_vm1, %v4297_v19 }
 0x150   : > { %v795_v53 = vpop.f32.mrf.mxu0 }
 0x152   : > { %v4681_v0 = vpop.f32.mrf.mxu0  ;;  %1353 = vmatmul.mubr.f32.gmra.mxu0 %v4307_v31  ;;  %v1903_v31 = vld [vmem:[%s6270_s3 + $0x120] sm:$0xff] }
 0x153   : > { %3060 = vmatprep.mubr.msk.f32.mxu0 %vm559_vm1, %v3866_v21  ;;  %v1904_v21 = vld [vmem:[%s6270_s3 + $0x128] sm:$0xff] }
 0x154   : > { %v800_v47 = vpop.f32.mrf.mxu0  ;;  %2000 = vmatpush1.msra.mxu1 %v1904_v21 }
 0x155   : > { %2001 = vmatprep.subr.mxu1 %v6387_v9 }
 0x156   : > { %v4689_v23 = vpop.f32.mrf.mxu0  ;;  %1358 = vmatmul.mubr.f32.gmra.mxu0 %v4320_v30  ;;  %2002 = vmatpush1.msra.mxu1 %v1903_v31 }
 0x157   : > { %3061 = vmatprep.mubr.msk.f32.mxu0 %vm559_vm1, %v4325_v59  ;;  %2003 = vmatprep.subr.mxu1 %v6387_v9 }
 0x158   : > { %v805_v55 = vpop.f32.mrf.mxu0  ;;  %2004 = vmatpush1.msra.mxu1 %v1902_v3 }
 0x159   : > { %2005 = vmatprep.subr.mxu1 %v6387_v9  ;;  %v1891_v55 = vld [vmem:[%s6270_s3 + $0xc0] sm:$0xff] }
 0x15a   : > { %v4698_v34 = vpop.f32.mrf.mxu0  ;;  %1363 = vmatmul.mubr.f32.gmra.mxu0 %v4335_v1 }
 0x15b   : > { %3062 = vmatprep.mubr.msk.f32.mxu0 %vm559_vm1, %v6415_v20 }
 0x15c   : > { %v810_v19 = vpop.f32.mrf.mxu0 }
 0x15e   : > { %v4707_v30 = vpop.f32.mrf.mxu0  ;;  %1368 = vmatmul.mubr.f32.gmra.mxu0 %v4348_v44 }
 0x15f   : > { %3063 = vmatprep.mubr.msk.f32.mxu0 %vm559_vm1, %v4353_v18 }
 0x160   : > { %v815_v59 = vpop.f32.mrf.mxu0 }
 0x162   : > { %v4713_v1 = vpop.f32.mrf.mxu0  ;;  %1373 = vmatmul.mubr.f32.gmra.mxu0 %v4363_v52  ;;  %v1901_v52 = vld [vmem:[%s6270_s3 + $0x110] sm:$0xff] }
 0x163   : > { %3064 = vmatprep.mubr.msk.f32.mxu0 %vm559_vm1, %v6419_v37  ;;  %2006 = vmatpush1.msra.mxu1 %v1901_v52 }
 0x164   : > { %v820_v20 = vpop.f32.mrf.mxu0  ;;  %2007 = vmatprep.subr.mxu1 %v6387_v9 }
 0x166   : > { %v4721_v44 = vpop.f32.mrf.mxu0  ;;  %1378 = vmatmul.mubr.f32.gmra.mxu0 %v4376_v16 }
 0x167   : > { %3065 = vmatprep.mubr.msk.f32.mxu0 %vm559_vm1, %v4381_v63  ;;  %v1900_v63 = vld [vmem:[%s6270_s3 + $0x108] sm:$0xff] }
 0x168   : > { %v825_v18 = vpop.f32.mrf.mxu0  ;;  %2008 = vmatpush1.msra.mxu1 %v1900_v63 }
 0x169   : > { %2009 = vmatprep.subr.mxu1 %v6387_v9 }
 0x16a   : > { %v4730_v37 = vpop.f32.mrf.mxu0  ;;  %1383 = vmatmul.mubr.f32.gmra.mxu0 %v4391_v28  ;;  %2010 = vmatpush1.msra.mxu1 %v1899_v41 }
 0x16b   : > { %3066 = vmatprep.mubr.msk.f32.mxu0 %vm559_vm1, %v6423_v33  ;;  %2011 = vmatprep.subr.mxu1 %v6387_v9 }
 0x16c   : > { %v830_v16 = vpop.f32.mrf.mxu0 }
 0x16d   : > { %v1914_v16 = vld [vmem:[%s6270_s3 + $0x178] sm:$0xff] }
 0x16e   : > { %v4739_v29 = vpop.f32.mrf.mxu0  ;;  %1388 = vmatmul.mubr.f32.gmra.mxu0 %v4404_v50 }
 0x16f   : > { %3067 = vmatprep.mubr.msk.f32.mxu0 %vm559_vm1, %v4409_v38 }
 0x170   : > { %v835_v28 = vpop.f32.mrf.mxu0 }
 0x172   : > { %v4745_v49 = vpop.f32.mrf.mxu0  ;;  %1393 = vmatmul.mubr.f32.gmra.mxu0 %v4419_v61  ;;  %v1898_v61 = vld [vmem:[%s6270_s3 + $0xf8] sm:$0xff] }
 0x173   : > { %3068 = vmatprep.mubr.msk.f32.mxu0 %vm559_vm1, %v6428_v6  ;;  %2012 = vmatpush1.msra.mxu1 %v1898_v61 }
 0x174   : > { %v840_v33 = vpop.f32.mrf.mxu0  ;;  %2013 = vmatprep.subr.mxu1 %v6387_v9 }
 0x175   : > { %2014 = vmatpush1.msra.mxu1 %v1897_v39 }
 0x176   : > { %v4753_v50 = vpop.f32.mrf.mxu0  ;;  %1398 = vmatmul.mubr.f32.gmra.mxu0 %v4432_v35  ;;  %2015 = vmatprep.subr.mxu1 %v6387_v9 }
 0x177   : > { %3069 = vmatprep.mubr.msk.f32.mxu0 %vm559_vm1, %v6440_v43  ;;  %2016 = vmatpush1.msra.mxu1 %v1896_v45 }
 0x178   : > { %v845_v38 = vpop.f32.mrf.mxu0  ;;  %2017 = vmatprep.subr.mxu1 %v6387_v9 }
 0x179   : > { %v1913_v38 = vld [vmem:[%s6270_s3 + $0x170] sm:$0xff] }
 0x17a   : > { %v4762_v6 = vpop.f32.mrf.mxu0  ;;  %1403 = vmatmul.mubr.f32.gmra.mxu0 %v4447_v22 }
 0x17b   : > { %3070 = vmatprep.mubr.msk.f32.mxu0 %vm559_vm1, %v6441_v2 }
 0x17c   : > { %v850_v35 = vpop.f32.mrf.mxu0 }
 0x17e   : > { %v4771_v54 = vpop.f32.mrf.mxu0  ;;  %1408 = vmatmul.mubr.f32.gmra.mxu0 %v4460_v27  ;;  %v6442_v27 = vld [vmem:[#allocation21_spill] sm:$0xff] }
 0x17f   : > { %3071 = vmatprep.mubr.msk.f32.mxu0 %vm559_vm1, %v4465_v62 }
 0x180   : > { %v855_v22 = vpop.f32.mrf.mxu0 }
 0x181   : > { %v1912_v22 = vld [vmem:[%s6270_s3 + $0x168] sm:$0xff] }
 0x182   : > { %v4777_v40 = vpop.f32.mrf.mxu0  ;;  %1413 = vmatmul.mubr.f32.gmra.mxu0 %v4475_v58  ;;  %v1895_v58 = vld [vmem:[%s6270_s3 + $0xe0] sm:$0xff] }
 0x183   : > { %1417 = vmatprep.mubr.f32.mxu0 %v6387_v9  ;;  %2018 = vmatpush1.msra.mxu1 %v1895_v58 }
 0x184   : > { %v860_v5 = vpop.f32.mrf.mxu0  ;;  %2019 = vmatprep.subr.mxu1 %v6387_v9 }
 0x185   : > { %2020 = vmatpush1.msra.mxu1 %v1894_v56 }
 0x186   : > { %v4784_v4 = vpop.f32.mrf.mxu0  ;;  %3073 = vmatmul.mubr.msk.f32.gmra.mxu0 %vm4251_vm3, %v6442_v27  ;;  %2021 = vmatprep.subr.mxu1 %v6387_v9 }
 0x187   : > { %1422 = vmatprep.mubr.f32.mxu0 %v6387_v9  ;;  %2022 = vmatpush1.msra.mxu1 %v1893_v46 }
 0x188   : > { %v865_v62 = vpop.f32.mrf.mxu0  ;;  %2023 = vmatprep.subr.mxu1 %v6387_v9 }
 0x189   : > { %2024 = vmatpush1.msra.mxu1 %v1892_v57  ;;  %v1910_v57 = vld [vmem:[%s6270_s3 + $0x158] sm:$0xff] }
 0x18a   : > { %v4794_v51 = vpop.f32.mrf.mxu0  ;;  %3075 = vmatmul.mubr.msk.f32.gmra.mxu0 %vm4251_vm3, %v6442_v27  ;;  %2025 = vmatprep.subr.mxu1 %v6387_v9 }
 0x18b   : > { %2284 = vmatprep.mubr.f32.mxu0 %v6387_v9  ;;  %2026 = vmatpush1.msra.mxu1 %v1891_v55 }
 0x18c   : > { %v870_v11 = vpop.f32.mrf.mxu0  ;;  %2043 = vmatprep.subr.mxu1 %v6387_v9 }
 0x18d   : > { %v4801_v13 = vpop.f32.mrf.mxu1  ;;  %2044 = vmatpush2.msra.mxu1 %v1914_v16 }
 0x18e   : > { %v4806_v12 = vpop.f32.mrf.mxu0  ;;  %3110 = vmatmul.mubr.msk.f32.vlgmr.msra.gmra.mxu0 %vm4251_vm3, %v6442_v27  ;;  %2045 = vmatprep.subr.mxu1 %v6387_v9 }
 0x18f   : > { %v1022_v14 = vpop.f32.mrf.mxu1  ;;  %2289 = vmatprep.mubr.f32.mxu0 %v6387_v9  ;;  %2046 = vmatpush2.msra.mxu1 %v1913_v38 }
 0x190   : > { %v875_v10 = vpop.f32.mrf.mxu0  ;;  %2047 = vmatprep.subr.mxu1 %v6387_v9 }
 0x191   : > { %v4813_v36 = vpop.f32.mrf.mxu1  ;;  %2048 = vmatpush2.msra.mxu1 %v1912_v22  ;;  %v1908_v22 = vld [vmem:[%s6270_s3 + $0x148] sm:$0xff] }
 0x192   : > { %v4815_v15 = vpop.f32.mrf.mxu0  ;;  %3112 = vmatmul.mubr.msk.f32.gmra.mxu0 %vm4251_vm3, %v6442_v27  ;;  %2049 = vmatprep.subr.mxu1 %v6387_v9 }
 0x193   : > { %v1027_v48 = vpop.f32.mrf.mxu1 }
 0x194   : > { %v880_v26 = vpop.f32.mrf.mxu0  ;;  %v1911_v48 = vld [vmem:[%s6270_s3 + $0x160] sm:$0xff] }
 0x195   : > { %v4820_v17 = vpop.f32.mrf.mxu1  ;;  %2050 = vmatpush2.msra.mxu1 %v1911_v48 }
 0x196   : > { %v4825_v42 = vpop.f32.mrf.mxu0  ;;  %2051 = vmatprep.subr.mxu1 %v6387_v9  ;;  %v1031_v8 = vadd.f32 %v4820_v17, %v4689_v23 }
 0x197   : > { %v1032_v7 = vpop.f32.mrf.mxu1  ;;  %2052 = vmatpush2.msra.mxu1 %v1910_v57 }
 0x198   : > { %v885_v43 = vpop.f32.mrf.mxu0  ;;  %2053 = vmatprep.subr.mxu1 %v6387_v9 }
 0x199   : > { %v4828_v60 = vpop.f32.mrf.mxu1 }
 0x19a   : > { %v4833_v32 = vpop.f32.mrf.mxu0 }
 0x19b   : > { %v1037_v53 = vpop.f32.mrf.mxu1 }
 0x19c   : > { %v890_v47 = vpop.f32.mrf.mxu0 }
 0x19d   : > { %v4836_v24 = vpop.f32.mrf.mxu1 }
 0x19e   : > { %v4841_v21 = vpop.f32.mrf.mxu0 }
 0x19f   : > { %v1042_v19 = vpop.f32.mrf.mxu1 }
 0x1a0   : > { %v895_v31 = vpop.f32.mrf.mxu0 }
 0x1a1   : > { %v4844_v59 = vpop.f32.mrf.mxu1  ;;  %v1909_v31 = vld [vmem:[%s6270_s3 + $0x150] sm:$0xff] }
 0x1a2   : > { %v4846_v20 = vpop.f32.mrf.mxu0  ;;  %2054 = vmatpush2.msra.mxu1 %v1909_v31 }
 0x1a3   : > { %v1047_v3 = vpop.f32.mrf.mxu1  ;;  %2055 = vmatprep.subr.mxu1 %v6387_v9 }
 0x1a4   : > { %v900_v18 = vpop.f32.mrf.mxu0  ;;  %2056 = vmatpush2.msra.mxu1 %v1908_v22  ;;  %v1026_v22 = vadd.f32 %v4813_v36, %v4681_v0 }
 0x1a5   : > { %v4848_v52 = vpop.f32.mrf.mxu1  ;;  %2057 = vmatprep.subr.mxu1 %v6387_v9 }
 0x1a6   : > { %v4853_v63 = vpop.f32.mrf.mxu0 }
 0x1a7   : > { %v1052_v28 = vpop.f32.mrf.mxu1 }
 0x1a8   : > { %v905_v33 = vpop.f32.mrf.mxu0 }
 0x1a9   : > { %v4856_v41 = vpop.f32.mrf.mxu1 }
 0x1aa   : > { %v4861_v61 = vpop.f32.mrf.mxu0 }
 0x1ab   : > { %v1057_v2 = vpop.f32.mrf.mxu1 }
 0x1ac   : > { %v910_v35 = vpop.f32.mrf.mxu0 }
 0x1ad   : > { %v4864_v39 = vpop.f32.mrf.mxu1 }
 0x1ae   : > { %v4869_v5 = vpop.f32.mrf.mxu0 }
 0x1af   : > { %v1062_v45 = vpop.f32.mrf.mxu1 }
 0x1b0   : > { %v915_v62 = vpop.f32.mrf.mxu0 }
 0x1b1   : > { %v4872_v58 = vpop.f32.mrf.mxu1 }
 0x1b2   : > { %v4874_v11 = vpop.f32.mrf.mxu0 }
 0x1b3   : > { %v1067_v56 = vpop.f32.mrf.mxu1 }
 0x1b4   : > { %v920_v14 = vpop.f32.mrf.mxu0  ;;  %v1907_v56 = vld [vmem:[%s6270_s3 + $0x140] sm:$0xff] }
 0x1b5   : > { %v4876_v10 = vpop.f32.mrf.mxu1  ;;  %2058 = vmatpush2.msra.mxu1 %v1907_v56 }
 0x1b6   : > { %v4881_v26 = vpop.f32.mrf.mxu0  ;;  %2469 = vmatprep.subr.mxu1 %v6387_v9 }
 0x1b7   : > { %v1072_v46 = vpop.f32.mrf.mxu1 }
 0x1b8   : > { %v925_v7 = vpop.f32.mrf.mxu0 }
 0x1b9   : > { %v4884_v43 = vpop.f32.mrf.mxu1 }
 0x1ba   : > { %v4889_v53 = vpop.f32.mrf.mxu0 }
 0x1bb   : > { %v1077_v47 = vpop.f32.mrf.mxu1 }
 0x1bc   : > { %v930_v55 = vpop.f32.mrf.mxu0  ;;  %v1021_v47 = vadd.f32 %v4801_v13, %v4676_v25 }
 0x1bd   : > { %v4892_v19 = vpop.f32.mrf.mxu1 }
 0x1be   : > { %v4897_v3 = vpop.f32.mrf.mxu0 }
 0x1bf   : > { %v1082_v18 = vpop.f32.mrf.mxu1 }
 0x1c0   : > { %v935_v16 = vpop.f32.mrf.mxu0  ;;  %v4927_v18 = vld [vmem:[%s6269_s2] ss:$0 sm:$0xff] }
 0x1c1   : > { %v4900_v28 = vpop.f32.mrf.mxu1 }
 0x1c2   : > { %v4902_v33 = vpop.f32.mrf.mxu0 }
 0x1c3   : > { %v1087_v38 = vpop.f32.mrf.mxu1 }
 0x1c4   : > { %v940_v2 = vpop.f32.mrf.mxu0 }
 0x1c5   : > { %v4904_v35 = vpop.f32.mrf.mxu1 }
 0x1c6   : > { %v4909_v45 = vpop.f32.mrf.mxu0 }
 0x1c7   : > { %v1092_v62 = vpop.f32.mrf.mxu1 }
 0x1c8   : > { %v945_v14 = vpop.f32.mrf.mxu0 }
 0x1c9   : > { %v4915_v48 = vpop.f32.mrf.mxu1 }
 0x1ca   : > { %v4918_v46 = vpop.f32.mrf.mxu0 }
 0x1cb   : > { %v1097_v7 = vpop.f32.mrf.mxu1 }
 0x1cc   : > { %v950_v57 = vpop.f32.mrf.mxu0 }
 0x1cd   : > { %v4922_v55 = vpop.f32.mrf.mxu1 }
 0x1ce   : > { %v1269_v31 = vpop.f32.mrf.mxu0 }
 0x1cf   : > { %v1428_v16 = vadd.f32 %v1269_v31, %v1021_v47  ;;  %v1102_v38 = vpop.f32.mrf.mxu1 }
 0x1d0   : > { %v1271_v2 = vpop.f32.mrf.mxu0 }
 0x1d1   : > { %v1467_v62 = vadd.f32 %v4927_v18, %v1428_v16  ;;  %v4932_v56 = vpop.f32.mrf.mxu1  ;;  %v1036_v2 = vadd.f32 %v4828_v60, %v4698_v34 }
 0x1d2   : > { %v1274_v14 = vpop.f32.mrf.mxu0 }
 0x1d3   : > { %v4934_v25 = vmax.f32 %v1467_v62, 0.0  ;;  %v1429_v13 = vadd.f32 %v1274_v14, %v1026_v22  ;;  %v1107_v7 = vpop.f32.mrf.mxu1 }
 0x1d4   : > { %v1276_v57 = vpop.f32.mrf.mxu0 }
 0x1d5   : > { %v1468_v47 = vadd.f32 %v4927_v18, %v1429_v13  ;;  %v4939_v31 = vpop.f32.mrf.mxu1  ;;  %1739 = vrot.lane.b32.xlu1 %v4934_v25, %s3291_s23  ;;  %v1659_v62 = vrot.slane %v4934_v25, 1 }
 0x1d6   : > { %v1279_v0 = vpop.f32.mrf.mxu0 }
 0x1d7   : > { %v4943_v36 = vmax.f32 %v1468_v47, 0.0  ;;  %v1430_v16 = vadd.f32 %v1279_v0, %v1031_v8  ;;  %v1112_v38 = vpop.f32.mrf.mxu1  ;;  %v6330_v8 = vrot.slane %v4934_v25, 7 }
 0x1d8   : > { %v1281_v22 = vpop.f32.mrf.mxu0  ;;  %v1041_v38 = vadd.f32 %v4836_v24, %v4707_v30 }
 0x1d9   : > { %v1564_v23 = vrot.slane %v4943_v36, 7  ;;  %v6329_v17 = vrot.slane %v4943_v36, 1  ;;  %v1469_v14 = vadd.f32 %v4927_v18, %v1430_v16  ;;  %v4951_v13 = vpop.f32.mrf.mxu1  ;;  %1741 = vrot.lane.b32.xlu0 %v4943_v36, %s3291_s23 }
 0x1da   : > { %v1284_v7 = vpop.f32.mrf.mxu0 }
 0x1db   : > { %v4956_v57 = vmax.f32 %v1469_v14, 0.0  ;;  %v1431_v34 = vadd.f32 %v1284_v7, %v1036_v2  ;;  %v1117_v60 = vpop.f32.mrf.mxu1  ;;  %v1661_v47 = vsel %vm384_vm0, %v1659_v62, %v6329_v17  ;;  %v4966_v16 = vsel %vm287_vm2, %v6330_v8, %v1564_v23 }
 0x1dc   : > { %v1286_v0 = vpop.f32.mrf.mxu0  ;;  %3077 = vmatprep.mubr.msk.f32.mxu1 %vm559_vm1, %v1661_v47  ;;  %3113 = vmatprep.mubr.msk.f32.mxu0 %vm559_vm1, %v1661_v47  ;;  %v1046_v47 = vadd.f32 %v4844_v59, %v4713_v1  ;;  %v1051_v8 = vadd.f32 %v4848_v52, %v4721_v44 }
 0x1dd   : > { %v1470_v2 = vadd.f32 %v4927_v18, %v1431_v34  ;;  %v4971_v22 = vpop.f32.mrf.mxu1  ;;  %1743 = vrot.lane.b32.xlu1 %v4956_v57, %s3291_s23  ;;  %v1662_v0 = vrot.slane %v4956_v57, 1 }
 0x1de   : > { %v1289_v62 = vpop.f32.mrf.mxu0 }
 0x1df   : > { %v4975_v14 = vmax.f32 %v1470_v2, 0.0  ;;  %v1432_v7 = vadd.f32 %v1289_v62, %v1041_v38  ;;  %v1122_v60 = vpop.f32.mrf.mxu1  ;;  %v6333_v38 = vrot.slane %v4956_v57, 7 }
 0x1e0   : > { %v1291_v23 = vpop.f32.mrf.mxu0 }
 0x1e1   : > { %6444 = vst [vmem:[#allocation5_spill] sm:$0xff] %v4975_v14  ;;  %v1567_v30 = vrot.slane %v4975_v14, 7  ;;  %v6332_v24 = vrot.slane %v4975_v14, 1  ;;  %v1471_v34 = vadd.f32 %v4927_v18, %v1432_v7  ;;  %v4983_v17 = vpop.f32.mrf.mxu1  ;;  %1745 = vrot.lane.b32.xlu0 %v4975_v14, %s3291_s23 }
 0x1e2   : > { %v1294_v2 = vpop.f32.mrf.mxu0 }
 0x1e3   : > { %v4988_v62 = vmax.f32 %v1471_v34, 0.0  ;;  %v1433_v1 = vadd.f32 %v1294_v2, %v1046_v47  ;;  %v1127_v59 = vpop.f32.mrf.mxu1  ;;  %v4993_v60 = vsel %vm384_vm0, %v1662_v0, %v6332_v24  ;;  %v4998_v7 = vsel %vm287_vm2, %v6333_v38, %v1567_v30 }
 0x1e4   : > { %v1296_v23 = vpop.f32.mrf.mxu0  ;;  %6445 = vst [vmem:[#allocation12_spill] sm:$0xff] %v4998_v7  ;;  %v1061_v7 = vadd.f32 %v4864_v39, %v4739_v29 }
 0x1e5   : > { %v1472_v27 = vadd.f32 %v4927_v18, %v1433_v1  ;;  %v5003_v34 = vpop.f32.mrf.mxu1  ;;  %1747 = vrot.lane.b32.xlu1 %v4988_v62, %s3291_s23  ;;  %v1056_v23 = vadd.f32 %v4856_v41, %v4730_v37  ;;  %v1665_v24 = vrot.slane %v4988_v62, 1 }
 0x1e6   : > { %v1299_v47 = vpop.f32.mrf.mxu0 }
 0x1e7   : > { %v5007_v2 = vmax.f32 %v1472_v27, 0.0  ;;  %v1434_v0 = vadd.f32 %v1299_v47, %v1051_v8  ;;  %v1132_v59 = vpop.f32.mrf.mxu1  ;;  %v6336_v8 = vrot.slane %v4988_v62, 7 }
 0x1e8   : > { %v1301_v30 = vpop.f32.mrf.mxu0 }
 0x1e9   : > { %6446 = vst [vmem:[#allocation6_spill] sm:$0xff] %v5007_v2  ;;  %v1570_v44 = vrot.slane %v5007_v2, 7  ;;  %v6335_v52 = vrot.slane %v5007_v2, 1  ;;  %v1473_v1 = vadd.f32 %v4927_v18, %v1434_v0  ;;  %v5015_v38 = vpop.f32.mrf.mxu1  ;;  %1749 = vrot.lane.b32.xlu0 %v5007_v2, %s3291_s23 }
 0x1ea   : > { %v1304_v27 = vpop.f32.mrf.mxu0 }
 0x1eb   : > { %v5020_v47 = vmax.f32 %v1473_v1, 0.0  ;;  %v1435_v37 = vadd.f32 %v1304_v27, %v1056_v23  ;;  %v1137_v41 = vpop.f32.mrf.mxu1  ;;  %v5025_v59 = vsel %vm384_vm0, %v1665_v24, %v6335_v52  ;;  %v5030_v0 = vsel %vm287_vm2, %v6336_v8, %v1570_v44 }
 0x1ec   : > { %v1306_v30 = vpop.f32.mrf.mxu0  ;;  %6447 = vst [vmem:[#allocation13_spill] sm:$0xff] %v5030_v0  ;;  %v1071_v0 = vadd.f32 %v4876_v10, %v4753_v50 }
 0x1ed   : > { %v1474_v14 = vadd.f32 %v4927_v18, %v1435_v37  ;;  %v5035_v1 = vpop.f32.mrf.mxu1  ;;  %1751 = vrot.lane.b32.xlu1 %v5020_v47, %s3291_s23  ;;  %v1066_v30 = vadd.f32 %v4872_v58, %v4745_v49  ;;  %v1668_v52 = vrot.slane %v5020_v47, 1 }
 0x1ee   : > { %v1309_v23 = vpop.f32.mrf.mxu0 }
 0x1ef   : > { %v5039_v27 = vmax.f32 %v1474_v14, 0.0  ;;  %v1436_v24 = vadd.f32 %v1309_v23, %v1061_v7  ;;  %v1142_v41 = vpop.f32.mrf.mxu1  ;;  %v6339_v7 = vrot.slane %v5020_v47, 7 }
 0x1f0   : > { %v1311_v44 = vpop.f32.mrf.mxu0 }
 0x1f1   : > { %6448 = vst [vmem:[#allocation7_spill] sm:$0xff] %v5039_v27  ;;  %v1573_v29 = vrot.slane %v5039_v27, 7  ;;  %v6338_v39 = vrot.slane %v5039_v27, 1  ;;  %v1475_v37 = vadd.f32 %v4927_v18, %v1436_v24  ;;  %v5047_v8 = vpop.f32.mrf.mxu1  ;;  %1753 = vrot.lane.b32.xlu0 %v5039_v27, %s3291_s23 }
 0x1f2   : > { %v1314_v14 = vpop.f32.mrf.mxu0 }
 0x1f3   : > { %v5052_v23 = vmax.f32 %v1475_v37, 0.0  ;;  %v1437_v49 = vadd.f32 %v1314_v14, %v1066_v30  ;;  %v1147_v58 = vpop.f32.mrf.mxu1  ;;  %v5057_v41 = vsel %vm384_vm0, %v1668_v52, %v6338_v39  ;;  %v5062_v24 = vsel %vm287_vm2, %v6339_v7, %v1573_v29 }
 0x1f4   : > { %6449 = vst [vmem:[#allocation18_spill] sm:$0xff] %v5057_v41  ;;  %v1316_v44 = vpop.f32.mrf.mxu0  ;;  %6450 = vst [vmem:[#allocation14_spill] sm:$0xff] %v5062_v24  ;;  %v1081_v24 = vadd.f32 %v4892_v19, %v4771_v54 }
 0x1f5   : > { %v1476_v2 = vadd.f32 %v4927_v18, %v1437_v49  ;;  %v5067_v37 = vpop.f32.mrf.mxu1  ;;  %1755 = vrot.lane.b32.xlu1 %v5052_v23, %s3291_s23  ;;  %v1076_v44 = vadd.f32 %v4884_v43, %v4762_v6  ;;  %v1671_v39 = vrot.slane %v5052_v23, 1 }
 0x1f6   : > { %v1319_v30 = vpop.f32.mrf.mxu0 }
 0x1f7   : > { %v5071_v14 = vmax.f32 %v1476_v2, 0.0  ;;  %v1438_v52 = vadd.f32 %v1319_v30, %v1071_v0  ;;  %v1152_v58 = vpop.f32.mrf.mxu1  ;;  %v6342_v0 = vrot.slane %v5052_v23, 7 }
 0x1f8   : > { %v1321_v29 = vpop.f32.mrf.mxu0 }
 0x1f9   : > { %v1576_v50 = vrot.slane %v5071_v14, 7  ;;  %v6341_v10 = vrot.slane %v5071_v14, 1  ;;  %v1477_v49 = vadd.f32 %v4927_v18, %v1438_v52  ;;  %v5079_v7 = vpop.f32.mrf.mxu1  ;;  %1757 = vrot.lane.b32.xlu0 %v5071_v14, %s3291_s23 }
 0x1fa   : > { %v1324_v2 = vpop.f32.mrf.mxu0 }
 0x1fb   : > { %v5084_v30 = vmax.f32 %v1477_v49, 0.0  ;;  %v1439_v6 = vadd.f32 %v1324_v2, %v1076_v44  ;;  %v1157_v43 = vpop.f32.mrf.mxu1  ;;  %v5089_v58 = vsel %vm384_vm0, %v1671_v39, %v6341_v10  ;;  %v5094_v52 = vsel %vm287_vm2, %v6342_v0, %v1576_v50 }
 0x1fc   : > { %6451 = vst [vmem:[#allocation8_spill] sm:$0xff] %v5089_v58  ;;  %v1326_v29 = vpop.f32.mrf.mxu0  ;;  %6452 = vst [vmem:[#allocation15_spill] sm:$0xff] %v5094_v52 }
 0x1fd   : > { %v1478_v27 = vadd.f32 %v4927_v18, %v1439_v6  ;;  %v5099_v49 = vpop.f32.mrf.mxu1  ;;  %1759 = vrot.lane.b32.xlu1 %v5084_v30, %s3291_s23  ;;  %v1086_v29 = vadd.f32 %v4900_v28, %v4777_v40  ;;  %v1674_v10 = vrot.slane %v5084_v30, 1 }
 0x1fe   : > { %v1329_v44 = vpop.f32.mrf.mxu0 }
 0x1ff   : > { %v5103_v2 = vmax.f32 %v1478_v27, 0.0  ;;  %v1440_v39 = vadd.f32 %v1329_v44, %v1081_v24  ;;  %v1162_v43 = vpop.f32.mrf.mxu1  ;;  %v6344_v44 = vrot.slane %v5084_v30, 7 }
 0x200   : > { %v1331_v50 = vpop.f32.mrf.mxu0 }
 0x201   : > { %v1579_v54 = vrot.slane %v5103_v2, 7  ;;  %v6343_v19 = vrot.slane %v5103_v2, 1  ;;  %v1479_v6 = vadd.f32 %v4927_v18, %v1440_v39  ;;  %v1165_v0 = vpop.f32.mrf.mxu1  ;;  %1761 = vrot.lane.b32.xlu0 %v5103_v2, %s3291_s23 }
 0x202   : > { %v5114_v27 = vadd.f32 %v1165_v0, %v4902_v33  ;;  %v1334_v24 = vpop.f32.mrf.mxu0  ;;  %v1091_v33 = vadd.f32 %v4904_v35, %v4784_v4 }
 0x203   : > { %v5117_v40 = vmax.f32 %v1479_v6, 0.0  ;;  %v1441_v28 = vadd.f32 %v1334_v24, %v1086_v29  ;;  %v1167_v43 = vpop.f32.mrf.mxu1  ;;  %v5122_v50 = vsel %vm384_vm0, %v1674_v10, %v6343_v19  ;;  %v5127_v52 = vsel %vm287_vm2, %v6344_v44, %v1579_v54 }
 0x204   : > { %6453 = vst [vmem:[#allocation9_spill] sm:$0xff] %v5122_v50  ;;  %v1336_v39 = vpop.f32.mrf.mxu0  ;;  %6454 = vst [vmem:[#allocation10_spill] sm:$0xff] %v5127_v52  ;;  %v1096_v54 = vadd.f32 %v4915_v48, %v4794_v51 }
 0x205   : > { %v1480_v0 = vadd.f32 %v4927_v18, %v1441_v28  ;;  %v1170_v6 = vpop.f32.mrf.mxu1  ;;  %1763 = vrot.lane.b32.xlu1 %v5117_v40, %s3291_s23  ;;  %v1677_v4 = vrot.slane %v5117_v40, 1 }
 0x206   : > { %v5135_v29 = vadd.f32 %v1170_v6, %v4909_v45  ;;  %v1339_v10 = vpop.f32.mrf.mxu0 }
 0x207   : > { %v5137_v24 = vmax.f32 %v1480_v0, 0.0  ;;  %v1442_v43 = vadd.f32 %v1339_v10, %v1091_v33  ;;  %v1172_v39 = vpop.f32.mrf.mxu1  ;;  %v6360_v0 = vrot.slane %v5117_v40, 7 }
 0x208   : > { %v1341_v19 = vpop.f32.mrf.mxu0 }
 0x209   : > { %v1582_v35 = vrot.slane %v5137_v24, 7  ;;  %v6357_v28 = vrot.slane %v5137_v24, 1  ;;  %v1481_v44 = vadd.f32 %v4927_v18, %v1442_v43  ;;  %v1175_v52 = vpop.f32.mrf.mxu1  ;;  %1765 = vrot.lane.b32.xlu0 %v5137_v24, %s3291_s23 }
 0x20a   : > { %v5148_v45 = vadd.f32 %v1175_v52, %v4918_v46  ;;  %v1344_v33 = vpop.f32.mrf.mxu0  ;;  %v1101_v46 = vadd.f32 %v4922_v55, %v4806_v12 }
 0x20b   : > { %v5151_v51 = vmax.f32 %v1481_v44, 0.0  ;;  %v1443_v48 = vadd.f32 %v1344_v33, %v1096_v54  ;;  %v1177_v19 = vpop.f32.mrf.mxu1  ;;  %v5156_v6 = vsel %vm384_vm0, %v1677_v4, %v6357_v28  ;;  %v5161_v43 = vsel %vm287_vm2, %v6360_v0, %v1582_v35 }
 0x20c   : > { %6455 = vst [vmem:[#allocation19_spill] sm:$0xff] %v5156_v6  ;;  %v1346_v10 = vpop.f32.mrf.mxu0  ;;  %v1106_v4 = vadd.f32 %v4932_v56, %v4815_v15 }
 0x20d   : > { %v1482_v52 = vadd.f32 %v4927_v18, %v1443_v48  ;;  %1767 = vrot.lane.b32.xlu1 %v5151_v51, %s3291_s23  ;;  %v1680_v19 = vrot.slane %v5151_v51, 1  ;;  %v6346_v48 = vrot.slane %v5151_v51, 7 }
 0x20e   : > { %v1349_v44 = vpop.f32.mrf.mxu0 }
 0x20f   : > { %v5168_v39 = vmax.f32 %v1482_v52, 0.0  ;;  %v1444_v54 = vadd.f32 %v1349_v44, %v1101_v46 }
 0x210   : > { %v1351_v33 = vpop.f32.mrf.mxu0 }
 0x211   : > { %v1585_v35 = vrot.slane %v5168_v39, 7  ;;  %v6345_v10 = vrot.slane %v5168_v39, 1  ;;  %v1483_v12 = vadd.f32 %v4927_v18, %v1444_v54  ;;  %1769 = vrot.lane.b32.xlu0 %v5168_v39, %s3291_s23  ;;  %v1111_v54 = vadd.f32 %v4939_v31, %v4825_v42 }
 0x212   : > { %v1354_v55 = vpop.f32.mrf.mxu0 }
 0x213   : > { %v5179_v52 = vmax.f32 %v1483_v12, 0.0  ;;  %v1445_v46 = vadd.f32 %v1354_v55, %v1106_v4  ;;  %v5184_v15 = vsel %vm384_vm0, %v1680_v19, %v6345_v10  ;;  %v5189_v44 = vsel %vm287_vm2, %v6346_v48, %v1585_v35 }
 0x214   : > { %v1356_v56 = vpop.f32.mrf.mxu0  ;;  %v1116_v19 = vadd.f32 %v4951_v13, %v4833_v32 }
 0x215   : > { %v1484_v33 = vadd.f32 %v4927_v18, %v1445_v46  ;;  %1771 = vrot.lane.b32.xlu1 %v5179_v52, %s3291_s23  ;;  %v1683_v10 = vrot.slane %v5179_v52, 1  ;;  %v6348_v46 = vrot.slane %v5179_v52, 7 }
 0x216   : > { %v1359_v4 = vpop.f32.mrf.mxu0 }
 0x217   : > { %v5196_v12 = vmax.f32 %v1484_v33, 0.0  ;;  %v1446_v55 = vadd.f32 %v1359_v4, %v1111_v54 }
 0x218   : > { %v1361_v56 = vpop.f32.mrf.mxu0 }
 0x219   : > { %v1588_v35 = vrot.slane %v5196_v12, 7  ;;  %v6347_v48 = vrot.slane %v5196_v12, 1  ;;  %v1485_v42 = vadd.f32 %v4927_v18, %v1446_v55  ;;  %1773 = vrot.lane.b32.xlu0 %v5196_v12, %s3291_s23  ;;  %v1121_v55 = vadd.f32 %v4971_v22, %v4841_v21 }
 0x21a   : > { %v1364_v31 = vpop.f32.mrf.mxu0 }
 0x21b   : > { %v5207_v33 = vmax.f32 %v1485_v42, 0.0  ;;  %v1447_v54 = vadd.f32 %v1364_v31, %v1116_v19  ;;  %v5212_v32 = vsel %vm384_vm0, %v1683_v10, %v6347_v48  ;;  %v5217_v4 = vsel %vm287_vm2, %v6348_v46, %v1588_v35 }
 0x21c   : > { %v1366_v13 = vpop.f32.mrf.mxu0  ;;  %v1126_v10 = vadd.f32 %v4983_v17, %v4846_v20 }
 0x21d   : > { %v1486_v56 = vadd.f32 %v4927_v18, %v1447_v54  ;;  %1775 = vrot.lane.b32.xlu1 %v5207_v33, %s3291_s23  ;;  %v1686_v48 = vrot.slane %v5207_v33, 1  ;;  %v6350_v54 = vrot.slane %v5207_v33, 7 }
 0x21e   : > { %v1369_v19 = vpop.f32.mrf.mxu0 }
 0x21f   : > { %v5224_v42 = vmax.f32 %v1486_v56, 0.0  ;;  %v1448_v31 = vadd.f32 %v1369_v19, %v1121_v55 }
 0x220   : > { %v1371_v13 = vpop.f32.mrf.mxu0 }
 0x221   : > { %v1591_v35 = vrot.slane %v5224_v42, 7  ;;  %v6349_v46 = vrot.slane %v5224_v42, 1  ;;  %v1487_v21 = vadd.f32 %v4927_v18, %v1448_v31  ;;  %1777 = vrot.lane.b32.xlu0 %v5224_v42, %s3291_s23  ;;  %v1131_v31 = vadd.f32 %v5003_v34, %v4853_v63 }
 0x222   : > { %v1374_v22 = vpop.f32.mrf.mxu0 }
 0x223   : > { %v5235_v56 = vmax.f32 %v1487_v21, 0.0  ;;  %v1449_v55 = vadd.f32 %v1374_v22, %v1126_v10  ;;  %v5240_v20 = vsel %vm384_vm0, %v1686_v48, %v6349_v46  ;;  %v5245_v19 = vsel %vm287_vm2, %v6350_v54, %v1591_v35 }
 0x224   : > { %v1376_v17 = vpop.f32.mrf.mxu0  ;;  %v1136_v48 = vadd.f32 %v5015_v38, %v4861_v61 }
 0x225   : > { %v1488_v13 = vadd.f32 %v4927_v18, %v1449_v55  ;;  %1779 = vrot.lane.b32.xlu1 %v5235_v56, %s3291_s23  ;;  %v1689_v46 = vrot.slane %v5235_v56, 1  ;;  %v6352_v55 = vrot.slane %v5235_v56, 7 }
 0x226   : > { %v1379_v10 = vpop.f32.mrf.mxu0 }
 0x227   : > { %v5252_v21 = vmax.f32 %v1488_v13, 0.0  ;;  %v1450_v22 = vadd.f32 %v1379_v10, %v1131_v31 }
 0x228   : > { %v1381_v17 = vpop.f32.mrf.mxu0 }
 0x229   : > { %v1594_v35 = vrot.slane %v5252_v21, 7  ;;  %v6351_v54 = vrot.slane %v5252_v21, 1  ;;  %v1489_v63 = vadd.f32 %v4927_v18, %v1450_v22  ;;  %1781 = vrot.lane.b32.xlu0 %v5252_v21, %s3291_s23  ;;  %v1141_v22 = vadd.f32 %v5035_v1, %v4869_v5 }
 0x22a   : > { %v1384_v34 = vpop.f32.mrf.mxu0 }
 0x22b   : > { %v5263_v13 = vmax.f32 %v1489_v63, 0.0  ;;  %v1451_v31 = vadd.f32 %v1384_v34, %v1136_v48  ;;  %v5268_v61 = vsel %vm384_vm0, %v1689_v46, %v6351_v54  ;;  %v5273_v10 = vsel %vm287_vm2, %v6352_v55, %v1594_v35 }
 0x22c   : > { %v1386_v38 = vpop.f32.mrf.mxu0  ;;  %v1146_v46 = vadd.f32 %v5047_v8, %v4874_v11 }
 0x22d   : > { %v1490_v17 = vadd.f32 %v4927_v18, %v1451_v31  ;;  %1783 = vrot.lane.b32.xlu1 %v5263_v13, %s3291_s23  ;;  %v1692_v54 = vrot.slane %v5263_v13, 1  ;;  %v6354_v31 = vrot.slane %v5263_v13, 7 }
 0x22e   : > { %v1389_v48 = vpop.f32.mrf.mxu0 }
 0x22f   : > { %v5280_v63 = vmax.f32 %v1490_v17, 0.0  ;;  %v1452_v34 = vadd.f32 %v1389_v48, %v1141_v22 }
 0x230   : > { %v1391_v38 = vpop.f32.mrf.mxu0 }
 0x231   : > { %v1597_v35 = vrot.slane %v5280_v63, 7  ;;  %v6353_v55 = vrot.slane %v5280_v63, 1  ;;  %v1491_v5 = vadd.f32 %v4927_v18, %v1452_v34  ;;  %1785 = vrot.lane.b32.xlu0 %v5280_v63, %s3291_s23  ;;  %v1151_v34 = vadd.f32 %v5067_v37, %v4881_v26 }
 0x232   : > { %v1394_v1 = vpop.f32.mrf.mxu0 }
 0x233   : > { %v5291_v17 = vmax.f32 %v1491_v5, 0.0  ;;  %v1453_v22 = vadd.f32 %v1394_v1, %v1146_v46  ;;  %v5296_v11 = vsel %vm384_vm0, %v1692_v54, %v6353_v55  ;;  %v5301_v48 = vsel %vm287_vm2, %v6354_v31, %v1597_v35 }
 0x234   : > { %v1396_v8 = vpop.f32.mrf.mxu0  ;;  %v1156_v54 = vadd.f32 %v5079_v7, %v4889_v53 }
 0x235   : > { %v1492_v38 = vadd.f32 %v4927_v18, %v1453_v22  ;;  %1787 = vrot.lane.b32.xlu1 %v5291_v17, %s3291_s23  ;;  %v1695_v55 = vrot.slane %v5291_v17, 1  ;;  %v6356_v22 = vrot.slane %v5291_v17, 7 }
 0x236   : > { %v1399_v46 = vpop.f32.mrf.mxu0 }
 0x237   : > { %v5308_v5 = vmax.f32 %v1492_v38, 0.0  ;;  %v1454_v1 = vadd.f32 %v1399_v46, %v1151_v34 }
 0x238   : > { %v1401_v8 = vpop.f32.mrf.mxu0 }
 0x239   : > { %v1600_v35 = vrot.slane %v5308_v5, 7  ;;  %v6355_v31 = vrot.slane %v5308_v5, 1  ;;  %v1493_v26 = vadd.f32 %v4927_v18, %v1454_v1  ;;  %1789 = vrot.lane.b32.xlu0 %v5308_v5, %s3291_s23  ;;  %v1161_v1 = vadd.f32 %v5099_v49, %v4897_v3 }
 0x23a   : > { %v1404_v37 = vpop.f32.mrf.mxu0 }
 0x23b   : > { %v5319_v38 = vmax.f32 %v1493_v26, 0.0  ;;  %v1455_v34 = vadd.f32 %v1404_v37, %v1156_v54  ;;  %v5324_v53 = vsel %vm384_vm0, %v1695_v55, %v6355_v31  ;;  %v5329_v46 = vsel %vm287_vm2, %v6356_v22, %v1600_v35 }
 0x23c   : > { %v1406_v7 = vpop.f32.mrf.mxu0 }
 0x23d   : > { %v1494_v8 = vadd.f32 %v4927_v18, %v1455_v34  ;;  %1791 = vrot.lane.b32.xlu1 %v5319_v38, %s3291_s23  ;;  %v1698_v7 = vrot.slane %v5319_v38, 1  ;;  %v6359_v49 = vrot.slane %v5319_v38, 7 }
 0x23e   : > { %v1409_v54 = vpop.f32.mrf.mxu0 }
 0x23f   : > { %v5336_v26 = vmax.f32 %v1494_v8, 0.0  ;;  %v1456_v37 = vadd.f32 %v1409_v54, %v1161_v1 }
 0x240   : > { %v1411_v55 = vpop.f32.mrf.mxu0 }
 0x241   : > { %v1603_v31 = vrot.slane %v5336_v26, 7  ;;  %v6358_v35 = vrot.slane %v5336_v26, 1  ;;  %v1495_v22 = vadd.f32 %v4927_v18, %v1456_v37  ;;  %1793 = vrot.lane.b32.xlu0 %v5336_v26, %s3291_s23 }
 0x242   : > { %v1414_v3 = vpop.f32.mrf.mxu0 }
 0x243   : > { %v5345_v34 = vmax.f32 %v1495_v22, 0.0  ;;  %v1457_v8 = vadd.f32 %v1414_v3, %v5114_v27  ;;  %v5351_v1 = vsel %vm384_vm0, %v1698_v7, %v6358_v35  ;;  %v5356_v37 = vsel %vm287_vm2, %v6359_v49, %v1603_v31  ;;  %v2460_v31 = vld [vmem:[%s6270_s3 + $0x1f8] sm:$0xff] }
 0x244   : > { %v1416_v54 = vpop.f32.mrf.mxu0  ;;  %v6456_v7 = vrot.slane %v4934_v25, 7 }
 0x245   : > { %v1496_v55 = vadd.f32 %v4927_v18, %v1457_v8  ;;  %1795 = vrot.lane.b32.xlu1 %v5345_v34, %s3291_s23  ;;  %v1701_v49 = vrot.slane %v5345_v34, 1 }
 0x246   : > { %v1419_v22 = vpop.f32.mrf.mxu0  ;;  %v1643_v54 = vsel %vm287_vm2, 0.0, %v6456_v7  ;;  %v6362_v7 = vrot.slane %v5345_v34, 7 }
 0x247   : > { %v5361_v28 = vmax.f32 %v1496_v55, 0.0  ;;  %v1458_v27 = vadd.f32 %v1419_v22, %v5135_v29  ;;  %v1740_v3 = vpop.permute.xlu1 %1739  ;;  %v6457_v22 = vrot.slane %v4943_v36, 1 }
 0x248   : > { %v1829_v35 = vsel %vm559_vm1, %v1643_v54, %v1740_v3  ;;  %v1421_v8 = vpop.f32.mrf.mxu0 }
 0x249   : > { %v1606_v0 = vrot.slane %v5361_v28, 7  ;;  %v6361_v55 = vrot.slane %v5361_v28, 1  ;;  %v1497_v29 = vadd.f32 %v4927_v18, %v1458_v27  ;;  %2060 = vmatmul.mubr.f32.vlgmr.msra.gmra.mxu1 %v1829_v35  ;;  %2295 = vmatmul.mubr.f32.gmra.mxu0 %v1829_v35  ;;  %v1723_v3 = vsel %vm384_vm0, %v6457_v22, 0.0 }
 0x24a   : > { %2470 = vmatpush1.msra.mxu1 %v2460_v31  ;;  %1797 = vrot.lane.b32.xlu0 %v5361_v28, %s3291_s23  ;;  %v1424_v25 = vpop.f32.mrf.mxu0  ;;  %v6459_v22 = vrot.slane %v4956_v57, 7 }
 0x24b   : > { %v5381_v54 = vmax.f32 %v1497_v29, 0.0  ;;  %v1459_v8 = vadd.f32 %v1424_v25, %v5148_v45  ;;  %3078 = vmatprep.mubr.msk.f32.mxu1 %vm559_vm1, %v1723_v3  ;;  %3114 = vmatprep.mubr.msk.f32.mxu0 %vm559_vm1, %v1723_v3  ;;  %v1742_v35 = vpop.permute.xlu0 %1741  ;;  %v5389_v27 = vsel %vm384_vm0, %v1701_v49, %v6361_v55  ;;  %v2459_v45 = vld [vmem:[%s6270_s3 + $0x1f0] sm:$0xff]  ;;  %v5400_v29 = vsel %vm287_vm2, %v6362_v7, %v1606_v0  ;;  %v6463_v7 = vld [vmem:[#allocation12_spill] sm:$0xff] }
 0x24c   : > { %v1426_v31 = vpop.f32.mrf.mxu0  ;;  %v1830_v36 = vsel %vm559_vm1, %v4966_v16, %v1742_v35  ;;  %2471 = vmatprep.subr.mxu1 %v6387_v9  ;;  %v6460_v35 = vld [vmem:[#allocation5_spill] sm:$0xff] }
 0x24d   : > { %v1498_v25 = vadd.f32 %v4927_v18, %v1459_v8  ;;  %2065 = vmatmul.mubr.f32.gmra.mxu1 %v1830_v36  ;;  %2300 = vmatmul.mubr.f32.gmra.mxu0 %v1830_v36  ;;  %v1644_v18 = vsel %vm287_vm2, 0.0, %v6459_v22  ;;  %v6461_v31 = vrot.slane %v6460_v35, 1 }
 0x24e   : > { %1883 = vrot.lane.b32.xlu1 %v5381_v54, %s3291_s23  ;;  %3079 = vmatprep.mubr.msk.f32.mxu1 %vm559_vm1, %v4993_v60  ;;  %v5407_v16 = vpop.f32.mrf.mxu0 }
 0x24f   : > { %6458 = vst [vmem:[#allocation17_spill] sm:$0xff] %v5407_v16  ;;  %v5409_v49 = vmax.f32 %v1498_v25, 0.0  ;;  %3115 = vmatprep.mubr.msk.f32.mxu0 %vm559_vm1, %v4993_v60  ;;  %2472 = vmatpush1.msra.mxu1 %v2459_v45  ;;  %v1744_v0 = vpop.permute.xlu1 %1743  ;;  %v5422_v36 = vsel %vm384_vm0, %v6461_v31, 0.0  ;;  %v2458_v45 = vld [vmem:[%s6270_s3 + $0x1e8] sm:$0xff]  ;;  %v1704_v25 = vrot.slane %v5381_v54, 1 }
 0x250   : > { %v2288_v3 = vpop.f32.mrf.mxu0  ;;  %v5417_v8 = vsel %vm559_vm1, %v1644_v18, %v1744_v0  ;;  %2473 = vmatprep.subr.mxu1 %v6387_v9  ;;  %v6364_v0 = vrot.slane %v5381_v54, 7 }
 0x251   : > { %v1609_v57 = vrot.slane %v5409_v49, 7  ;;  %v6363_v22 = vrot.slane %v5409_v49, 1  ;;  %2070 = vmatmul.mubr.f32.gmra.mxu1 %v5417_v8  ;;  %2305 = vmatmul.mubr.f32.gmra.mxu0 %v5417_v8 }
 0x252   : > { %1885 = vrot.lane.b32.xlu0 %v5409_v49, %s3291_s23  ;;  %3080 = vmatprep.mubr.msk.f32.mxu1 %vm559_vm1, %v5422_v36  ;;  %v5438_v18 = vpop.f32.mrf.mxu0  ;;  %s2907_s23 = sshll.u32 %s6090_s6, 4  ;;  %s6221_s23 = int_to_ptr.vmem [resolvable:$true] %s2907_s23 }
 0x253   : > { %6462 = vst [vmem:[#allocation11_spill] sm:$0xff] %v5438_v18  ;;  %3116 = vmatprep.mubr.msk.f32.mxu0 %vm559_vm1, %v5422_v36  ;;  %v1746_v3 = vpop.permute.xlu0 %1745  ;;  %2474 = vmatpush1.msra.mxu1 %v2458_v45  ;;  %v5445_v35 = vsel %vm384_vm0, %v1704_v25, %v6363_v22  ;;  %v5450_v31 = vsel %vm287_vm2, %v6364_v0, %v1609_v57  ;;  %v2457_v45 = vld [vmem:[%s6270_s3 + $0x1e0] sm:$0xff]  ;;  %v6465_v22 = vld [vmem:[#allocation6_spill] sm:$0xff]  ;;  %v6469_v18 = vld [vmem:[#allocation7_spill] sm:$0xff]  ;;  %s3228_s10 = scalar_lea.vmem %s6221_s23, 4096  ;;  %p3235_p0 = scmp.lt.s32.totalorder %s6221_s23, %s3233_s12 }
 0x254   : > { %v2293_v55 = vpop.f32.mrf.mxu0  ;;  %v5454_v16 = vsel %vm559_vm1, %v6463_v7, %v1746_v3  ;;  %2475 = vmatprep.subr.mxu1 %v6387_v9  ;;  %v6464_v7 = vrot.slane %v4988_v62, 7  ;;  %v2456_v3 = vld [vmem:[%s6270_s3 + $0x1d8] sm:$0xff]  ;;  %v6466_v0 = vrot.slane %v6465_v22, 1  ;;  %v2455_v22 = vld [vmem:[%s6270_s3 + $0x1d0] sm:$0xff]  ;;  %p3229_p11 = scmp.ne.s32.totalorder %s6221_s23, %s3228_s10  ;;  %p3236_p1 = scmp.lt.s32.totalorder %s3234_s13, %s3228_s10 }
 0x255   : > { %2075 = vmatmul.mubr.f32.gmra.mxu1 %v5454_v16  ;;  %2310 = vmatmul.mubr.f32.gmra.mxu0 %v5454_v16 }
 0x256   : > { %3081 = vmatprep.mubr.msk.f32.mxu1 %vm559_vm1, %v5025_v59  ;;  %3117 = vmatprep.mubr.msk.f32.mxu0 %vm559_vm1, %v5025_v59  ;;  %v1645_v25 = vsel %vm287_vm2, 0.0, %v6464_v7  ;;  %v5481_v62 = vsel %vm384_vm0, %v6466_v0, 0.0  ;;  %p3230_p12 = pnand %p3229_p11, %p3363_p5  ;;  %p3237_p2 = por %p3236_p1, %p3235_p0 }
 0x257   : > { %v1748_v55 = vpop.permute.xlu1 %1747  ;;  %2476 = vmatpush1.msra.mxu1 %v2457_v45 }
 0x258   : > { %v5470_v57 = vsel %vm559_vm1, %v1645_v25, %v1748_v55  ;;  %2477 = vmatprep.subr.mxu1 %v6387_v9  ;;  %v6467_v55 = vld [vmem:[#allocation13_spill] sm:$0xff]  ;;  %v6468_v25 = vrot.slane %v5020_v47, 7  ;;  %p3231_p13 = pneg %p3230_p12 }
 0x259   : > { %2080 = vmatmul.mubr.f32.gmra.mxu1 %v5470_v57  ;;  %2315 = vmatmul.mubr.f32.gmra.mxu0 %v5470_v57 }
 0x25a   : > { %3082 = vmatprep.mubr.msk.f32.mxu1 %vm559_vm1, %v5481_v62  ;;  %3118 = vmatprep.mubr.msk.f32.mxu0 %vm559_vm1, %v5481_v62  ;;  %p3238_p3 = pnand %p3237_p2, %p3231_p13 }
 0x25b   : > { %v1750_v45 = vpop.permute.xlu0 %1749  ;;  %2478 = vmatpush1.msra.mxu1 %v2456_v3  ;;  %v1646_v3 = vsel %vm287_vm2, 0.0, %v6468_v25 }
 0x25c   : > { %v5489_v7 = vsel %vm559_vm1, %v6467_v55, %v1750_v45  ;;  %2479 = vmatprep.subr.mxu1 %v6387_v9  ;;  %v2454_v55 = vld [vmem:[%s6270_s3 + $0x1c8] sm:$0xff] }
 0x25d   : > { %2085 = vmatmul.mubr.f32.gmra.mxu1 %v5489_v7  ;;  %2320 = vmatmul.mubr.f32.gmra.mxu0 %v5489_v7 }
 0x25e   : > { %3083 = vmatprep.mubr.msk.f32.mxu1 %vm559_vm1, %v5057_v41  ;;  %3119 = vmatprep.mubr.msk.f32.mxu0 %vm559_vm1, %v5057_v41  ;;  %v6470_v41 = vrot.slane %v6469_v18, 1  ;;  %v2453_v18 = vld [vmem:[%s6270_s3 + $0x1c0] sm:$0xff] }
 0x25f   : > { %v1752_v0 = vpop.permute.xlu1 %1751  ;;  %2480 = vmatpush1.msra.mxu1 %v2455_v22 }
 0x260   : > { %v5505_v45 = vsel %vm559_vm1, %v1646_v3, %v1752_v0  ;;  %2481 = vmatprep.subr.mxu1 %v6387_v9  ;;  %v5516_v47 = vsel %vm384_vm0, %v6470_v41, 0.0  ;;  %v6471_v0 = vld [vmem:[#allocation14_spill] sm:$0xff]  ;;  %v6472_v3 = vrot.slane %v5052_v23, 7 }
 0x261   : > { %2090 = vmatmul.mubr.f32.gmra.mxu1 %v5505_v45  ;;  %2325 = vmatmul.mubr.f32.gmra.mxu0 %v5505_v45 }
 0x262   : > { %3084 = vmatprep.mubr.msk.f32.mxu1 %vm559_vm1, %v5516_v47  ;;  %3120 = vmatprep.mubr.msk.f32.mxu0 %vm559_vm1, %v5516_v47 }
 0x263   : > { %v1754_v22 = vpop.permute.xlu0 %1753  ;;  %2482 = vmatpush1.msra.mxu1 %v2454_v55  ;;  %v1647_v55 = vsel %vm287_vm2, 0.0, %v6472_v3 }
 0x264   : > { %v5524_v25 = vsel %vm559_vm1, %v6471_v0, %v1754_v22  ;;  %2483 = vmatprep.subr.mxu1 %v6387_v9  ;;  %v2452_v0 = vld [vmem:[%s6270_s3 + $0x1b8] sm:$0xff] }
 0x265   : > { %2095 = vmatmul.mubr.f32.gmra.mxu1 %v5524_v25  ;;  %2330 = vmatmul.mubr.f32.gmra.mxu0 %v5524_v25 }
 0x266   : > { %3085 = vmatprep.mubr.msk.f32.mxu1 %vm559_vm1, %v5089_v58  ;;  %3121 = vmatprep.mubr.msk.f32.mxu0 %vm559_vm1, %v5089_v58  ;;  %v6473_v58 = vrot.slane %v5071_v14, 1  ;;  %v2451_v14 = vld [vmem:[%s6270_s3 + $0x1b0] sm:$0xff] }
 0x267   : > { %v1756_v41 = vpop.permute.xlu1 %1755  ;;  %2484 = vmatpush1.msra.mxu1 %v2453_v18 }
 0x268   : > { %v5540_v22 = vsel %vm559_vm1, %v1647_v55, %v1756_v41  ;;  %2485 = vmatprep.subr.mxu1 %v6387_v9  ;;  %v5551_v23 = vsel %vm384_vm0, %v6473_v58, 0.0  ;;  %v6474_v41 = vld [vmem:[#allocation15_spill] sm:$0xff]  ;;  %v6475_v55 = vrot.slane %v5084_v30, 7 }
 0x269   : > { %2100 = vmatmul.mubr.f32.gmra.mxu1 %v5540_v22  ;;  %2335 = vmatmul.mubr.f32.gmra.mxu0 %v5540_v22 }
 0x26a   : > { %3086 = vmatprep.mubr.msk.f32.mxu1 %vm559_vm1, %v5551_v23  ;;  %3122 = vmatprep.mubr.msk.f32.mxu0 %vm559_vm1, %v5551_v23 }
 0x26b   : > { %v1758_v18 = vpop.permute.xlu0 %1757  ;;  %2486 = vmatpush1.msra.mxu1 %v2452_v0  ;;  %v1648_v0 = vsel %vm287_vm2, 0.0, %v6475_v55 }
 0x26c   : > { %v5559_v3 = vsel %vm559_vm1, %v6474_v41, %v1758_v18  ;;  %2487 = vmatprep.subr.mxu1 %v6387_v9  ;;  %v2450_v41 = vld [vmem:[%s6270_s3 + $0x1a8] sm:$0xff] }
 0x26d   : > { %2105 = vmatmul.mubr.f32.gmra.mxu1 %v5559_v3  ;;  %2340 = vmatmul.mubr.f32.gmra.mxu0 %v5559_v3 }
 0x26e   : > { %3087 = vmatprep.mubr.msk.f32.mxu1 %vm559_vm1, %v5122_v50  ;;  %3123 = vmatprep.mubr.msk.f32.mxu0 %vm559_vm1, %v5122_v50  ;;  %v6476_v50 = vrot.slane %v5103_v2, 1  ;;  %v2449_v2 = vld [vmem:[%s6270_s3 + $0x1a0] sm:$0xff] }
 0x26f   : > { %v1760_v58 = vpop.permute.xlu1 %1759  ;;  %2488 = vmatpush1.msra.mxu1 %v2451_v14 }
 0x270   : > { %v5575_v18 = vsel %vm559_vm1, %v1648_v0, %v1760_v58  ;;  %2489 = vmatprep.subr.mxu1 %v6387_v9  ;;  %v5586_v30 = vsel %vm384_vm0, %v6476_v50, 0.0  ;;  %v6477_v58 = vld [vmem:[#allocation10_spill] sm:$0xff]  ;;  %v6478_v0 = vrot.slane %v5117_v40, 7 }
 0x271   : > { %2110 = vmatmul.mubr.f32.gmra.mxu1 %v5575_v18  ;;  %2345 = vmatmul.mubr.f32.gmra.mxu0 %v5575_v18 }
 0x272   : > { %3088 = vmatprep.mubr.msk.f32.mxu1 %vm559_vm1, %v5586_v30  ;;  %3124 = vmatprep.mubr.msk.f32.mxu0 %vm559_vm1, %v5586_v30 }
 0x273   : > { %v1762_v14 = vpop.permute.xlu0 %1761  ;;  %2490 = vmatpush1.msra.mxu1 %v2450_v41  ;;  %v1649_v41 = vsel %vm287_vm2, 0.0, %v6478_v0 }
 0x274   : > { %v5594_v55 = vsel %vm559_vm1, %v6477_v58, %v1762_v14  ;;  %2491 = vmatprep.subr.mxu1 %v6387_v9  ;;  %v2448_v58 = vld [vmem:[%s6270_s3 + $0x198] sm:$0xff] }
 0x275   : > { %2115 = vmatmul.mubr.f32.gmra.mxu1 %v5594_v55  ;;  %2350 = vmatmul.mubr.f32.gmra.mxu0 %v5594_v55 }
 0x276   : > { %3089 = vmatprep.mubr.msk.f32.mxu1 %vm559_vm1, %v5156_v6  ;;  %3125 = vmatprep.mubr.msk.f32.mxu0 %vm559_vm1, %v5156_v6  ;;  %v6479_v6 = vrot.slane %v5137_v24, 1  ;;  %v2447_v24 = vld [vmem:[%s6270_s3 + $0x190] sm:$0xff] }
 0x277   : > { %v1764_v50 = vpop.permute.xlu1 %1763  ;;  %2492 = vmatpush1.msra.mxu1 %v2449_v2 }
 0x278   : > { %v5610_v14 = vsel %vm559_vm1, %v1649_v41, %v1764_v50  ;;  %2493 = vmatprep.subr.mxu1 %v6387_v9  ;;  %v5621_v40 = vsel %vm384_vm0, %v6479_v6, 0.0 }
 0x279   : > { %2120 = vmatmul.mubr.f32.gmra.mxu1 %v5610_v14  ;;  %2355 = vmatmul.mubr.f32.gmra.mxu0 %v5610_v14 }
 0x27a   : > { %3090 = vmatprep.mubr.msk.f32.mxu1 %vm559_vm1, %v5621_v40  ;;  %3126 = vmatprep.mubr.msk.f32.mxu0 %vm559_vm1, %v5621_v40 }
 0x27b   : > { %v1766_v2 = vpop.permute.xlu0 %1765  ;;  %2494 = vmatpush1.msra.mxu1 %v2448_v58  ;;  %v2446_v58 = vld [vmem:[%s6270_s3 + $0x188] sm:$0xff] }
 0x27c   : > { %v5629_v50 = vsel %vm559_vm1, %v5161_v43, %v1766_v2  ;;  %2495 = vmatprep.subr.mxu1 %v6387_v9  ;;  %v6480_v43 = vrot.slane %v5151_v51, 7  ;;  %v6481_v2 = vrot.slane %v5168_v39, 1  ;;  %v2445_v39 = vld [vmem:[%s6270_s3 + $0x180] sm:$0xff] }
 0x27d   : > { %2125 = vmatmul.mubr.f32.gmra.mxu1 %v5629_v50  ;;  %2360 = vmatmul.mubr.f32.gmra.mxu0 %v5629_v50 }
 0x27e   : > { %3091 = vmatprep.mubr.msk.f32.mxu1 %vm559_vm1, %v5184_v15  ;;  %3127 = vmatprep.mubr.msk.f32.mxu0 %vm559_vm1, %v5184_v15  ;;  %v1650_v0 = vsel %vm287_vm2, 0.0, %v6480_v43  ;;  %v5656_v51 = vsel %vm384_vm0, %v6481_v2, 0.0  ;;  %v2468_v2 = vld [vmem:[%s6270_s3 + $0x238] sm:$0xff] }
 0x27f   : > { %v1768_v6 = vpop.permute.xlu1 %1767  ;;  %2496 = vmatpush1.msra.mxu1 %v2447_v24 }
 0x280   : > { %v5645_v41 = vsel %vm559_vm1, %v1650_v0, %v1768_v6  ;;  %2497 = vmatprep.subr.mxu1 %v6387_v9 }
 0x281   : > { %2130 = vmatmul.mubr.f32.gmra.mxu1 %v5645_v41  ;;  %2365 = vmatmul.mubr.f32.gmra.mxu0 %v5645_v41 }
 0x282   : > { %3092 = vmatprep.mubr.msk.f32.mxu1 %vm559_vm1, %v5656_v51  ;;  %3128 = vmatprep.mubr.msk.f32.mxu0 %vm559_vm1, %v5656_v51 }
 0x283   : > { %v1770_v24 = vpop.permute.xlu0 %1769  ;;  %2498 = vmatpush1.msra.mxu1 %v2446_v58 }
 0x284   : > { %v5664_v6 = vsel %vm559_vm1, %v5189_v44, %v1770_v24  ;;  %2499 = vmatprep.subr.mxu1 %v6387_v9  ;;  %v6482_v44 = vrot.slane %v5179_v52, 7  ;;  %v6483_v24 = vrot.slane %v5196_v12, 1  ;;  %v2467_v12 = vld [vmem:[%s6270_s3 + $0x230] sm:$0xff] }
 0x285   : > { %2135 = vmatmul.mubr.f32.gmra.mxu1 %v5664_v6  ;;  %2370 = vmatmul.mubr.f32.gmra.mxu0 %v5664_v6 }
 0x286   : > { %3093 = vmatprep.mubr.msk.f32.mxu1 %vm559_vm1, %v5212_v32  ;;  %3129 = vmatprep.mubr.msk.f32.mxu0 %vm559_vm1, %v5212_v32  ;;  %v1651_v0 = vsel %vm287_vm2, 0.0, %v6482_v44  ;;  %v5691_v52 = vsel %vm384_vm0, %v6483_v24, 0.0  ;;  %v2466_v24 = vld [vmem:[%s6270_s3 + $0x228] sm:$0xff] }
 0x287   : > { %v1772_v43 = vpop.permute.xlu1 %1771  ;;  %2500 = vmatpush1.msra.mxu1 %v2445_v39 }
 0x288   : > { %v5680_v58 = vsel %vm559_vm1, %v1651_v0, %v1772_v43  ;;  %2517 = vmatprep.subr.mxu1 %v6387_v9 }
 0x289   : > { %2140 = vmatmul.mubr.f32.gmra.mxu1 %v5680_v58  ;;  %2375 = vmatmul.mubr.f32.gmra.mxu0 %v5680_v58 }
 0x28a   : > { %3094 = vmatprep.mubr.msk.f32.mxu1 %vm559_vm1, %v5691_v52  ;;  %3130 = vmatprep.mubr.msk.f32.mxu0 %vm559_vm1, %v5691_v52 }
 0x28b   : > { %v1774_v39 = vpop.permute.xlu0 %1773  ;;  %2518 = vmatpush2.msra.mxu1 %v2468_v2 }
 0x28c   : > { %v5699_v43 = vsel %vm559_vm1, %v5217_v4, %v1774_v39  ;;  %2519 = vmatprep.subr.mxu1 %v6387_v9  ;;  %v6484_v4 = vrot.slane %v5207_v33, 7  ;;  %v6485_v39 = vrot.slane %v5224_v42, 1  ;;  %v2465_v42 = vld [vmem:[%s6270_s3 + $0x220] sm:$0xff] }
 0x28d   : > { %2145 = vmatmul.mubr.f32.gmra.mxu1 %v5699_v43  ;;  %2380 = vmatmul.mubr.f32.gmra.mxu0 %v5699_v43 }
 0x28e   : > { %3095 = vmatprep.mubr.msk.f32.mxu1 %vm559_vm1, %v5240_v20  ;;  %3131 = vmatprep.mubr.msk.f32.mxu0 %vm559_vm1, %v5240_v20  ;;  %v1652_v0 = vsel %vm287_vm2, 0.0, %v6484_v4  ;;  %v5726_v33 = vsel %vm384_vm0, %v6485_v39, 0.0  ;;  %v2464_v39 = vld [vmem:[%s6270_s3 + $0x218] sm:$0xff] }
 0x28f   : > { %v1776_v44 = vpop.permute.xlu1 %1775  ;;  %2520 = vmatpush2.msra.mxu1 %v2467_v12 }
 0x290   : > { %v5715_v2 = vsel %vm559_vm1, %v1652_v0, %v1776_v44  ;;  %2521 = vmatprep.subr.mxu1 %v6387_v9 }
 0x291   : > { %2150 = vmatmul.mubr.f32.gmra.mxu1 %v5715_v2  ;;  %2385 = vmatmul.mubr.f32.gmra.mxu0 %v5715_v2 }
 0x292   : > { %3096 = vmatprep.mubr.msk.f32.mxu1 %vm559_vm1, %v5726_v33  ;;  %3132 = vmatprep.mubr.msk.f32.mxu0 %vm559_vm1, %v5726_v33 }
 0x293   : > { %v1778_v12 = vpop.permute.xlu0 %1777  ;;  %2522 = vmatpush2.msra.mxu1 %v2466_v24 }
 0x294   : > { %v5734_v44 = vsel %vm559_vm1, %v5245_v19, %v1778_v12  ;;  %2523 = vmatprep.subr.mxu1 %v6387_v9  ;;  %v6486_v19 = vrot.slane %v5235_v56, 7  ;;  %v6487_v12 = vrot.slane %v5252_v21, 1  ;;  %v2463_v21 = vld [vmem:[%s6270_s3 + $0x210] sm:$0xff] }
 0x295   : > { %2155 = vmatmul.mubr.f32.gmra.mxu1 %v5734_v44  ;;  %2390 = vmatmul.mubr.f32.gmra.mxu0 %v5734_v44 }
 0x296   : > { %3097 = vmatprep.mubr.msk.f32.mxu1 %vm559_vm1, %v5268_v61  ;;  %3133 = vmatprep.mubr.msk.f32.mxu0 %vm559_vm1, %v5268_v61  ;;  %v1653_v0 = vsel %vm287_vm2, 0.0, %v6486_v19  ;;  %v5761_v56 = vsel %vm384_vm0, %v6487_v12, 0.0  ;;  %v2462_v12 = vld [vmem:[%s6270_s3 + $0x208] sm:$0xff] }
 0x297   : > { %v1780_v4 = vpop.permute.xlu1 %1779  ;;  %2524 = vmatpush2.msra.mxu1 %v2465_v42 }
 0x298   : > { %v5750_v24 = vsel %vm559_vm1, %v1653_v0, %v1780_v4  ;;  %2525 = vmatprep.subr.mxu1 %v6387_v9 }
 0x299   : > { %2160 = vmatmul.mubr.f32.gmra.mxu1 %v5750_v24  ;;  %2395 = vmatmul.mubr.f32.gmra.mxu0 %v5750_v24 }
 0x29a   : > { %3098 = vmatprep.mubr.msk.f32.mxu1 %vm559_vm1, %v5761_v56  ;;  %3134 = vmatprep.mubr.msk.f32.mxu0 %vm559_vm1, %v5761_v56 }
 0x29b   : > { %v1782_v42 = vpop.permute.xlu0 %1781  ;;  %2526 = vmatpush2.msra.mxu1 %v2464_v39 }
 0x29c   : > { %v5769_v4 = vsel %vm559_vm1, %v5273_v10, %v1782_v42  ;;  %2527 = vmatprep.subr.mxu1 %v6387_v9  ;;  %v6488_v10 = vrot.slane %v5263_v13, 7  ;;  %v6489_v42 = vrot.slane %v5280_v63, 1  ;;  %v2461_v63 = vld [vmem:[%s6270_s3 + $0x200] sm:$0xff] }
 0x29d   : > { %2165 = vmatmul.mubr.f32.gmra.mxu1 %v5769_v4  ;;  %2400 = vmatmul.mubr.f32.gmra.mxu0 %v5769_v4 }
 0x29e   : > { %3099 = vmatprep.mubr.msk.f32.mxu1 %vm559_vm1, %v5296_v11  ;;  %3135 = vmatprep.mubr.msk.f32.mxu0 %vm559_vm1, %v5296_v11  ;;  %v1654_v0 = vsel %vm287_vm2, 0.0, %v6488_v10  ;;  %v5796_v13 = vsel %vm384_vm0, %v6489_v42, 0.0  ;;  %v6491_v42 = vrot.slane %v5308_v5, 1 }
 0x29f   : > { %v1784_v19 = vpop.permute.xlu1 %1783  ;;  %2528 = vmatpush2.msra.mxu1 %v2463_v21 }
 0x2a0   : > { %v5785_v39 = vsel %vm559_vm1, %v1654_v0, %v1784_v19  ;;  %2529 = vmatprep.subr.mxu1 %v6387_v9 }
 0x2a1   : > { %2170 = vmatmul.mubr.f32.gmra.mxu1 %v5785_v39  ;;  %2405 = vmatmul.mubr.f32.gmra.mxu0 %v5785_v39 }
 0x2a2   : > { %3100 = vmatprep.mubr.msk.f32.mxu1 %vm559_vm1, %v5796_v13  ;;  %3136 = vmatprep.mubr.msk.f32.mxu0 %vm559_vm1, %v5796_v13 }
 0x2a3   : > { %v1786_v21 = vpop.permute.xlu0 %1785  ;;  %2530 = vmatpush2.msra.mxu1 %v2462_v12 }
 0x2a4   : > { %v5804_v19 = vsel %vm559_vm1, %v5301_v48, %v1786_v21  ;;  %2531 = vmatprep.subr.mxu1 %v6387_v9  ;;  %v6490_v48 = vrot.slane %v5291_v17, 7  ;;  %v5827_v21 = vsel %vm384_vm0, %v6491_v42, 0.0 }
 0x2a5   : > { %2175 = vmatmul.mubr.f32.gmra.mxu1 %v5804_v19  ;;  %2410 = vmatmul.mubr.f32.gmra.mxu0 %v5804_v19 }
 0x2a6   : > { %3101 = vmatprep.mubr.msk.f32.mxu1 %vm559_vm1, %v5324_v53  ;;  %3137 = vmatprep.mubr.msk.f32.mxu0 %vm559_vm1, %v5324_v53  ;;  %v1655_v0 = vsel %vm287_vm2, 0.0, %v6490_v48 }
 0x2a7   : > { %v1788_v10 = vpop.permute.xlu1 %1787  ;;  %2532 = vmatpush2.msra.mxu1 %v2461_v63 }
 0x2a8   : > { %v5820_v12 = vsel %vm559_vm1, %v1655_v0, %v1788_v10  ;;  %v6492_v10 = vrot.slane %v5319_v38, 7 }
 0x2a9   : > { %2180 = vmatmul.mubr.f32.gmra.mxu1 %v5820_v12  ;;  %2415 = vmatmul.mubr.f32.gmra.mxu0 %v5820_v12 }
 0x2aa   : > { %3102 = vmatprep.mubr.msk.f32.mxu1 %vm559_vm1, %v5827_v21  ;;  %3138 = vmatprep.mubr.msk.f32.mxu0 %vm559_vm1, %v5827_v21  ;;  %v1656_v48 = vsel %vm287_vm2, 0.0, %v6492_v10 }
 0x2ab   : > { %v1790_v17 = vpop.permute.xlu0 %1789 }
 0x2ac   : > { %v5835_v63 = vsel %vm559_vm1, %v5329_v46, %v1790_v17  ;;  %v6493_v46 = vrot.slane %v5336_v26, 1 }
 0x2ad   : > { %2185 = vmatmul.mubr.f32.gmra.mxu1 %v5835_v63  ;;  %2420 = vmatmul.mubr.f32.gmra.mxu0 %v5835_v63 }
 0x2ae   : > { %3103 = vmatprep.mubr.msk.f32.mxu1 %vm559_vm1, %v5351_v1  ;;  %3139 = vmatprep.mubr.msk.f32.mxu0 %vm559_vm1, %v5351_v1  ;;  %v5854_v42 = vsel %vm384_vm0, %v6493_v46, 0.0 }
 0x2af   : > { %v1792_v5 = vpop.permute.xlu1 %1791 }
 0x2b0   : > { %v5847_v0 = vsel %vm559_vm1, %v1656_v48, %v1792_v5  ;;  %v6494_v5 = vrot.slane %v5345_v34, 7 }
 0x2b1   : > { %2190 = vmatmul.mubr.f32.gmra.mxu1 %v5847_v0  ;;  %2425 = vmatmul.mubr.f32.gmra.mxu0 %v5847_v0 }
 0x2b2   : > { %3104 = vmatprep.mubr.msk.f32.mxu1 %vm559_vm1, %v5854_v42  ;;  %3140 = vmatprep.mubr.msk.f32.mxu0 %vm559_vm1, %v5854_v42  ;;  %v1657_v10 = vsel %vm287_vm2, 0.0, %v6494_v5 }
 0x2b3   : > { %v1794_v38 = vpop.permute.xlu0 %1793 }
 0x2b4   : > { %v5862_v17 = vsel %vm559_vm1, %v5356_v37, %v1794_v38  ;;  %v6495_v37 = vrot.slane %v5361_v28, 1 }
 0x2b5   : > { %2195 = vmatmul.mubr.f32.gmra.mxu1 %v5862_v17  ;;  %2430 = vmatmul.mubr.f32.gmra.mxu0 %v5862_v17 }
 0x2b6   : > { %3105 = vmatprep.mubr.msk.f32.mxu1 %vm559_vm1, %v5389_v27  ;;  %3141 = vmatprep.mubr.msk.f32.mxu0 %vm559_vm1, %v5389_v27  ;;  %v5881_v46 = vsel %vm384_vm0, %v6495_v37, 0.0 }
 0x2b7   : > { %v1796_v26 = vpop.permute.xlu1 %1795 }
 0x2b8   : > { %v5874_v48 = vsel %vm559_vm1, %v1657_v10, %v1796_v26  ;;  %v6496_v26 = vrot.slane %v5381_v54, 7  ;;  %v6498_v54 = vld [vmem:[#allocation18_spill] sm:$0xff] }
 0x2b9   : > { %2200 = vmatmul.mubr.f32.gmra.mxu1 %v5874_v48  ;;  %2435 = vmatmul.mubr.f32.gmra.mxu0 %v5874_v48 }
 0x2ba   : > { %3106 = vmatprep.mubr.msk.f32.mxu1 %vm559_vm1, %v5881_v46  ;;  %3142 = vmatprep.mubr.msk.f32.mxu0 %vm559_vm1, %v5881_v46  ;;  %v1658_v5 = vsel %vm287_vm2, 0.0, %v6496_v26 }
 0x2bc   : > { %v1798_v34 = vpop.permute.xlu0 %1797 }
 0x2bd   : > { %v5889_v38 = vsel %vm559_vm1, %v5400_v29, %v1798_v34  ;;  %v6497_v29 = vrot.slane %v5409_v49, 1 }
 0x2be   : > { %2205 = vmatmul.mubr.f32.gmra.mxu1 %v5889_v38  ;;  %2440 = vmatmul.mubr.f32.gmra.mxu0 %v5889_v38 }
 0x2bf   : > { %3107 = vmatprep.mubr.msk.f32.mxu1 %vm559_vm1, %v5445_v35  ;;  %v5905_v37 = vsel %vm384_vm0, %v6497_v29, 0.0 }
 0x2c0   : > { %v1884_v28 = vpop.permute.xlu1 %1883 }
 0x2c1   : > { %v5899_v10 = vsel %vm559_vm1, %v1658_v5, %v1884_v28 }
 0x2c2   : > { %2210 = vmatmul.mubr.f32.gmra.mxu1 %v5899_v10 }
 0x2c3   : > { %3108 = vmatprep.mubr.msk.f32.mxu1 %vm559_vm1, %v5905_v37 }
 0x2c4   : > { %v1886_v34 = vpop.permute.xlu0 %1885 }
 0x2c5   : > { %v5911_v9 = vsel %vm559_vm1, %v5450_v31, %v1886_v34 }
 0x2c6   : > { %2215 = vmatmul.mubr.f32.gmra.mxu1 %v5911_v9 }
 0x2c7   : > { %3143 = vmatprep.mubr.msk.f32.mxu1 %vm559_vm1, %v4993_v60  ;;  %v6499_v60 = vld [vmem:[#allocation8_spill] sm:$0xff] }
 0x2ca   : > { %2534 = vmatmul.mubr.f32.vlgmr.msra.gmra.mxu1 %v5417_v8 }
 0x2cb   : > { %3144 = vmatprep.mubr.msk.f32.mxu1 %vm559_vm1, %v5422_v36 }
 0x2ce   : > { %2539 = vmatmul.mubr.f32.gmra.mxu1 %v5454_v16  ;;  %v6501_v16 = vld [vmem:[#allocation19_spill] sm:$0xff] }
 0x2cf   : > { %3145 = vmatprep.mubr.msk.f32.mxu1 %vm559_vm1, %v5025_v59  ;;  %v6500_v59 = vld [vmem:[#allocation9_spill] sm:$0xff] }
 0x2d2   : > { %2544 = vmatmul.mubr.f32.gmra.mxu1 %v5470_v57 }
 0x2d3   : > { %3146 = vmatprep.mubr.msk.f32.mxu1 %vm559_vm1, %v5481_v62 }
 0x2d6   : > { %2549 = vmatmul.mubr.f32.gmra.mxu1 %v5489_v7 }
 0x2d7   : > { %3147 = vmatprep.mubr.msk.f32.mxu1 %vm559_vm1, %v6498_v54 }
 0x2da   : > { %2554 = vmatmul.mubr.f32.gmra.mxu1 %v5505_v45 }
 0x2db   : > { %3148 = vmatprep.mubr.msk.f32.mxu1 %vm559_vm1, %v5516_v47 }
 0x2de   : > { %2559 = vmatmul.mubr.f32.gmra.mxu1 %v5524_v25 }
 0x2df   : > { %3149 = vmatprep.mubr.msk.f32.mxu1 %vm559_vm1, %v6499_v60 }
 0x2e2   : > { %2564 = vmatmul.mubr.f32.gmra.mxu1 %v5540_v22 }
 0x2e3   : > { %3150 = vmatprep.mubr.msk.f32.mxu1 %vm559_vm1, %v5551_v23 }
 0x2e6   : > { %2569 = vmatmul.mubr.f32.gmra.mxu1 %v5559_v3 }
 0x2e7   : > { %3151 = vmatprep.mubr.msk.f32.mxu1 %vm559_vm1, %v6500_v59 }
 0x2ea   : > { %2574 = vmatmul.mubr.f32.gmra.mxu1 %v5575_v18 }
 0x2eb   : > { %3152 = vmatprep.mubr.msk.f32.mxu1 %vm559_vm1, %v5586_v30 }
 0x2ee   : > { %2579 = vmatmul.mubr.f32.gmra.mxu1 %v5594_v55 }
 0x2ef   : > { %3153 = vmatprep.mubr.msk.f32.mxu1 %vm559_vm1, %v6501_v16 }
 0x2f2   : > { %2584 = vmatmul.mubr.f32.gmra.mxu1 %v5610_v14 }
 0x2f3   : > { %3154 = vmatprep.mubr.msk.f32.mxu1 %vm559_vm1, %v5621_v40 }
 0x2f6   : > { %2589 = vmatmul.mubr.f32.gmra.mxu1 %v5629_v50 }
 0x2f7   : > { %3155 = vmatprep.mubr.msk.f32.mxu1 %vm559_vm1, %v5184_v15 }
 0x2fa   : > { %2594 = vmatmul.mubr.f32.gmra.mxu1 %v5645_v41 }
 0x2fb   : > { %3156 = vmatprep.mubr.msk.f32.mxu1 %vm559_vm1, %v5656_v51 }
 0x2fe   : > { %2599 = vmatmul.mubr.f32.gmra.mxu1 %v5664_v6 }
 0x2ff   : > { %3157 = vmatprep.mubr.msk.f32.mxu1 %vm559_vm1, %v5212_v32 }
 0x302   : > { %2604 = vmatmul.mubr.f32.gmra.mxu1 %v5680_v58 }
 0x303   : > { %3158 = vmatprep.mubr.msk.f32.mxu1 %vm559_vm1, %v5691_v52 }
 0x306   : > { %2609 = vmatmul.mubr.f32.gmra.mxu1 %v5699_v43 }
 0x307   : > { %3159 = vmatprep.mubr.msk.f32.mxu1 %vm559_vm1, %v5240_v20 }
 0x309   : > { %v5964_v15 = vpop.f32.mrf.mxu1  ;;  %v2296_v49 = vpop.f32.mrf.mxu0 }
 0x30a   : > { %2614 = vmatmul.mubr.f32.gmra.mxu1 %v5715_v2 }
 0x30b   : > { %3160 = vmatprep.mubr.msk.f32.mxu1 %vm559_vm1, %v5726_v33  ;;  %v2063_v8 = vpop.f32.mrf.mxu1  ;;  %v2298_v32 = vpop.f32.mrf.mxu0 }
 0x30d   : > { %v5969_v36 = vpop.f32.mrf.mxu1  ;;  %v2301_v31 = vpop.f32.mrf.mxu0 }
 0x30e   : > { %2619 = vmatmul.mubr.f32.gmra.mxu1 %v5734_v44 }
 0x30f   : > { %3161 = vmatprep.mubr.msk.f32.mxu1 %vm559_vm1, %v5268_v61  ;;  %v2068_v57 = vpop.f32.mrf.mxu1  ;;  %v2303_v20 = vpop.f32.mrf.mxu0 }
 0x311   : > { %v2071_v62 = vpop.f32.mrf.mxu1  ;;  %v2306_v7 = vpop.f32.mrf.mxu0 }
 0x312   : > { %v5974_v45 = vadd.f32 %v2296_v49, %v2071_v62  ;;  %2624 = vmatmul.mubr.f32.gmra.mxu1 %v5750_v24 }
 0x313   : > { %3162 = vmatprep.mubr.msk.f32.mxu1 %vm559_vm1, %v5761_v56  ;;  %v2073_v47 = vpop.f32.mrf.mxu1  ;;  %v2308_v25 = vpop.f32.mrf.mxu0 }
 0x315   : > { %v2076_v22 = vpop.f32.mrf.mxu1  ;;  %v2311_v23 = vpop.f32.mrf.mxu0 }
 0x316   : > { %v5979_v3 = vadd.f32 %v2301_v31, %v2076_v22  ;;  %2629 = vmatmul.mubr.f32.gmra.mxu1 %v5769_v4 }
 0x317   : > { %3163 = vmatprep.mubr.msk.f32.mxu1 %vm559_vm1, %v5296_v11  ;;  %v2078_v61 = vpop.f32.mrf.mxu1  ;;  %v2313_v18 = vpop.f32.mrf.mxu0 }
 0x319   : > { %v2081_v30 = vpop.f32.mrf.mxu1  ;;  %v2316_v55 = vpop.f32.mrf.mxu0 }
 0x31a   : > { %v5984_v14 = vadd.f32 %v2306_v7, %v2081_v30  ;;  %2634 = vmatmul.mubr.f32.gmra.mxu1 %v5785_v39  ;;  %v6502_v7 = vmov 0.0  }
 0x31b   : > { %3164 = vmatprep.mubr.msk.f32.mxu1 %vm559_vm1, %v5796_v13  ;;  %v2083_v40 = vpop.f32.mrf.mxu1  ;;  %v2318_v50 = vpop.f32.mrf.mxu0 }
 0x31d   : > { %v2086_v41 = vpop.f32.mrf.mxu1  ;;  %v2321_v51 = vpop.f32.mrf.mxu0 }
 0x31e   : > { %v5989_v6 = vadd.f32 %v2311_v23, %v2086_v41  ;;  %2639 = vmatmul.mubr.f32.gmra.mxu1 %v5804_v19 }
 0x31f   : > { %3165 = vmatprep.mubr.msk.f32.mxu1 %vm559_vm1, %v5324_v53  ;;  %v2088_v11 = vpop.f32.mrf.mxu1  ;;  %v2323_v58 = vpop.f32.mrf.mxu0 }
 0x321   : > { %v2091_v52 = vpop.f32.mrf.mxu1  ;;  %v2326_v43 = vpop.f32.mrf.mxu0 }
 0x322   : > { %v5994_v2 = vadd.f32 %v2316_v55, %v2091_v52  ;;  %2644 = vmatmul.mubr.f32.gmra.mxu1 %v5820_v12 }
 0x323   : > { %3166 = vmatprep.mubr.msk.f32.mxu1 %vm559_vm1, %v5827_v21  ;;  %v2093_v33 = vpop.f32.mrf.mxu1  ;;  %v2328_v44 = vpop.f32.mrf.mxu0 }
 0x325   : > { %v2096_v24 = vpop.f32.mrf.mxu1  ;;  %v2331_v56 = vpop.f32.mrf.mxu0 }
 0x326   : > { %v5999_v4 = vadd.f32 %v2321_v51, %v2096_v24  ;;  %2649 = vmatmul.mubr.f32.gmra.mxu1 %v5835_v63 }
 0x327   : > { %3167 = vmatprep.mubr.msk.f32.mxu1 %vm559_vm1, %v5351_v1  ;;  %v2098_v53 = vpop.f32.mrf.mxu1  ;;  %v2333_v39 = vpop.f32.mrf.mxu0 }
 0x329   : > { %v2101_v13 = vpop.f32.mrf.mxu1  ;;  %v2336_v19 = vpop.f32.mrf.mxu0 }
 0x32a   : > { %v6004_v28 = vadd.f32 %v2326_v43, %v2101_v13  ;;  %2654 = vmatmul.mubr.f32.gmra.mxu1 %v5847_v0 }
 0x32b   : > { %3168 = vmatprep.mubr.msk.f32.mxu1 %vm559_vm1, %v5854_v42  ;;  %v2103_v12 = vpop.f32.mrf.mxu1  ;;  %v2338_v21 = vpop.f32.mrf.mxu0 }
 0x32d   : > { %v2106_v26 = vpop.f32.mrf.mxu1  ;;  %v2341_v5 = vpop.f32.mrf.mxu0 }
 0x32e   : > { %v6009_v29 = vadd.f32 %v2331_v56, %v2106_v26  ;;  %2659 = vmatmul.mubr.f32.gmra.mxu1 %v5862_v17 }
 0x32f   : > { %3169 = vmatprep.mubr.msk.f32.mxu1 %vm559_vm1, %v5389_v27  ;;  %v2108_v1 = vpop.f32.mrf.mxu1  ;;  %v2343_v63 = vpop.f32.mrf.mxu0 }
 0x331   : > { %v2111_v34 = vpop.f32.mrf.mxu1  ;;  %v2346_v54 = vpop.f32.mrf.mxu0 }
 0x332   : > { %v6014_v60 = vadd.f32 %v2336_v19, %v2111_v34  ;;  %2664 = vmatmul.mubr.f32.gmra.mxu1 %v5874_v48 }
 0x333   : > { %3170 = vmatprep.mubr.msk.f32.mxu1 %vm559_vm1, %v5881_v46  ;;  %v2113_v0 = vpop.f32.mrf.mxu1  ;;  %v2348_v42 = vpop.f32.mrf.mxu0 }
 0x335   : > { %v2116_v59 = vpop.f32.mrf.mxu1  ;;  %v2351_v16 = vpop.f32.mrf.mxu0 }
 0x336   : > { %v6019_v49 = vadd.f32 %v2341_v5, %v2116_v59  ;;  %2669 = vmatmul.mubr.f32.gmra.mxu1 %v5889_v38 }
 0x337   : > { %3171 = vmatprep.mubr.msk.f32.mxu1 %vm559_vm1, %v5445_v35  ;;  %v2118_v27 = vpop.f32.mrf.mxu1  ;;  %v2353_v17 = vpop.f32.mrf.mxu0 }
 0x339   : > { %v2121_v8 = vpop.f32.mrf.mxu1  ;;  %v2356_v32 = vpop.f32.mrf.mxu0 }
 0x33a   : > { %v6024_v31 = vadd.f32 %v2346_v54, %v2121_v8  ;;  %2674 = vmatmul.mubr.f32.gmra.mxu1 %v5899_v10  ;;  %v6503_v10 = vld [vmem:[#allocation21_spill] sm:$0xff] }
 0x33b   : > { %3172 = vmatprep.mubr.msk.f32.mxu1 %vm559_vm1, %v5905_v37  ;;  %v2123_v48 = vpop.f32.mrf.mxu1  ;;  %v2358_v46 = vpop.f32.mrf.mxu0 }
 0x33d   : > { %v2126_v57 = vpop.f32.mrf.mxu1  ;;  %v2361_v20 = vpop.f32.mrf.mxu0 }
 0x33e   : > { %v6029_v62 = vadd.f32 %v2351_v16, %v2126_v57  ;;  %2679 = vmatmul.mubr.f32.gmra.mxu1 %v5911_v9 }
 0x33f   : > { %v2128_v35 = vpop.f32.mrf.mxu1  ;;  %v2363_v38 = vpop.f32.mrf.mxu0  ;;  %2683 = vmatprep.mubr.f32.mxu1 %v6502_v7 }
 0x341   : > { %v2131_v47 = vpop.f32.mrf.mxu1  ;;  %v2366_v25 = vpop.f32.mrf.mxu0 }
 0x342   : > { %v6033_v22 = vadd.f32 %v2356_v32, %v2131_v47  ;;  %3174 = vmatmul.mubr.msk.f32.gmra.mxu1 %vm4251_vm3, %v6503_v10 }
 0x343   : > { %v2133_v37 = vpop.f32.mrf.mxu1  ;;  %v2368_v61 = vpop.f32.mrf.mxu0  ;;  %2688 = vmatprep.mubr.f32.mxu1 %v6502_v7 }
 0x345   : > { %v2136_v18 = vpop.f32.mrf.mxu1  ;;  %v2371_v30 = vpop.f32.mrf.mxu0 }
 0x346   : > { %v6039_v55 = vadd.f32 %v2361_v20, %v2136_v18  ;;  %3176 = vmatmul.mubr.msk.f32.gmra.mxu1 %vm4251_vm3, %v6503_v10 }
 0x347   : > { %v2138_v9 = vpop.f32.mrf.mxu1  ;;  %v2373_v40 = vpop.f32.mrf.mxu0 }
 0x349   : > { %v2141_v50 = vpop.f32.mrf.mxu1  ;;  %v2376_v41 = vpop.f32.mrf.mxu0 }
 0x34a   : > { %v6044_v51 = vadd.f32 %v2366_v25, %v2141_v50 }
 0x34b   : > { %v2143_v11 = vpop.f32.mrf.mxu1  ;;  %v2378_v58 = vpop.f32.mrf.mxu0 }
 0x34d   : > { %v2146_v52 = vpop.f32.mrf.mxu1  ;;  %v2381_v43 = vpop.f32.mrf.mxu0 }
 0x34e   : > { %v6046_v33 = vadd.f32 %v2371_v30, %v2146_v52 }
 0x34f   : > { %v2148_v44 = vpop.f32.mrf.mxu1  ;;  %v2383_v24 = vpop.f32.mrf.mxu0 }
 0x351   : > { %v2151_v56 = vpop.f32.mrf.mxu1  ;;  %v2386_v53 = vpop.f32.mrf.mxu0 }
 0x352   : > { %v6048_v39 = vadd.f32 %v2376_v41, %v2151_v56 }
 0x353   : > { %v2153_v13 = vpop.f32.mrf.mxu1  ;;  %v2388_v19 = vpop.f32.mrf.mxu0 }
 0x355   : > { %v2156_v12 = vpop.f32.mrf.mxu1  ;;  %v2391_v21 = vpop.f32.mrf.mxu0 }
 0x356   : > { %v6050_v26 = vadd.f32 %v2381_v43, %v2156_v12 }
 0x357   : > { %v2158_v5 = vpop.f32.mrf.mxu1  ;;  %v2393_v1 = vpop.f32.mrf.mxu0 }
 0x359   : > { %v2161_v63 = vpop.f32.mrf.mxu1  ;;  %v2396_v34 = vpop.f32.mrf.mxu0 }
 0x35a   : > { %v6052_v54 = vadd.f32 %v2386_v53, %v2161_v63 }
 0x35b   : > { %v2163_v0 = vpop.f32.mrf.mxu1  ;;  %v2398_v42 = vpop.f32.mrf.mxu0 }
 0x35d   : > { %v2166_v59 = vpop.f32.mrf.mxu1  ;;  %v2401_v16 = vpop.f32.mrf.mxu0 }
 0x35e   : > { %v6054_v27 = vadd.f32 %v2391_v21, %v2166_v59 }
 0x35f   : > { %v2168_v17 = vpop.f32.mrf.mxu1  ;;  %v2403_v8 = vpop.f32.mrf.mxu0 }
 0x361   : > { %v2171_v32 = vpop.f32.mrf.mxu1  ;;  %v2406_v48 = vpop.f32.mrf.mxu0 }
 0x362   : > { %v6056_v46 = vadd.f32 %v2396_v34, %v2171_v32 }
 0x363   : > { %v2173_v57 = vpop.f32.mrf.mxu1  ;;  %v2408_v20 = vpop.f32.mrf.mxu0 }
 0x365   : > { %v2176_v35 = vpop.f32.mrf.mxu1  ;;  %v2411_v38 = vpop.f32.mrf.mxu0 }
 0x366   : > { %v6058_v7 = vadd.f32 %v2401_v16, %v2176_v35  ;;  %v6505_v35 = vld [vmem:[#allocation17_spill] sm:$0xff] }
 0x367   : > { %v2178_v47 = vpop.f32.mrf.mxu1  ;;  %v2413_v25 = vpop.f32.mrf.mxu0 }
 0x368   : > { %v6082_v25 = vld [vmem:[%s6271_s4] ss:$0 sm:$0xff] }
 0x369   : > { %v2181_v10 = vpop.f32.mrf.mxu1  ;;  %v2416_v23 = vpop.f32.mrf.mxu0 }
 0x36a   : > { %v6060_v37 = vadd.f32 %v2406_v48, %v2181_v10 }
 0x36b   : > { %v2183_v61 = vpop.f32.mrf.mxu1  ;;  %v2418_v18 = vpop.f32.mrf.mxu0 }
 0x36c   : > { %v6506_v61 = vld [vmem:[#allocation11_spill] sm:$0xff] }
 0x36d   : > { %v2186_v30 = vpop.f32.mrf.mxu1  ;;  %v2421_v9 = vpop.f32.mrf.mxu0  ;;  %v2292_v18 = vadd.f32 %v6506_v61, %v5969_v36 }
 0x36e   : > { %v6062_v40 = vadd.f32 %v2411_v38, %v2186_v30  ;;  %v2287_v38 = vadd.f32 %v6505_v35, %v5964_v15 }
 0x36f   : > { %v2188_v50 = vpop.f32.mrf.mxu1  ;;  %v2423_v41 = vpop.f32.mrf.mxu0 }
 0x371   : > { %v2191_v11 = vpop.f32.mrf.mxu1  ;;  %v2426_v58 = vpop.f32.mrf.mxu0 }
 0x372   : > { %v6064_v52 = vadd.f32 %v2416_v23, %v2191_v11 }
 0x373   : > { %v2193_v43 = vpop.f32.mrf.mxu1  ;;  %v2428_v44 = vpop.f32.mrf.mxu0 }
 0x375   : > { %v2196_v24 = vpop.f32.mrf.mxu1  ;;  %v2431_v56 = vpop.f32.mrf.mxu0 }
 0x376   : > { %v6066_v53 = vadd.f32 %v2421_v9, %v2196_v24 }
 0x377   : > { %v2198_v13 = vpop.f32.mrf.mxu1  ;;  %v2433_v19 = vpop.f32.mrf.mxu0 }
 0x379   : > { %v2201_v12 = vpop.f32.mrf.mxu1  ;;  %v2436_v21 = vpop.f32.mrf.mxu0 }
 0x37a   : > { %v6068_v5 = vadd.f32 %v2426_v58, %v2201_v12 }
 0x37b   : > { %v2203_v1 = vpop.f32.mrf.mxu1  ;;  %v2438_v63 = vpop.f32.mrf.mxu0 }
 0x37e   : > { %v2206_v34 = vpop.f32.mrf.mxu1  ;;  %v2441_v0 = vpop.f32.mrf.mxu0 }
 0x37f   : > { %v6070_v42 = vadd.f32 %v2431_v56, %v2206_v34 }
 0x380   : > { %v2208_v59 = vpop.f32.mrf.mxu1  ;;  %v2443_v16 = vpop.f32.mrf.mxu0 }
 0x382   : > { %v2211_v17 = vpop.f32.mrf.mxu1 }
 0x383   : > { %v6072_v8 = vadd.f32 %v2436_v21, %v2211_v17 }
 0x384   : > { %v2213_v32 = vpop.f32.mrf.mxu1 }
 0x386   : > { %v2216_v48 = vpop.f32.mrf.mxu1 }
 0x387   : > { %v6074_v57 = vadd.f32 %v2441_v0, %v2216_v48 }
 0x388   : > { %v2218_v20 = vpop.f32.mrf.mxu1 }
 0x38a   : > { %v2535_v47 = vpop.f32.mrf.mxu1 }
 0x38b   : > { %v2694_v10 = vadd.f32 %v2535_v47, %v2287_v38 }
 0x38c   : > { %v2537_v23 = vpop.f32.mrf.mxu1 }
 0x38d   : > { %v2733_v30 = vadd.f32 %v6082_v25, %v2694_v10 }
 0x38e   : > { %v2540_v9 = vpop.f32.mrf.mxu1 }
 0x38f   : > { %vm2765_vm4 = vcmp.gt.f32.partialorder %v2733_v30, 0.0  ;;  %v2797_v50 = vmul.f32 0.01, %v2733_v30  ;;  %v2695_v15 = vadd.f32 %v2540_v9, %v2292_v18 }
 0x390   : > { %v2542_v41 = vpop.f32.mrf.mxu1 }
 0x391   : > { %v2829_v11 = vsel %vm2765_vm4, %v2733_v30, %v2797_v50  ;;  %v2734_v58 = vadd.f32 %v6082_v25, %v2695_v15 }
 0x392   : > { %2861 = vst.msk [vmem:[%s6090_s6] sm:$0xff] %vm559_vm1, %v2829_v11  ;;  %v2545_v43 = vpop.f32.mrf.mxu1 }
 0x393   : > { %vm2766_vm5 = vcmp.gt.f32.partialorder %v2734_v58, 0.0  ;;  %v2798_v36 = vmul.f32 0.01, %v2734_v58  ;;  %v2696_v44 = vadd.f32 %v2545_v43, %v5974_v45 }
 0x394   : > { %v2547_v24 = vpop.f32.mrf.mxu1 }
 0x395   : > { %v2830_v56 = vsel %vm2766_vm5, %v2734_v58, %v2798_v36  ;;  %v2735_v13 = vadd.f32 %v6082_v25, %v2696_v44 }
 0x396   : > { %2862 = vst.msk [vmem:[%s6090_s6 + $0x8] sm:$0xff] %vm559_vm1, %v2830_v56  ;;  %v2550_v19 = vpop.f32.mrf.mxu1 }
 0x397   : > { %vm2767_vm6 = vcmp.gt.f32.partialorder %v2735_v13, 0.0  ;;  %v2799_v12 = vmul.f32 0.01, %v2735_v13  ;;  %v2697_v21 = vadd.f32 %v2550_v19, %v5979_v3 }
 0x398   : > { %v2552_v1 = vpop.f32.mrf.mxu1 }
 0x399   : > { %v2831_v63 = vsel %vm2767_vm6, %v2735_v13, %v2799_v12  ;;  %v2736_v34 = vadd.f32 %v6082_v25, %v2697_v21 }
 0x39a   : > { %2863 = vst.msk [vmem:[%s6090_s6 + $0x10] sm:$0xff] %vm559_vm1, %v2831_v63  ;;  %v2555_v45 = vpop.f32.mrf.mxu1 }
 0x39b   : > { %vm2768_vm7 = vcmp.gt.f32.partialorder %v2736_v34, 0.0  ;;  %v2800_v0 = vmul.f32 0.01, %v2736_v34  ;;  %v2698_v59 = vadd.f32 %v2555_v45, %v5984_v14 }
 0x39c   : > { %v2557_v16 = vpop.f32.mrf.mxu1 }
 0x39d   : > { %v2832_v17 = vsel %vm2768_vm7, %v2736_v34, %v2800_v0  ;;  %v2737_v32 = vadd.f32 %v6082_v25, %v2698_v59 }
 0x39e   : > { %2864 = vst.msk [vmem:[%s6090_s6 + $0x18] sm:$0xff] %vm559_vm1, %v2832_v17  ;;  %v2560_v3 = vpop.f32.mrf.mxu1 }
 0x39f   : > { %vm2769_vm8 = vcmp.gt.f32.partialorder %v2737_v32, 0.0  ;;  %v2801_v48 = vmul.f32 0.01, %v2737_v32  ;;  %v2699_v20 = vadd.f32 %v2560_v3, %v5989_v6 }
 0x3a0   : > { %v2562_v35 = vpop.f32.mrf.mxu1 }
 0x3a1   : > { %v2833_v38 = vsel %vm2769_vm8, %v2737_v32, %v2801_v48  ;;  %v2738_v47 = vadd.f32 %v6082_v25, %v2699_v20 }
 0x3a2   : > { %2865 = vst.msk [vmem:[%s6090_s6 + $0x20] sm:$0xff] %vm559_vm1, %v2833_v38  ;;  %v2565_v14 = vpop.f32.mrf.mxu1 }
 0x3a3   : > { %vm2770_vm9 = vcmp.gt.f32.partialorder %v2738_v47, 0.0  ;;  %v2802_v10 = vmul.f32 0.01, %v2738_v47  ;;  %v2700_v23 = vadd.f32 %v2565_v14, %v5994_v2 }
 0x3a4   : > { %v2567_v61 = vpop.f32.mrf.mxu1 }
 0x3a5   : > { %v2834_v18 = vsel %vm2770_vm9, %v2738_v47, %v2802_v10  ;;  %v2739_v30 = vadd.f32 %v6082_v25, %v2700_v23 }
 0x3a6   : > { %2866 = vst.msk [vmem:[%s6090_s6 + $0x28] sm:$0xff] %vm559_vm1, %v2834_v18  ;;  %v2570_v6 = vpop.f32.mrf.mxu1 }
 0x3a7   : > { %vm2771_vm10 = vcmp.gt.f32.partialorder %v2739_v30, 0.0  ;;  %v2803_v9 = vmul.f32 0.01, %v2739_v30  ;;  %v2701_v50 = vadd.f32 %v2570_v6, %v5999_v4 }
 0x3a8   : > { %v2572_v15 = vpop.f32.mrf.mxu1 }
 0x3a9   : > { %v2835_v41 = vsel %vm2771_vm10, %v2739_v30, %v2803_v9  ;;  %v2740_v11 = vadd.f32 %v6082_v25, %v2701_v50 }
 0x3aa   : > { %2867 = vst.msk [vmem:[%s6090_s6 + $0x30] sm:$0xff] %vm559_vm1, %v2835_v41  ;;  %v2575_v2 = vpop.f32.mrf.mxu1 }
 0x3ab   : > { %vm2772_vm11 = vcmp.gt.f32.partialorder %v2740_v11, 0.0  ;;  %v2804_v58 = vmul.f32 0.01, %v2740_v11  ;;  %v2702_v43 = vadd.f32 %v2575_v2, %v6004_v28 }
 0x3ac   : > { %v2577_v36 = vpop.f32.mrf.mxu1 }
 0x3ad   : > { %v2836_v44 = vsel %vm2772_vm11, %v2740_v11, %v2804_v58  ;;  %v2741_v24 = vadd.f32 %v6082_v25, %v2702_v43 }
 0x3ae   : > { %2868 = vst.msk [vmem:[%s6090_s6 + $0x38] sm:$0xff] %vm559_vm1, %v2836_v44  ;;  %v2580_v4 = vpop.f32.mrf.mxu1 }
 0x3af   : > { %vm2773_vm12 = vcmp.gt.f32.partialorder %v2741_v24, 0.0  ;;  %v2805_v56 = vmul.f32 0.01, %v2741_v24  ;;  %v2703_v13 = vadd.f32 %v2580_v4, %v6009_v29 }
 0x3b0   : > { %v2582_v19 = vpop.f32.mrf.mxu1 }
 0x3b1   : > { %v2837_v12 = vsel %vm2773_vm12, %v2741_v24, %v2805_v56  ;;  %v2742_v21 = vadd.f32 %v6082_v25, %v2703_v13 }
 0x3b2   : > { %2869 = vst.msk [vmem:[%s6090_s6 + $0x40] sm:$0xff] %vm559_vm1, %v2837_v12  ;;  %v2585_v28 = vpop.f32.mrf.mxu1 }
 0x3b3   : > { %vm2774_vm13 = vcmp.gt.f32.partialorder %v2742_v21, 0.0  ;;  %v2806_v1 = vmul.f32 0.01, %v2742_v21  ;;  %v2704_v63 = vadd.f32 %v2585_v28, %v6014_v60 }
 0x3b4   : > { %v2587_v34 = vpop.f32.mrf.mxu1 }
 0x3b5   : > { %v2838_v45 = vsel %vm2774_vm13, %v2742_v21, %v2806_v1  ;;  %v2743_v0 = vadd.f32 %v6082_v25, %v2704_v63 }
 0x3b6   : > { %2870 = vst.msk [vmem:[%s6090_s6 + $0x48] sm:$0xff] %vm559_vm1, %v2838_v45  ;;  %v2590_v29 = vpop.f32.mrf.mxu1 }
 0x3b7   : > { %vm2775_vm14 = vcmp.gt.f32.partialorder %v2743_v0, 0.0  ;;  %v2807_v59 = vmul.f32 0.01, %v2743_v0  ;;  %v2705_v16 = vadd.f32 %v2590_v29, %v6019_v49 }
 0x3b8   : > { %v2592_v17 = vpop.f32.mrf.mxu1 }
 0x3b9   : > { %v2839_v32 = vsel %vm2775_vm14, %v2743_v0, %v2807_v59  ;;  %v2744_v3 = vadd.f32 %v6082_v25, %v2705_v16 }
 0x3ba   : > { %2871 = vst.msk [vmem:[%s6090_s6 + $0x50] sm:$0xff] %vm559_vm1, %v2839_v32  ;;  %v2595_v60 = vpop.f32.mrf.mxu1 }
 0x3bb   : > { %vm2776_vm15 = vcmp.gt.f32.partialorder %v2744_v3, 0.0  ;;  %v2808_v48 = vmul.f32 0.01, %v2744_v3  ;;  %v2706_v20 = vadd.f32 %v2595_v60, %v6024_v31 }
 0x3bc   : > { %v2597_v35 = vpop.f32.mrf.mxu1 }
 0x3bd   : > { %v2840_v38 = vsel %vm2776_vm15, %v2744_v3, %v2808_v48  ;;  %v2745_v47 = vadd.f32 %v6082_v25, %v2706_v20 }
 0x3be   : > { %2872 = vst.msk [vmem:[%s6090_s6 + $0x58] sm:$0xff] %vm559_vm1, %v2840_v38  ;;  %v2600_v49 = vpop.f32.mrf.mxu1 }
 0x3bf   : > { %vm2777_vm0 = vcmp.gt.f32.partialorder %v2745_v47, 0.0  ;;  %v2809_v14 = vmul.f32 0.01, %v2745_v47  ;;  %v2707_v10 = vadd.f32 %v2600_v49, %v6029_v62 }
 0x3c0   : > { %v2602_v23 = vpop.f32.mrf.mxu1 }
 0x3c1   : > { %v2841_v61 = vsel %vm2777_vm0, %v2745_v47, %v2809_v14  ;;  %v2746_v18 = vadd.f32 %v6082_v25, %v2707_v10 }
 0x3c2   : > { %2873 = vst.msk [vmem:[%s6090_s6 + $0x60] sm:$0xff] %vm559_vm1, %v2841_v61  ;;  %v2605_v31 = vpop.f32.mrf.mxu1 }
 0x3c3   : > { %vm2778_vm2 = vcmp.gt.f32.partialorder %v2746_v18, 0.0  ;;  %v2810_v30 = vmul.f32 0.01, %v2746_v18  ;;  %v2708_v6 = vadd.f32 %v2605_v31, %v6033_v22 }
 0x3c4   : > { %v2607_v9 = vpop.f32.mrf.mxu1 }
 0x3c5   : > { %v2842_v50 = vsel %vm2778_vm2, %v2746_v18, %v2810_v30  ;;  %v2747_v15 = vadd.f32 %v6082_v25, %v2708_v6 }
 0x3c6   : > { %2874 = vst.msk [vmem:[%s6090_s6 + $0x68] sm:$0xff] %vm559_vm1, %v2842_v50  ;;  %v2610_v62 = vpop.f32.mrf.mxu1 }
 0x3c7   : > { %vm2779_vm3 = vcmp.gt.f32.partialorder %v2747_v15, 0.0  ;;  %v2811_v41 = vmul.f32 0.01, %v2747_v15  ;;  %v2709_v11 = vadd.f32 %v2610_v62, %v6039_v55 }
 0x3c8   : > { %v2612_v2 = vpop.f32.mrf.mxu1 }
 0x3c9   : > { %v2843_v58 = vsel %vm2779_vm3, %v2747_v15, %v2811_v41  ;;  %v2748_v43 = vadd.f32 %v6082_v25, %v2709_v11 }
 0x3ca   : > { %2875 = vst.msk [vmem:[%s6090_s6 + $0x70] sm:$0xff] %vm559_vm1, %v2843_v58  ;;  %v2615_v22 = vpop.f32.mrf.mxu1 }
 0x3cb   : > { %vm2780_vm4 = vcmp.gt.f32.partialorder %v2748_v43, 0.0  ;;  %v2812_v36 = vmul.f32 0.01, %v2748_v43  ;;  %v2710_v44 = vadd.f32 %v2615_v22, %v6044_v51 }
 0x3cc   : > { %v2617_v24 = vpop.f32.mrf.mxu1 }
 0x3cd   : > { %v2844_v4 = vsel %vm2780_vm4, %v2748_v43, %v2812_v36  ;;  %v2749_v56 = vadd.f32 %v6082_v25, %v2710_v44 }
 0x3ce   : > { %2876 = vst.msk [vmem:[%s6090_s6 + $0x78] sm:$0xff] %vm559_vm1, %v2844_v4  ;;  %v2620_v55 = vpop.f32.mrf.mxu1 }
 0x3cf   : > { %vm2781_vm5 = vcmp.gt.f32.partialorder %v2749_v56, 0.0  ;;  %v2813_v13 = vmul.f32 0.01, %v2749_v56  ;;  %v2711_v19 = vadd.f32 %v2620_v55, %v6046_v33 }
 0x3d0   : > { %v2622_v12 = vpop.f32.mrf.mxu1 }
 0x3d1   : > { %v2845_v21 = vsel %vm2781_vm5, %v2749_v56, %v2813_v13  ;;  %v2750_v28 = vadd.f32 %v6082_v25, %v2711_v19 }
 0x3d2   : > { %2877 = vst.msk [vmem:[%s6090_s6 + $0x80] sm:$0xff] %vm559_vm1, %v2845_v21  ;;  %v2625_v51 = vpop.f32.mrf.mxu1 }
 0x3d3   : > { %vm2782_vm6 = vcmp.gt.f32.partialorder %v2750_v28, 0.0  ;;  %v2814_v1 = vmul.f32 0.01, %v2750_v28  ;;  %v2712_v63 = vadd.f32 %v2625_v51, %v6048_v39 }
 0x3d4   : > { %v2627_v34 = vpop.f32.mrf.mxu1 }
 0x3d5   : > { %v2846_v45 = vsel %vm2782_vm6, %v2750_v28, %v2814_v1  ;;  %v2751_v0 = vadd.f32 %v6082_v25, %v2712_v63 }
 0x3d6   : > { %2878 = vst.msk [vmem:[%s6090_s6 + $0x88] sm:$0xff] %vm559_vm1, %v2846_v45  ;;  %v2630_v33 = vpop.f32.mrf.mxu1 }
 0x3d7   : > { %vm2783_vm7 = vcmp.gt.f32.partialorder %v2751_v0, 0.0  ;;  %v2815_v29 = vmul.f32 0.01, %v2751_v0  ;;  %v2713_v59 = vadd.f32 %v2630_v33, %v6050_v26 }
 0x3d8   : > { %v2632_v16 = vpop.f32.mrf.mxu1 }
 0x3d9   : > { %v2847_v17 = vsel %vm2783_vm7, %v2751_v0, %v2815_v29  ;;  %v2752_v32 = vadd.f32 %v6082_v25, %v2713_v59 }
 0x3da   : > { %2879 = vst.msk [vmem:[%s6090_s6 + $0x90] sm:$0xff] %vm559_vm1, %v2847_v17  ;;  %v2635_v39 = vpop.f32.mrf.mxu1 }
 0x3db   : > { %vm2784_vm8 = vcmp.gt.f32.partialorder %v2752_v32, 0.0  ;;  %v2816_v3 = vmul.f32 0.01, %v2752_v32  ;;  %v2714_v60 = vadd.f32 %v2635_v39, %v6052_v54 }
 0x3dc   : > { %v2637_v48 = vpop.f32.mrf.mxu1 }
 0x3dd   : > { %v2848_v20 = vsel %vm2784_vm8, %v2752_v32, %v2816_v3  ;;  %v2753_v35 = vadd.f32 %v6082_v25, %v2714_v60 }
 0x3de   : > { %2880 = vst.msk [vmem:[%s6090_s6 + $0x98] sm:$0xff] %vm559_vm1, %v2848_v20  ;;  %v2640_v26 = vpop.f32.mrf.mxu1 }
 0x3df   : > { %vm2785_vm9 = vcmp.gt.f32.partialorder %v2753_v35, 0.0  ;;  %v2817_v38 = vmul.f32 0.01, %v2753_v35  ;;  %v2715_v47 = vadd.f32 %v2640_v26, %v6054_v27 }
 0x3e0   : > { %v2642_v49 = vpop.f32.mrf.mxu1 }
 0x3e1   : > { %v2849_v14 = vsel %vm2785_vm9, %v2753_v35, %v2817_v38  ;;  %v2754_v10 = vadd.f32 %v6082_v25, %v2715_v47 }
 0x3e2   : > { %2881 = vst.msk [vmem:[%s6090_s6 + $0xa0] sm:$0xff] %vm559_vm1, %v2849_v14  ;;  %v2645_v54 = vpop.f32.mrf.mxu1 }
 0x3e3   : > { %vm2786_vm10 = vcmp.gt.f32.partialorder %v2754_v10, 0.0  ;;  %v2818_v23 = vmul.f32 0.01, %v2754_v10  ;;  %v2716_v61 = vadd.f32 %v2645_v54, %v6056_v46 }
 0x3e4   : > { %v2647_v18 = vpop.f32.mrf.mxu1 }
 0x3e5   : > { %v2850_v31 = vsel %vm2786_vm10, %v2754_v10, %v2818_v23  ;;  %v2755_v30 = vadd.f32 %v6082_v25, %v2716_v61 }
 0x3e6   : > { %2882 = vst.msk [vmem:[%s6090_s6 + $0xa8] sm:$0xff] %vm559_vm1, %v2850_v31  ;;  %v2650_v27 = vpop.f32.mrf.mxu1 }
 0x3e7   : > { %vm2787_vm11 = vcmp.gt.f32.partialorder %v2755_v30, 0.0  ;;  %v2819_v6 = vmul.f32 0.01, %v2755_v30  ;;  %v2717_v9 = vadd.f32 %v2650_v27, %v6058_v7 }
 0x3e8   : > { %v2652_v50 = vpop.f32.mrf.mxu1 }
 0x3e9   : > { %v2851_v15 = vsel %vm2787_vm11, %v2755_v30, %v2819_v6  ;;  %v2756_v62 = vadd.f32 %v6082_v25, %v2717_v9 }
 0x3ea   : > { %2883 = vst.msk [vmem:[%s6090_s6 + $0xb0] sm:$0xff] %vm559_vm1, %v2851_v15  ;;  %v2655_v46 = vpop.f32.mrf.mxu1 }
 0x3eb   : > { %vm2788_vm12 = vcmp.gt.f32.partialorder %v2756_v62, 0.0  ;;  %v2820_v41 = vmul.f32 0.01, %v2756_v62  ;;  %v2718_v11 = vadd.f32 %v2655_v46, %v6060_v37 }
 0x3ec   : > { %v2657_v2 = vpop.f32.mrf.mxu1 }
 0x3ed   : > { %v2852_v58 = vsel %vm2788_vm12, %v2756_v62, %v2820_v41  ;;  %v2757_v43 = vadd.f32 %v6082_v25, %v2718_v11 }
 0x3ee   : > { %2884 = vst.msk [vmem:[%s6090_s6 + $0xb8] sm:$0xff] %vm559_vm1, %v2852_v58  ;;  %v2660_v7 = vpop.f32.mrf.mxu1 }
 0x3ef   : > { %vm2789_vm13 = vcmp.gt.f32.partialorder %v2757_v43, 0.0  ;;  %v2821_v22 = vmul.f32 0.01, %v2757_v43  ;;  %v2719_v36 = vadd.f32 %v2660_v7, %v6062_v40 }
 0x3f0   : > { %v2662_v44 = vpop.f32.mrf.mxu1 }
 0x3f1   : > { %v2853_v24 = vsel %vm2789_vm13, %v2757_v43, %v2821_v22  ;;  %v2758_v4 = vadd.f32 %v6082_v25, %v2719_v36 }
 0x3f2   : > { %2885 = vst.msk [vmem:[%s6090_s6 + $0xc0] sm:$0xff] %vm559_vm1, %v2853_v24  ;;  %v2665_v37 = vpop.f32.mrf.mxu1 }
 0x3f3   : > { %vm2790_vm14 = vcmp.gt.f32.partialorder %v2758_v4, 0.0  ;;  %v2822_v56 = vmul.f32 0.01, %v2758_v4  ;;  %v2720_v55 = vadd.f32 %v2665_v37, %v6064_v52 }
 0x3f4   : > { %v2667_v13 = vpop.f32.mrf.mxu1 }
 0x3f5   : > { %v2854_v19 = vsel %vm2790_vm14, %v2758_v4, %v2822_v56  ;;  %v2759_v12 = vadd.f32 %v6082_v25, %v2720_v55 }
 0x3f6   : > { %2886 = vst.msk [vmem:[%s6090_s6 + $0xc8] sm:$0xff] %vm559_vm1, %v2854_v19  ;;  %v2670_v40 = vpop.f32.mrf.mxu1 }
 0x3f7   : > { %vm2791_vm15 = vcmp.gt.f32.partialorder %v2759_v12, 0.0  ;;  %v2823_v21 = vmul.f32 0.01, %v2759_v12  ;;  %v2721_v28 = vadd.f32 %v2670_v40, %v6066_v53 }
 0x3f8   : > { %v2672_v51 = vpop.f32.mrf.mxu1 }
 0x3f9   : > { %v2855_v1 = vsel %vm2791_vm15, %v2759_v12, %v2823_v21  ;;  %v2760_v63 = vadd.f32 %v6082_v25, %v2721_v28 }
 0x3fa   : > { %2887 = vst.msk [vmem:[%s6090_s6 + $0xd0] sm:$0xff] %vm559_vm1, %v2855_v1  ;;  %v2675_v52 = vpop.f32.mrf.mxu1 }
 0x3fb   : > { %vm2792_vm0 = vcmp.gt.f32.partialorder %v2760_v63, 0.0  ;;  %v2824_v34 = vmul.f32 0.01, %v2760_v63  ;;  %v2722_v45 = vadd.f32 %v2675_v52, %v6068_v5 }
 0x3fc   : > { %v2677_v0 = vpop.f32.mrf.mxu1 }
 0x3fd   : > { %v2856_v33 = vsel %vm2792_vm0, %v2760_v63, %v2824_v34  ;;  %v2761_v29 = vadd.f32 %v6082_v25, %v2722_v45 }
 0x3fe   : > { %2888 = vst.msk [vmem:[%s6090_s6 + $0xd8] sm:$0xff] %vm559_vm1, %v2856_v33  ;;  %v2680_v53 = vpop.f32.mrf.mxu1 }
 0x3ff   : > { %vm2793_vm2 = vcmp.gt.f32.partialorder %v2761_v29, 0.0  ;;  %v2825_v59 = vmul.f32 0.01, %v2761_v29  ;;  %v2723_v16 = vadd.f32 %v2680_v53, %v6070_v42 }
 0x400   : > { %v2682_v17 = vpop.f32.mrf.mxu1 }
 0x401   : > { %v2857_v32 = vsel %vm2793_vm2, %v2761_v29, %v2825_v59  ;;  %v2762_v39 = vadd.f32 %v6082_v25, %v2723_v16 }
 0x402   : > { %2889 = vst.msk [vmem:[%s6090_s6 + $0xe0] sm:$0xff] %vm559_vm1, %v2857_v32  ;;  %v2685_v5 = vpop.f32.mrf.mxu1 }
 0x403   : > { %vm2794_vm3 = vcmp.gt.f32.partialorder %v2762_v39, 0.0  ;;  %v2826_v3 = vmul.f32 0.01, %v2762_v39  ;;  %v2724_v60 = vadd.f32 %v2685_v5, %v6072_v8 }
 0x404   : > { %v2687_v48 = vpop.f32.mrf.mxu1 }
 0x405   : > { %v2858_v20 = vsel %vm2794_vm3, %v2762_v39, %v2826_v3  ;;  %v2763_v35 = vadd.f32 %v6082_v25, %v2724_v60 }
 0x406   : > { %2890 = vst.msk [vmem:[%s6090_s6 + $0xe8] sm:$0xff] %vm559_vm1, %v2858_v20  ;;  %v2690_v42 = vpop.f32.mrf.mxu1 }
 0x407   : > { %vm2795_vm4 = vcmp.gt.f32.partialorder %v2763_v35, 0.0  ;;  %v2827_v26 = vmul.f32 0.01, %v2763_v35  ;;  %v2725_v38 = vadd.f32 %v2690_v42, %v6074_v57 }
 0x408   : > { %v2692_v47 = vpop.f32.mrf.mxu1 }
 0x409   : > { %v2859_v49 = vsel %vm2795_vm4, %v2763_v35, %v2827_v26  ;;  %v2764_v8 = vadd.f32 %v6082_v25, %v2725_v38 }
 0x40a   : > { %2891 = vst.msk [vmem:[%s6090_s6 + $0xf0] sm:$0xff] %vm559_vm1, %v2859_v49 }
 0x40b   : > { %vm2796_vm5 = vcmp.gt.f32.partialorder %v2764_v8, 0.0  ;;  %v2828_v14 = vmul.f32 0.01, %v2764_v8 }
 0x40d   : > { %v2860_v57 = vsel %vm2796_vm5, %v2764_v8, %v2828_v14 }
 0x40e   : > { %2892 = vst.msk [vmem:[%s6090_s6 + $0xf8] sm:$0xff] %vm559_vm1, %v2860_v57 }
 0x40f   : > { %3241 = shalt.err (!%p3238_p3)
}
 0x410   : > { %s3242_s14 = scalar_lea.hbm %s6219_s9, 4096  ;;  %s3246_s25 = scalar_lea.hbm %s6272_s5, 8192 }
 0x411   : > { %p3243_p4 = scmp.ne.s32.totalorder %s6219_s9, %s3242_s14  ;;  %p3247_p9 = scmp.lt.s32.totalorder %s6219_s9, %s6272_s5 }
 0x412   : > { %p3248_p10 = scmp.lt.s32.totalorder %s3246_s25, %s3242_s14 }
 0x413   : > { %p3244_p7 = pnand %p3243_p4, %p3363_p5 }
 0x414   : > { %p3249_p11 = por %p3248_p10, %p3247_p9 }
 0x415   : > { %p3245_p8 = pneg %p3244_p7 }
 0x417   : > { %p3250_p12 = pnand %p3249_p11, %p3245_p8 }
 0x419   : > { %3253 = shalt.err (!%p3250_p12)
}
 0x41a   : > { %s3293_s6 = smov 128   ;;  %s3294_s7 = smov 8  }
 0x41b   : > { %3185 = dma.vmem_to_hbm [thread:$0]  (%p3363_p5), %s6221_s23, 4096, %s6219_s9, %s6227_s22, %s3293_s6, %s3293_s6, %s3294_s7  }
 0x41c PF: > { %p3191_p13 = scmp.ge.s32.totalorder %s3288_s21, 2  ;;  %s2922_s8 = sand.u32 1, %s3276_s18  }
 0x41d   : > { %s2923_s15 = scalar_lea.sflag [#allocation3], %s2922_s8 }
 0x41e   : > { %p3188_p0 = pnand %p3191_p13, %p3367_p6 }
 0x420   : > { %p3189_p1 = pneg %p3188_p0 }
 0x422   : > { %3271 = dma.done.wait (%p3189_p1), %s2923_s15, 4096  }
 0x423   : > { %3273 = vsyncadd (%p3189_p1), %s2923_s15, 4294963200  ;;  %p15_p2 = scmp.ge.s32.totalorder %s3350_s24, 4   ;;  %s6507_s18 = smov %s3280_s19 }
 0x424   : > { %s6508_s19 = smov %s3284_s20  ;;  %s6509_s20 = smov %s3361_s27 }
 0x425   : > { %s6510_s21 = smov %s3350_s24  ;;  %17 = sbr.rel (!%p15_p2) target bundleno = 3 (0x3), region = 75 }
 0x42a   :  { %2928 = vsyncpa [#allocation3], 1 }
 0x42b   :  { %2930 = vsyncpa [#allocation3 + $0x1], 1 }

</bundles_post_ra>
